<compile_context>
chip_gen: v7x
topology: tpu7x:2x2x1
jax: 0.10.0
libtpu: 0.0.40
codegen_flags: <defaults>
</compile_context>

<pallas_src>
import functools

import jax
import jax.numpy as jnp
from jax.experimental import pallas as pl
from jax.experimental.pallas import tpu as pltpu


def _round_up(x, m):
    return (x + m - 1) // m * m


def _vmem_limit_bytes():
    """Generation-aware VMEM budget: ~3/4 of physical per-core VMEM, capped."""
    try:
        cap = pltpu.get_tpu_info().vmem_capacity_bytes or 0
    except Exception:
        cap = 0
    if not cap:
        cap = 64 * 1024 * 1024          # conservative fallback
    return int(min(cap * 3 // 4, 100 * 1024 * 1024))


def _resident_in_spec(block_shape, index_map, single_buffer):
    """BlockSpec for the per-image block that is reused across row tiles."""
    if single_buffer:
        # No point double-buffering a block that only changes once per image.
        return pl.BlockSpec(block_shape, index_map, pipeline_mode=pl.Buffered(1))
    return pl.BlockSpec(block_shape, index_map)


def _dwsep_kernel(x_ref, dw_ref, b1_ref, pw_ref, b2_ref, o_ref,
                  *, stride, tile_h, chunk_h, wo):
    """Fused depthwise-3x3 (+BN1 folded) + ReLU -> pointwise-1x1 (+BN2 folded) + ReLU.

    x_ref : (s*s, Hs, Ws, Cp)   space-to-depth view of the zero-padded NHWC
                                image (plane p = (ki % s) * s + (kj % s)),
                                resident across the row-tile grid axis
    dw_ref: (9, Cp)  f32        depthwise weights, tap-major, BN1 scale folded
    b1_ref: (1, Cp)  f32        folded BN1 bias
    pw_ref: (Cp, Coutp) bf16    pointwise weights, BN2 scale folded (pre-cast)
    b2_ref: (1, Coutp) f32      folded BN2 bias
    o_ref : (tile_h, wo, Coutp) output row tile
    """
    s = stride
    cp = x_ref.shape[-1]
    coutp = o_ref.shape[-1]
    r0 = pl.program_id(1) * tile_h            # first output row of this tile

    # Hoisted: weights / biases loaded once per grid step.
    dw = dw_ref[...]                          # (9, Cp)        f32
    b1 = b1_ref[0]                            # (Cp,)          f32
    pw = pw_ref[...]                          # (Cp, Coutp)    bf16 (default)
    b2 = b2_ref[0]                            # (Coutp,)       f32

    # Process the row tile in chunks of `chunk_h` rows: the chunk accumulator
    # stays register-resident, and each chunk's MXU matmul is issued right
    # after its VPU MACs so the two engines overlap across chunks.
    for c in range(tile_h // chunk_h):
        cr0 = r0 + c * chunk_h

        # Depthwise 3x3: per-channel MAC over 9 taps (VPU). Taps are slices of
        # the resident space-to-depth block (stride handled by the plane index).
        acc = None
        for ki in range(3):
            for kj in range(3):
                p = (ki % s) * s + (kj % s)
                tap = x_ref[p, pl.ds(cr0 + ki // s, chunk_h),
                            pl.ds(kj // s, wo), :]
                term = tap.astype(jnp.float32) * dw[ki * 3 + kj]
                acc = term if acc is None else acc + term

        # BN1 bias + ReLU (scale already folded into dw).
        h = jnp.maximum(acc + b1, 0.0)

        # Pointwise 1x1 conv == channel matmul (MXU), bf16 operands (default),
        # f32 accumulation; lane-dense output.
        y = jnp.dot(h.reshape(chunk_h * wo, cp).astype(pw.dtype), pw,
                    preferred_element_type=jnp.float32)

        # BN2 bias + ReLU (scale already folded into pw).
        y = jnp.maximum(y + b2, 0.0)
        o_ref[pl.ds(c * chunk_h, chunk_h), :, :] = (
            y.reshape(chunk_h, wo, coutp).astype(o_ref.dtype))


def init_params(key, cin, cout):
    ks = jax.random.split(key, 10)
    return {
        # PyTorch shapes: depthwise (Cin, 1, 3, 3), pointwise (Cout, Cin, 1, 1)
        "dw_w": jax.random.normal(ks[0], (cin, 1, 3, 3), jnp.float32) * 0.2,
        "g1": 1.0 + 0.1 * jax.random.normal(ks[1], (cin,), jnp.float32),
        "b1": 0.1 * jax.random.normal(ks[2], (cin,), jnp.float32),
        "m1": 0.1 * jax.random.normal(ks[3], (cin,), jnp.float32),
        "v1": 1.0 + 0.1 * jnp.abs(jax.random.normal(ks[4], (cin,), jnp.float32)),
        "pw_w": jax.random.normal(ks[5], (cout, cin, 1, 1), jnp.float32) * 0.2,
        "g2": 1.0 + 0.1 * jax.random.normal(ks[6], (cout,), jnp.float32),
        "b2": 0.1 * jax.random.normal(ks[7], (cout,), jnp.float32),
        "m2": 0.1 * jax.random.normal(ks[8], (cout,), jnp.float32),
        "v2": 1.0 + 0.1 * jnp.abs(jax.random.normal(ks[9], (cout,), jnp.float32)),
    }


def _fold_bn(gamma, beta, mean, var, eps=1e-5):
    scale = gamma * jax.lax.rsqrt(var + eps)
    bias = beta - mean * scale
    return scale, bias


@functools.partial(jax.jit, static_argnames=("stride", "tile_h", "chunk_h",
                                              "use_bf16", "single_buffer_input"))
def _dwsep_impl(x_nchw, params, *, stride, tile_h, chunk_h, use_bf16,
                single_buffer_input):
    assert stride in (1, 2)
    s = stride
    N, Cin, H, W = x_nchw.shape
    Cout = params["pw_w"].shape[0]

    Ho = (H + 2 - 3) // s + 1
    Wo = (W + 2 - 3) // s + 1

    # Lane-dense channel padding (multiples of 128). Pads are zero everywhere,
    # so padded channels stay exactly zero and are sliced off at the end.
    Cp = _round_up(Cin, 128)
    Coutp = _round_up(Cout, 128)

    # Row tiling: each grid step covers `th` output rows, processed in
    # register-resident chunks of `ch` rows inside the kernel. For big MXU
    # utilization pick chunk_h so chunk_h * Wo >= a few hundred (v6e/v7x).
    ch = max(1, min(chunk_h, Ho))
    th = max(ch, min(tile_h, Ho))
    th = _round_up(th, ch)                  # whole number of chunks per tile
    nrt = pl.cdiv(Ho, th)
    Ho_pad = nrt * th

    # Space-to-depth geometry: padded row q = s*hh + ph, col = s*ww + pw.
    # Tap (ki, kj) for output (r, w) lives at plane (ki % s, kj % s),
    # hh = r + ki // s, ww = w + kj // s.
    Hs = Ho_pad + 2 // s
    Ws = Wo + 2 // s
    pad_h = s * Hs - (H + 2)
    pad_w = s * Ws - (W + 2)
    assert pad_h >= 0 and pad_w >= 0

    store_dtype = jnp.bfloat16 if use_bf16 else x_nchw.dtype
    mm_dtype = jnp.bfloat16 if use_bf16 else jnp.float32

    # ---- glue: layout only (cast / transpose / zero-pad / space-to-depth) ---
    x = jnp.transpose(x_nchw, (0, 2, 3, 1)).astype(store_dtype)        # NHWC
    x = jnp.pad(x, ((0, 0), (1, 1 + pad_h), (1, 1 + pad_w), (0, Cp - Cin)))
    x = x.reshape(N, Hs, s, Ws, s, Cp)
    x = jnp.transpose(x, (0, 2, 4, 1, 3, 5)).reshape(N, s * s, Hs, Ws, Cp)

    # ---- fold BN into the conv weights (exact eval-mode conv-BN folding) ----
    s1, b1 = _fold_bn(params["g1"], params["b1"], params["m1"], params["v1"])
    s2, b2 = _fold_bn(params["g2"], params["b2"], params["m2"], params["v2"])

    dw = jnp.transpose(params["dw_w"][:, 0], (1, 2, 0)).reshape(9, Cin)
    dw = dw * s1[None, :]                                # BN1 scale folded
    dw = jnp.pad(dw, ((0, 0), (0, Cp - Cin)))            # stays f32

    pw = jnp.transpose(params["pw_w"][:, :, 0, 0], (1, 0))  # (Cin, Cout)
    pw = pw * s2[None, :]                                # BN2 scale folded
    pw = jnp.pad(pw, ((0, Cp - Cin), (0, Coutp - Cout)))
    pw = pw.astype(mm_dtype)                             # pre-cast once (bf16 MXU)

    b1p = jnp.pad(b1, (0, Cp - Cin)).reshape(1, Cp)
    b2p = jnp.pad(b2, (0, Coutp - Cout)).reshape(1, Coutp)

    kernel = functools.partial(_dwsep_kernel, stride=s, tile_h=th, chunk_h=ch,
                               wo=Wo)

    out = pl.pallas_call(
        kernel,
        out_shape=jax.ShapeDtypeStruct((N, Ho_pad, Wo, Coutp), x_nchw.dtype),
        grid=(N, nrt),
        in_specs=[
            # Full image block per n; index map ignores the row-tile axis so
            # the block stays VMEM-resident across it (one DMA per image),
            # single-buffered so VMEM does not hold two copies.
            _resident_in_spec((None, s * s, Hs, Ws, Cp),
                              lambda n, i: (n, 0, 0, 0, 0),
                              single_buffer_input),
            pl.BlockSpec((9, Cp), lambda n, i: (0, 0)),
            pl.BlockSpec((1, Cp), lambda n, i: (0, 0)),
            pl.BlockSpec((Cp, Coutp), lambda n, i: (0, 0)),
            pl.BlockSpec((1, Coutp), lambda n, i: (0, 0)),
        ],
        out_specs=pl.BlockSpec((None, th, Wo, Coutp), lambda n, i: (n, i, 0, 0)),
        compiler_params=pltpu.CompilerParams(
            # Both axes independent -> shardable across TCs (megacore / v7x).
            dimension_semantics=("parallel", "parallel"),
            vmem_limit_bytes=_vmem_limit_bytes()),
    )(x, dw, b1p, pw, b2p)

    out = out[:, :Ho, :, :Cout]                  # drop row / channel padding
    return jnp.transpose(out, (0, 3, 1, 2))      # back to NCHW


_SINGLE_BUFFER_OK = True   # cleared if this jax/Mosaic build rejects pl.Buffered(1)


def depthwise_separable_conv2d(x_nchw, params, *, stride, tile_h=32, chunk_h=8,
                               use_bf16=True):
    """Public wrapper; falls back to default buffering if Buffered(1) is rejected."""
    global _SINGLE_BUFFER_OK
    kwargs = dict(stride=stride, tile_h=tile_h, chunk_h=chunk_h,
                  use_bf16=use_bf16)
    if _SINGLE_BUFFER_OK:
        try:
            return _dwsep_impl(x_nchw, params, single_buffer_input=True, **kwargs)
        except Exception:
            _SINGLE_BUFFER_OK = False
    return _dwsep_impl(x_nchw, params, single_buffer_input=False, **kwargs)


def reference(x_nchw, params, *, stride, eps=1e-5):
    """Pure-JAX reference (eval-mode BN), NCHW throughout."""
    dn = ("NCHW", "OIHW", "NCHW")
    y = jax.lax.conv_general_dilated(
        x_nchw, params["dw_w"], (stride, stride), ((1, 1), (1, 1)),
        feature_group_count=x_nchw.shape[1], dimension_numbers=dn,
        precision=jax.lax.Precision.HIGHEST)
    s1, b1 = _fold_bn(params["g1"], params["b1"], params["m1"], params["v1"], eps)
    y = jnp.maximum(y * s1[None, :, None, None] + b1[None, :, None, None], 0.0)
    y = jax.lax.conv_general_dilated(
        y, params["pw_w"], (1, 1), ((0, 0), (0, 0)), dimension_numbers=dn,
        precision=jax.lax.Precision.HIGHEST)
    s2, b2 = _fold_bn(params["g2"], params["b2"], params["m2"], params["v2"], eps)
    y = jnp.maximum(y * s2[None, :, None, None] + b2[None, :, None, None], 0.0)
    return y


if __name__ == "__main__":
    N, Cin, H, W = 2, 8, 16, 16
    Cout = 16

    key = jax.random.PRNGKey(0)
    kx, kp = jax.random.split(key)
    x = jax.random.normal(kx, (N, Cin, H, W), jnp.float32)
    params = init_params(kp, Cin, Cout)

    # Default path: bf16 input storage + bf16 MXU operands, f32 accumulation.
    # tile_h=16 / chunk_h=8 exercises multiple in-kernel chunks; both strides.
    for stride in (1, 2):
        out = depthwise_separable_conv2d(x, params, stride=stride,
                                         tile_h=16, chunk_h=8)
        out = jax.block_until_ready(out)
        ref = reference(x, params, stride=stride)
        assert out.shape == ref.shape, (out.shape, ref.shape)
        err = float(jnp.max(jnp.abs(out - ref)))
        assert err < 5e-2, f"bf16 stride={stride}: max abs err {err}"

    # Full-f32 path (tighter numerical check of the kernel structure itself;
    # tile_h=8 exercises multiple row tiles).
    out_f32 = depthwise_separable_conv2d(x, params, stride=1, tile_h=8,
                                         chunk_h=8, use_bf16=False)
    out_f32 = jax.block_until_ready(out_f32)
    err_f32 = float(jnp.max(jnp.abs(out_f32 - reference(x, params, stride=1))))
    assert err_f32 < 1e-2, f"f32 path: max abs err {err_f32}"

    print("KERNEL_OK")
</pallas_src>

<mosaic_0001>
module attributes {stable_mosaic.version = 11 : i64} {
  func.func @_dwsep_kernel(%arg0: i32, %arg1: i32, %arg2: memref<1x1x18x18x128xbf16, #tpu.memory_space<vmem>>, %arg3: memref<9x128xf32, #tpu.memory_space<vmem>>, %arg4: memref<1x128xf32, #tpu.memory_space<vmem>>, %arg5: memref<128x128xbf16, #tpu.memory_space<vmem>>, %arg6: memref<1x128xf32, #tpu.memory_space<vmem>>, %arg7: memref<1x16x16x128xf32, #tpu.memory_space<vmem>>) attributes {dimension_semantics = [#tpu.dimension_semantics<parallel>, #tpu.dimension_semantics<parallel>], iteration_bounds = array<i64: 2, 1>, scalar_prefetch = 0 : i64, scratch_operands = 0 : i64, tpu.core_type = #tpu.core_type<tc>, window_params = [{pipeline_mode = #tpu.pipeline_mode<synchronous>, transform_indices = @transform_0, window_bounds = array<i64: 1, 1, 18, 18, 128>}, {pipeline_mode = #tpu.pipeline_mode<synchronous>, transform_indices = @transform_1, window_bounds = array<i64: 9, 128>}, {pipeline_mode = #tpu.pipeline_mode<synchronous>, transform_indices = @transform_2, window_bounds = array<i64: 1, 128>}, {pipeline_mode = #tpu.pipeline_mode<synchronous>, transform_indices = @transform_3, window_bounds = array<i64: 128, 128>}, {pipeline_mode = #tpu.pipeline_mode<synchronous>, transform_indices = @transform_4, window_bounds = array<i64: 1, 128>}, {transform_indices = @transform_5, window_bounds = array<i64: 1, 16, 16, 128>}]} {
    %c16_i32 = arith.constant 16 : i32
    %0 = arith.muli %arg1, %c16_i32 : i32
    %c0 = arith.constant 0 : index
    %c0_0 = arith.constant 0 : index
    %1 = vector.load %arg3[%c0, %c0_0] : memref<9x128xf32, #tpu.memory_space<vmem>>, vector<9x128xf32>
    %c0_1 = arith.constant 0 : index
    %c0_2 = arith.constant 0 : index
    %2 = vector.load %arg4[%c0_1, %c0_2] : memref<1x128xf32, #tpu.memory_space<vmem>>, vector<1x128xf32>
    %3 = vector.shape_cast %2 : vector<1x128xf32> to vector<128xf32>
    %c0_3 = arith.constant 0 : index
    %c0_4 = arith.constant 0 : index
    %4 = vector.load %arg5[%c0_3, %c0_4] : memref<128x128xbf16, #tpu.memory_space<vmem>>, vector<128x128xbf16>
    %c0_5 = arith.constant 0 : index
    %c0_6 = arith.constant 0 : index
    %5 = vector.load %arg6[%c0_5, %c0_6] : memref<1x128xf32, #tpu.memory_space<vmem>>, vector<1x128xf32>
    %6 = vector.shape_cast %5 : vector<1x128xf32> to vector<128xf32>
    %c0_i32 = arith.constant 0 : i32
    %7 = arith.addi %0, %c0_i32 : i32
    %c0_i32_7 = arith.constant 0 : i32
    %8 = arith.addi %7, %c0_i32_7 : i32
    %c0_8 = arith.constant 0 : index
    %c0_9 = arith.constant 0 : index
    %9 = arith.index_cast %8 : i32 to index
    %c0_10 = arith.constant 0 : index
    %c0_11 = arith.constant 0 : index
    %10 = vector.load %arg2[%c0_8, %c0_9, %9, %c0_10, %c0_11] : memref<1x1x18x18x128xbf16, #tpu.memory_space<vmem>>, vector<1x1x8x16x128xbf16>
    %11 = vector.shape_cast %10 : vector<1x1x8x16x128xbf16> to vector<8x16x128xbf16>
    %12 = arith.extf %11 : vector<8x16x128xbf16> to vector<8x16x128xf32>
    %13 = vector.extract_strided_slice %1 {offsets = [0, 0], sizes = [1, 128], strides = [1, 1]} : vector<9x128xf32> to vector<1x128xf32>
    %14 = vector.shape_cast %13 : vector<1x128xf32> to vector<128xf32>
    %15 = vector.shape_cast %14 : vector<128xf32> to vector<1x1x128xf32>
    %16 = vector.broadcast %15 : vector<1x1x128xf32> to vector<8x16x128xf32>
    %17 = arith.mulf %12, %16 : vector<8x16x128xf32>
    %c0_i32_12 = arith.constant 0 : i32
    %18 = arith.addi %7, %c0_i32_12 : i32
    %c0_13 = arith.constant 0 : index
    %c0_14 = arith.constant 0 : index
    %19 = arith.index_cast %18 : i32 to index
    %c1 = arith.constant 1 : index
    %c0_15 = arith.constant 0 : index
    %20 = vector.load %arg2[%c0_13, %c0_14, %19, %c1, %c0_15] : memref<1x1x18x18x128xbf16, #tpu.memory_space<vmem>>, vector<1x1x8x16x128xbf16>
    %21 = vector.shape_cast %20 : vector<1x1x8x16x128xbf16> to vector<8x16x128xbf16>
    %22 = arith.extf %21 : vector<8x16x128xbf16> to vector<8x16x128xf32>
    %23 = vector.extract_strided_slice %1 {offsets = [1, 0], sizes = [1, 128], strides = [1, 1]} : vector<9x128xf32> to vector<1x128xf32>
    %24 = vector.shape_cast %23 : vector<1x128xf32> to vector<128xf32>
    %25 = vector.shape_cast %24 : vector<128xf32> to vector<1x1x128xf32>
    %26 = vector.broadcast %25 : vector<1x1x128xf32> to vector<8x16x128xf32>
    %27 = arith.mulf %22, %26 : vector<8x16x128xf32>
    %28 = arith.addf %17, %27 : vector<8x16x128xf32>
    %c0_i32_16 = arith.constant 0 : i32
    %29 = arith.addi %7, %c0_i32_16 : i32
    %c0_17 = arith.constant 0 : index
    %c0_18 = arith.constant 0 : index
    %30 = arith.index_cast %29 : i32 to index
    %c2 = arith.constant 2 : index
    %c0_19 = arith.constant 0 : index
    %31 = vector.load %arg2[%c0_17, %c0_18, %30, %c2, %c0_19] : memref<1x1x18x18x128xbf16, #tpu.memory_space<vmem>>, vector<1x1x8x16x128xbf16>
    %32 = vector.shape_cast %31 : vector<1x1x8x16x128xbf16> to vector<8x16x128xbf16>
    %33 = arith.extf %32 : vector<8x16x128xbf16> to vector<8x16x128xf32>
    %34 = vector.extract_strided_slice %1 {offsets = [2, 0], sizes = [1, 128], strides = [1, 1]} : vector<9x128xf32> to vector<1x128xf32>
    %35 = vector.shape_cast %34 : vector<1x128xf32> to vector<128xf32>
    %36 = vector.shape_cast %35 : vector<128xf32> to vector<1x1x128xf32>
    %37 = vector.broadcast %36 : vector<1x1x128xf32> to vector<8x16x128xf32>
    %38 = arith.mulf %33, %37 : vector<8x16x128xf32>
    %39 = arith.addf %28, %38 : vector<8x16x128xf32>
    %c1_i32 = arith.constant 1 : i32
    %40 = arith.addi %7, %c1_i32 : i32
    %c0_20 = arith.constant 0 : index
    %c0_21 = arith.constant 0 : index
    %41 = arith.index_cast %40 : i32 to index
    %c0_22 = arith.constant 0 : index
    %c0_23 = arith.constant 0 : index
    %42 = vector.load %arg2[%c0_20, %c0_21, %41, %c0_22, %c0_23] : memref<1x1x18x18x128xbf16, #tpu.memory_space<vmem>>, vector<1x1x8x16x128xbf16>
    %43 = vector.shape_cast %42 : vector<1x1x8x16x128xbf16> to vector<8x16x128xbf16>
    %44 = arith.extf %43 : vector<8x16x128xbf16> to vector<8x16x128xf32>
    %45 = vector.extract_strided_slice %1 {offsets = [3, 0], sizes = [1, 128], strides = [1, 1]} : vector<9x128xf32> to vector<1x128xf32>
    %46 = vector.shape_cast %45 : vector<1x128xf32> to vector<128xf32>
    %47 = vector.shape_cast %46 : vector<128xf32> to vector<1x1x128xf32>
    %48 = vector.broadcast %47 : vector<1x1x128xf32> to vector<8x16x128xf32>
    %49 = arith.mulf %44, %48 : vector<8x16x128xf32>
    %50 = arith.addf %39, %49 : vector<8x16x128xf32>
    %c1_i32_24 = arith.constant 1 : i32
    %51 = arith.addi %7, %c1_i32_24 : i32
    %c0_25 = arith.constant 0 : index
    %c0_26 = arith.constant 0 : index
    %52 = arith.index_cast %51 : i32 to index
    %c1_27 = arith.constant 1 : index
    %c0_28 = arith.constant 0 : index
    %53 = vector.load %arg2[%c0_25, %c0_26, %52, %c1_27, %c0_28] : memref<1x1x18x18x128xbf16, #tpu.memory_space<vmem>>, vector<1x1x8x16x128xbf16>
    %54 = vector.shape_cast %53 : vector<1x1x8x16x128xbf16> to vector<8x16x128xbf16>
    %55 = arith.extf %54 : vector<8x16x128xbf16> to vector<8x16x128xf32>
    %56 = vector.extract_strided_slice %1 {offsets = [4, 0], sizes = [1, 128], strides = [1, 1]} : vector<9x128xf32> to vector<1x128xf32>
    %57 = vector.shape_cast %56 : vector<1x128xf32> to vector<128xf32>
    %58 = vector.shape_cast %57 : vector<128xf32> to vector<1x1x128xf32>
    %59 = vector.broadcast %58 : vector<1x1x128xf32> to vector<8x16x128xf32>
    %60 = arith.mulf %55, %59 : vector<8x16x128xf32>
    %61 = arith.addf %50, %60 : vector<8x16x128xf32>
    %c1_i32_29 = arith.constant 1 : i32
    %62 = arith.addi %7, %c1_i32_29 : i32
    %c0_30 = arith.constant 0 : index
    %c0_31 = arith.constant 0 : index
    %63 = arith.index_cast %62 : i32 to index
    %c2_32 = arith.constant 2 : index
    %c0_33 = arith.constant 0 : index
    %64 = vector.load %arg2[%c0_30, %c0_31, %63, %c2_32, %c0_33] : memref<1x1x18x18x128xbf16, #tpu.memory_space<vmem>>, vector<1x1x8x16x128xbf16>
    %65 = vector.shape_cast %64 : vector<1x1x8x16x128xbf16> to vector<8x16x128xbf16>
    %66 = arith.extf %65 : vector<8x16x128xbf16> to vector<8x16x128xf32>
    %67 = vector.extract_strided_slice %1 {offsets = [5, 0], sizes = [1, 128], strides = [1, 1]} : vector<9x128xf32> to vector<1x128xf32>
    %68 = vector.shape_cast %67 : vector<1x128xf32> to vector<128xf32>
    %69 = vector.shape_cast %68 : vector<128xf32> to vector<1x1x128xf32>
    %70 = vector.broadcast %69 : vector<1x1x128xf32> to vector<8x16x128xf32>
    %71 = arith.mulf %66, %70 : vector<8x16x128xf32>
    %72 = arith.addf %61, %71 : vector<8x16x128xf32>
    %c2_i32 = arith.constant 2 : i32
    %73 = arith.addi %7, %c2_i32 : i32
    %c0_34 = arith.constant 0 : index
    %c0_35 = arith.constant 0 : index
    %74 = arith.index_cast %73 : i32 to index
    %c0_36 = arith.constant 0 : index
    %c0_37 = arith.constant 0 : index
    %75 = vector.load %arg2[%c0_34, %c0_35, %74, %c0_36, %c0_37] : memref<1x1x18x18x128xbf16, #tpu.memory_space<vmem>>, vector<1x1x8x16x128xbf16>
    %76 = vector.shape_cast %75 : vector<1x1x8x16x128xbf16> to vector<8x16x128xbf16>
    %77 = arith.extf %76 : vector<8x16x128xbf16> to vector<8x16x128xf32>
    %78 = vector.extract_strided_slice %1 {offsets = [6, 0], sizes = [1, 128], strides = [1, 1]} : vector<9x128xf32> to vector<1x128xf32>
    %79 = vector.shape_cast %78 : vector<1x128xf32> to vector<128xf32>
    %80 = vector.shape_cast %79 : vector<128xf32> to vector<1x1x128xf32>
    %81 = vector.broadcast %80 : vector<1x1x128xf32> to vector<8x16x128xf32>
    %82 = arith.mulf %77, %81 : vector<8x16x128xf32>
    %83 = arith.addf %72, %82 : vector<8x16x128xf32>
    %c2_i32_38 = arith.constant 2 : i32
    %84 = arith.addi %7, %c2_i32_38 : i32
    %c0_39 = arith.constant 0 : index
    %c0_40 = arith.constant 0 : index
    %85 = arith.index_cast %84 : i32 to index
    %c1_41 = arith.constant 1 : index
    %c0_42 = arith.constant 0 : index
    %86 = vector.load %arg2[%c0_39, %c0_40, %85, %c1_41, %c0_42] : memref<1x1x18x18x128xbf16, #tpu.memory_space<vmem>>, vector<1x1x8x16x128xbf16>
    %87 = vector.shape_cast %86 : vector<1x1x8x16x128xbf16> to vector<8x16x128xbf16>
    %88 = arith.extf %87 : vector<8x16x128xbf16> to vector<8x16x128xf32>
    %89 = vector.extract_strided_slice %1 {offsets = [7, 0], sizes = [1, 128], strides = [1, 1]} : vector<9x128xf32> to vector<1x128xf32>
    %90 = vector.shape_cast %89 : vector<1x128xf32> to vector<128xf32>
    %91 = vector.shape_cast %90 : vector<128xf32> to vector<1x1x128xf32>
    %92 = vector.broadcast %91 : vector<1x1x128xf32> to vector<8x16x128xf32>
    %93 = arith.mulf %88, %92 : vector<8x16x128xf32>
    %94 = arith.addf %83, %93 : vector<8x16x128xf32>
    %c2_i32_43 = arith.constant 2 : i32
    %95 = arith.addi %7, %c2_i32_43 : i32
    %c0_44 = arith.constant 0 : index
    %c0_45 = arith.constant 0 : index
    %96 = arith.index_cast %95 : i32 to index
    %c2_46 = arith.constant 2 : index
    %c0_47 = arith.constant 0 : index
    %97 = vector.load %arg2[%c0_44, %c0_45, %96, %c2_46, %c0_47] : memref<1x1x18x18x128xbf16, #tpu.memory_space<vmem>>, vector<1x1x8x16x128xbf16>
    %98 = vector.shape_cast %97 : vector<1x1x8x16x128xbf16> to vector<8x16x128xbf16>
    %99 = arith.extf %98 : vector<8x16x128xbf16> to vector<8x16x128xf32>
    %100 = vector.extract_strided_slice %1 {offsets = [8, 0], sizes = [1, 128], strides = [1, 1]} : vector<9x128xf32> to vector<1x128xf32>
    %101 = vector.shape_cast %100 : vector<1x128xf32> to vector<128xf32>
    %102 = vector.shape_cast %101 : vector<128xf32> to vector<1x1x128xf32>
    %103 = vector.broadcast %102 : vector<1x1x128xf32> to vector<8x16x128xf32>
    %104 = arith.mulf %99, %103 : vector<8x16x128xf32>
    %105 = arith.addf %94, %104 : vector<8x16x128xf32>
    %106 = vector.shape_cast %3 : vector<128xf32> to vector<1x1x128xf32>
    %107 = vector.broadcast %106 : vector<1x1x128xf32> to vector<8x16x128xf32>
    %108 = arith.addf %105, %107 : vector<8x16x128xf32>
    %cst = arith.constant 0.000000e+00 : f32
    %109 = vector.broadcast %cst : f32 to vector<8x16x128xf32>
    %110 = arith.maximumf %108, %109 : vector<8x16x128xf32>
    %111 = vector.shape_cast %110 : vector<8x16x128xf32> to vector<128x128xf32>
    %112 = arith.truncf %111 : vector<128x128xf32> to vector<128x128xbf16>
    %cst_48 = arith.constant dense<0.000000e+00> : vector<128x128xf32>
    %113 = tpu.matmul %112, %4, %cst_48 {dimension_numbers = #tpu.dot_dimension_numbers<[1], [0], [0], [1], [0, 0, 1, 1], [], []>} : vector<128x128xbf16>, vector<128x128xbf16>, vector<128x128xf32> -> vector<128x128xf32>
    %114 = vector.shape_cast %6 : vector<128xf32> to vector<1x128xf32>
    %115 = vector.broadcast %114 : vector<1x128xf32> to vector<128x128xf32>
    %116 = arith.addf %113, %115 : vector<128x128xf32>
    %cst_49 = arith.constant 0.000000e+00 : f32
    %117 = vector.broadcast %cst_49 : f32 to vector<128x128xf32>
    %118 = arith.maximumf %116, %117 : vector<128x128xf32>
    %119 = vector.shape_cast %118 : vector<128x128xf32> to vector<8x16x128xf32>
    %c0_50 = arith.constant 0 : index
    %c0_51 = arith.constant 0 : index
    %c0_52 = arith.constant 0 : index
    %c0_53 = arith.constant 0 : index
    %120 = vector.load %arg7[%c0_50, %c0_51, %c0_52, %c0_53] : memref<1x16x16x128xf32, #tpu.memory_space<vmem>>, vector<1x8x16x128xf32>
    %121 = vector.shape_cast %120 : vector<1x8x16x128xf32> to vector<8x16x128xf32>
    %122 = vector.shape_cast %119 : vector<8x16x128xf32> to vector<1x8x16x128xf32>
    tpu.vector_store %arg7[%c0_50, %c0_51, %c0_52, %c0_53], %122 {strides = array<i32>} : memref<1x16x16x128xf32, #tpu.memory_space<vmem>>, vector<1x8x16x128xf32>,
    %c8_i32 = arith.constant 8 : i32
    %123 = arith.addi %0, %c8_i32 : i32
    %c0_i32_54 = arith.constant 0 : i32
    %124 = arith.addi %123, %c0_i32_54 : i32
    %c0_55 = arith.constant 0 : index
    %c0_56 = arith.constant 0 : index
    %125 = arith.index_cast %124 : i32 to index
    %c0_57 = arith.constant 0 : index
    %c0_58 = arith.constant 0 : index
    %126 = vector.load %arg2[%c0_55, %c0_56, %125, %c0_57, %c0_58] : memref<1x1x18x18x128xbf16, #tpu.memory_space<vmem>>, vector<1x1x8x16x128xbf16>
    %127 = vector.shape_cast %126 : vector<1x1x8x16x128xbf16> to vector<8x16x128xbf16>
    %128 = arith.extf %127 : vector<8x16x128xbf16> to vector<8x16x128xf32>
    %129 = vector.extract_strided_slice %1 {offsets = [0, 0], sizes = [1, 128], strides = [1, 1]} : vector<9x128xf32> to vector<1x128xf32>
    %130 = vector.shape_cast %129 : vector<1x128xf32> to vector<128xf32>
    %131 = vector.shape_cast %130 : vector<128xf32> to vector<1x1x128xf32>
    %132 = vector.broadcast %131 : vector<1x1x128xf32> to vector<8x16x128xf32>
    %133 = arith.mulf %128, %132 : vector<8x16x128xf32>
    %c0_i32_59 = arith.constant 0 : i32
    %134 = arith.addi %123, %c0_i32_59 : i32
    %c0_60 = arith.constant 0 : index
    %c0_61 = arith.constant 0 : index
    %135 = arith.index_cast %134 : i32 to index
    %c1_62 = arith.constant 1 : index
    %c0_63 = arith.constant 0 : index
    %136 = vector.load %arg2[%c0_60, %c0_61, %135, %c1_62, %c0_63] : memref<1x1x18x18x128xbf16, #tpu.memory_space<vmem>>, vector<1x1x8x16x128xbf16>
    %137 = vector.shape_cast %136 : vector<1x1x8x16x128xbf16> to vector<8x16x128xbf16>
    %138 = arith.extf %137 : vector<8x16x128xbf16> to vector<8x16x128xf32>
    %139 = vector.extract_strided_slice %1 {offsets = [1, 0], sizes = [1, 128], strides = [1, 1]} : vector<9x128xf32> to vector<1x128xf32>
    %140 = vector.shape_cast %139 : vector<1x128xf32> to vector<128xf32>
    %141 = vector.shape_cast %140 : vector<128xf32> to vector<1x1x128xf32>
    %142 = vector.broadcast %141 : vector<1x1x128xf32> to vector<8x16x128xf32>
    %143 = arith.mulf %138, %142 : vector<8x16x128xf32>
    %144 = arith.addf %133, %143 : vector<8x16x128xf32>
    %c0_i32_64 = arith.constant 0 : i32
    %145 = arith.addi %123, %c0_i32_64 : i32
    %c0_65 = arith.constant 0 : index
    %c0_66 = arith.constant 0 : index
    %146 = arith.index_cast %145 : i32 to index
    %c2_67 = arith.constant 2 : index
    %c0_68 = arith.constant 0 : index
    %147 = vector.load %arg2[%c0_65, %c0_66, %146, %c2_67, %c0_68] : memref<1x1x18x18x128xbf16, #tpu.memory_space<vmem>>, vector<1x1x8x16x128xbf16>
    %148 = vector.shape_cast %147 : vector<1x1x8x16x128xbf16> to vector<8x16x128xbf16>
    %149 = arith.extf %148 : vector<8x16x128xbf16> to vector<8x16x128xf32>
    %150 = vector.extract_strided_slice %1 {offsets = [2, 0], sizes = [1, 128], strides = [1, 1]} : vector<9x128xf32> to vector<1x128xf32>
    %151 = vector.shape_cast %150 : vector<1x128xf32> to vector<128xf32>
    %152 = vector.shape_cast %151 : vector<128xf32> to vector<1x1x128xf32>
    %153 = vector.broadcast %152 : vector<1x1x128xf32> to vector<8x16x128xf32>
    %154 = arith.mulf %149, %153 : vector<8x16x128xf32>
    %155 = arith.addf %144, %154 : vector<8x16x128xf32>
    %c1_i32_69 = arith.constant 1 : i32
    %156 = arith.addi %123, %c1_i32_69 : i32
    %c0_70 = arith.constant 0 : index
    %c0_71 = arith.constant 0 : index
    %157 = arith.index_cast %156 : i32 to index
    %c0_72 = arith.constant 0 : index
    %c0_73 = arith.constant 0 : index
    %158 = vector.load %arg2[%c0_70, %c0_71, %157, %c0_72, %c0_73] : memref<1x1x18x18x128xbf16, #tpu.memory_space<vmem>>, vector<1x1x8x16x128xbf16>
    %159 = vector.shape_cast %158 : vector<1x1x8x16x128xbf16> to vector<8x16x128xbf16>
    %160 = arith.extf %159 : vector<8x16x128xbf16> to vector<8x16x128xf32>
    %161 = vector.extract_strided_slice %1 {offsets = [3, 0], sizes = [1, 128], strides = [1, 1]} : vector<9x128xf32> to vector<1x128xf32>
    %162 = vector.shape_cast %161 : vector<1x128xf32> to vector<128xf32>
    %163 = vector.shape_cast %162 : vector<128xf32> to vector<1x1x128xf32>
    %164 = vector.broadcast %163 : vector<1x1x128xf32> to vector<8x16x128xf32>
    %165 = arith.mulf %160, %164 : vector<8x16x128xf32>
    %166 = arith.addf %155, %165 : vector<8x16x128xf32>
    %c1_i32_74 = arith.constant 1 : i32
    %167 = arith.addi %123, %c1_i32_74 : i32
    %c0_75 = arith.constant 0 : index
    %c0_76 = arith.constant 0 : index
    %168 = arith.index_cast %167 : i32 to index
    %c1_77 = arith.constant 1 : index
    %c0_78 = arith.constant 0 : index
    %169 = vector.load %arg2[%c0_75, %c0_76, %168, %c1_77, %c0_78] : memref<1x1x18x18x128xbf16, #tpu.memory_space<vmem>>, vector<1x1x8x16x128xbf16>
    %170 = vector.shape_cast %169 : vector<1x1x8x16x128xbf16> to vector<8x16x128xbf16>
    %171 = arith.extf %170 : vector<8x16x128xbf16> to vector<8x16x128xf32>
    %172 = vector.extract_strided_slice %1 {offsets = [4, 0], sizes = [1, 128], strides = [1, 1]} : vector<9x128xf32> to vector<1x128xf32>
    %173 = vector.shape_cast %172 : vector<1x128xf32> to vector<128xf32>
    %174 = vector.shape_cast %173 : vector<128xf32> to vector<1x1x128xf32>
    %175 = vector.broadcast %174 : vector<1x1x128xf32> to vector<8x16x128xf32>
    %176 = arith.mulf %171, %175 : vector<8x16x128xf32>
    %177 = arith.addf %166, %176 : vector<8x16x128xf32>
    %c1_i32_79 = arith.constant 1 : i32
    %178 = arith.addi %123, %c1_i32_79 : i32
    %c0_80 = arith.constant 0 : index
    %c0_81 = arith.constant 0 : index
    %179 = arith.index_cast %178 : i32 to index
    %c2_82 = arith.constant 2 : index
    %c0_83 = arith.constant 0 : index
    %180 = vector.load %arg2[%c0_80, %c0_81, %179, %c2_82, %c0_83] : memref<1x1x18x18x128xbf16, #tpu.memory_space<vmem>>, vector<1x1x8x16x128xbf16>
    %181 = vector.shape_cast %180 : vector<1x1x8x16x128xbf16> to vector<8x16x128xbf16>
    %182 = arith.extf %181 : vector<8x16x128xbf16> to vector<8x16x128xf32>
    %183 = vector.extract_strided_slice %1 {offsets = [5, 0], sizes = [1, 128], strides = [1, 1]} : vector<9x128xf32> to vector<1x128xf32>
    %184 = vector.shape_cast %183 : vector<1x128xf32> to vector<128xf32>
    %185 = vector.shape_cast %184 : vector<128xf32> to vector<1x1x128xf32>
    %186 = vector.broadcast %185 : vector<1x1x128xf32> to vector<8x16x128xf32>
    %187 = arith.mulf %182, %186 : vector<8x16x128xf32>
    %188 = arith.addf %177, %187 : vector<8x16x128xf32>
    %c2_i32_84 = arith.constant 2 : i32
    %189 = arith.addi %123, %c2_i32_84 : i32
    %c0_85 = arith.constant 0 : index
    %c0_86 = arith.constant 0 : index
    %190 = arith.index_cast %189 : i32 to index
    %c0_87 = arith.constant 0 : index
    %c0_88 = arith.constant 0 : index
    %191 = vector.load %arg2[%c0_85, %c0_86, %190, %c0_87, %c0_88] : memref<1x1x18x18x128xbf16, #tpu.memory_space<vmem>>, vector<1x1x8x16x128xbf16>
    %192 = vector.shape_cast %191 : vector<1x1x8x16x128xbf16> to vector<8x16x128xbf16>
    %193 = arith.extf %192 : vector<8x16x128xbf16> to vector<8x16x128xf32>
    %194 = vector.extract_strided_slice %1 {offsets = [6, 0], sizes = [1, 128], strides = [1, 1]} : vector<9x128xf32> to vector<1x128xf32>
    %195 = vector.shape_cast %194 : vector<1x128xf32> to vector<128xf32>
    %196 = vector.shape_cast %195 : vector<128xf32> to vector<1x1x128xf32>
    %197 = vector.broadcast %196 : vector<1x1x128xf32> to vector<8x16x128xf32>
    %198 = arith.mulf %193, %197 : vector<8x16x128xf32>
    %199 = arith.addf %188, %198 : vector<8x16x128xf32>
    %c2_i32_89 = arith.constant 2 : i32
    %200 = arith.addi %123, %c2_i32_89 : i32
    %c0_90 = arith.constant 0 : index
    %c0_91 = arith.constant 0 : index
    %201 = arith.index_cast %200 : i32 to index
    %c1_92 = arith.constant 1 : index
    %c0_93 = arith.constant 0 : index
    %202 = vector.load %arg2[%c0_90, %c0_91, %201, %c1_92, %c0_93] : memref<1x1x18x18x128xbf16, #tpu.memory_space<vmem>>, vector<1x1x8x16x128xbf16>
    %203 = vector.shape_cast %202 : vector<1x1x8x16x128xbf16> to vector<8x16x128xbf16>
    %204 = arith.extf %203 : vector<8x16x128xbf16> to vector<8x16x128xf32>
    %205 = vector.extract_strided_slice %1 {offsets = [7, 0], sizes = [1, 128], strides = [1, 1]} : vector<9x128xf32> to vector<1x128xf32>
    %206 = vector.shape_cast %205 : vector<1x128xf32> to vector<128xf32>
    %207 = vector.shape_cast %206 : vector<128xf32> to vector<1x1x128xf32>
    %208 = vector.broadcast %207 : vector<1x1x128xf32> to vector<8x16x128xf32>
    %209 = arith.mulf %204, %208 : vector<8x16x128xf32>
    %210 = arith.addf %199, %209 : vector<8x16x128xf32>
    %c2_i32_94 = arith.constant 2 : i32
    %211 = arith.addi %123, %c2_i32_94 : i32
    %c0_95 = arith.constant 0 : index
    %c0_96 = arith.constant 0 : index
    %212 = arith.index_cast %211 : i32 to index
    %c2_97 = arith.constant 2 : index
    %c0_98 = arith.constant 0 : index
    %213 = vector.load %arg2[%c0_95, %c0_96, %212, %c2_97, %c0_98] : memref<1x1x18x18x128xbf16, #tpu.memory_space<vmem>>, vector<1x1x8x16x128xbf16>
    %214 = vector.shape_cast %213 : vector<1x1x8x16x128xbf16> to vector<8x16x128xbf16>
    %215 = arith.extf %214 : vector<8x16x128xbf16> to vector<8x16x128xf32>
    %216 = vector.extract_strided_slice %1 {offsets = [8, 0], sizes = [1, 128], strides = [1, 1]} : vector<9x128xf32> to vector<1x128xf32>
    %217 = vector.shape_cast %216 : vector<1x128xf32> to vector<128xf32>
    %218 = vector.shape_cast %217 : vector<128xf32> to vector<1x1x128xf32>
    %219 = vector.broadcast %218 : vector<1x1x128xf32> to vector<8x16x128xf32>
    %220 = arith.mulf %215, %219 : vector<8x16x128xf32>
    %221 = arith.addf %210, %220 : vector<8x16x128xf32>
    %222 = vector.shape_cast %3 : vector<128xf32> to vector<1x1x128xf32>
    %223 = vector.broadcast %222 : vector<1x1x128xf32> to vector<8x16x128xf32>
    %224 = arith.addf %221, %223 : vector<8x16x128xf32>
    %cst_99 = arith.constant 0.000000e+00 : f32
    %225 = vector.broadcast %cst_99 : f32 to vector<8x16x128xf32>
    %226 = arith.maximumf %224, %225 : vector<8x16x128xf32>
    %227 = vector.shape_cast %226 : vector<8x16x128xf32> to vector<128x128xf32>
    %228 = arith.truncf %227 : vector<128x128xf32> to vector<128x128xbf16>
    %cst_100 = arith.constant dense<0.000000e+00> : vector<128x128xf32>
    %229 = tpu.matmul %228, %4, %cst_100 {dimension_numbers = #tpu.dot_dimension_numbers<[1], [0], [0], [1], [0, 0, 1, 1], [], []>} : vector<128x128xbf16>, vector<128x128xbf16>, vector<128x128xf32> -> vector<128x128xf32>
    %230 = vector.shape_cast %6 : vector<128xf32> to vector<1x128xf32>
    %231 = vector.broadcast %230 : vector<1x128xf32> to vector<128x128xf32>
    %232 = arith.addf %229, %231 : vector<128x128xf32>
    %cst_101 = arith.constant 0.000000e+00 : f32
    %233 = vector.broadcast %cst_101 : f32 to vector<128x128xf32>
    %234 = arith.maximumf %232, %233 : vector<128x128xf32>
    %235 = vector.shape_cast %234 : vector<128x128xf32> to vector<8x16x128xf32>
    %c0_102 = arith.constant 0 : index
    %c8 = arith.constant 8 : index
    %c0_103 = arith.constant 0 : index
    %c0_104 = arith.constant 0 : index
    %236 = vector.load %arg7[%c0_102, %c8, %c0_103, %c0_104] : memref<1x16x16x128xf32, #tpu.memory_space<vmem>>, vector<1x8x16x128xf32>
    %237 = vector.shape_cast %236 : vector<1x8x16x128xf32> to vector<8x16x128xf32>
    %238 = vector.shape_cast %235 : vector<8x16x128xf32> to vector<1x8x16x128xf32>
    tpu.vector_store %arg7[%c0_102, %c8, %c0_103, %c0_104], %238 {strides = array<i32>} : memref<1x16x16x128xf32, #tpu.memory_space<vmem>>, vector<1x8x16x128xf32>,
    return
  }
  func.func @transform_0(%arg0: i32, %arg1: i32) -> (i32, i32, i32, i32, i32) {
    %c0_i32 = arith.constant 0 : i32
    %c0_i32_0 = arith.constant 0 : i32
    %c0_i32_1 = arith.constant 0 : i32
    %c0_i32_2 = arith.constant 0 : i32
    %c0_i32_3 = arith.constant 0 : i32
    return %arg0, %c0_i32, %c0_i32_0, %c0_i32_1, %c0_i32_2 : i32, i32, i32, i32, i32
  }
  func.func @transform_1(%arg0: i32, %arg1: i32) -> (i32, i32) {
    %c0_i32 = arith.constant 0 : i32
    %c0_i32_0 = arith.constant 0 : i32
    %c0_i32_1 = arith.constant 0 : i32
    return %c0_i32, %c0_i32_0 : i32, i32
  }
  func.func @transform_2(%arg0: i32, %arg1: i32) -> (i32, i32) {
    %c0_i32 = arith.constant 0 : i32
    %c0_i32_0 = arith.constant 0 : i32
    %c0_i32_1 = arith.constant 0 : i32
    return %c0_i32, %c0_i32_0 : i32, i32
  }
  func.func @transform_3(%arg0: i32, %arg1: i32) -> (i32, i32) {
    %c0_i32 = arith.constant 0 : i32
    %c0_i32_0 = arith.constant 0 : i32
    %c0_i32_1 = arith.constant 0 : i32
    return %c0_i32, %c0_i32_0 : i32, i32
  }
  func.func @transform_4(%arg0: i32, %arg1: i32) -> (i32, i32) {
    %c0_i32 = arith.constant 0 : i32
    %c0_i32_0 = arith.constant 0 : i32
    %c0_i32_1 = arith.constant 0 : i32
    return %c0_i32, %c0_i32_0 : i32, i32
  }
  func.func @transform_5(%arg0: i32, %arg1: i32) -> (i32, i32, i32, i32) {
    %c0_i32 = arith.constant 0 : i32
    %c0_i32_0 = arith.constant 0 : i32
    %c0_i32_1 = arith.constant 0 : i32
    return %arg0, %arg1, %c0_i32, %c0_i32_0 : i32, i32, i32, i32
  }
}

module attributes {stable_mosaic.version = 11 : i64} {
  func.func @_dwsep_kernel(%arg0: i32, %arg1: i32, %arg2: memref<1x1x18x18x128xbf16, #tpu.memory_space<vmem>>, %arg3: memref<9x128xf32, #tpu.memory_space<vmem>>, %arg4: memref<1x128xf32, #tpu.memory_space<vmem>>, %arg5: memref<128x128xbf16, #tpu.memory_space<vmem>>, %arg6: memref<1x128xf32, #tpu.memory_space<vmem>>, %arg7: memref<1x16x16x128xf32, #tpu.memory_space<vmem>>) attributes {dimension_semantics = [#tpu.dimension_semantics<parallel>, #tpu.dimension_semantics<parallel>], iteration_bounds = array<i64: 2, 1>, scalar_prefetch = 0 : i64, scratch_operands = 0 : i64, tpu.core_type = #tpu.core_type<tc>, window_params = [{transform_indices = @transform_0, window_bounds = array<i64: 1, 1, 18, 18, 128>}, {pipeline_mode = #tpu.pipeline_mode<synchronous>, transform_indices = @transform_1, window_bounds = array<i64: 9, 128>}, {pipeline_mode = #tpu.pipeline_mode<synchronous>, transform_indices = @transform_2, window_bounds = array<i64: 1, 128>}, {pipeline_mode = #tpu.pipeline_mode<synchronous>, transform_indices = @transform_3, window_bounds = array<i64: 128, 128>}, {pipeline_mode = #tpu.pipeline_mode<synchronous>, transform_indices = @transform_4, window_bounds = array<i64: 1, 128>}, {transform_indices = @transform_5, window_bounds = array<i64: 1, 16, 16, 128>}]} {
    %c16_i32 = arith.constant 16 : i32
    %0 = arith.muli %arg1, %c16_i32 : i32
    %c0 = arith.constant 0 : index
    %c0_0 = arith.constant 0 : index
    %1 = vector.load %arg3[%c0, %c0_0] : memref<9x128xf32, #tpu.memory_space<vmem>>, vector<9x128xf32>
    %c0_1 = arith.constant 0 : index
    %c0_2 = arith.constant 0 : index
    %2 = vector.load %arg4[%c0_1, %c0_2] : memref<1x128xf32, #tpu.memory_space<vmem>>, vector<1x128xf32>
    %3 = vector.shape_cast %2 : vector<1x128xf32> to vector<128xf32>
    %c0_3 = arith.constant 0 : index
    %c0_4 = arith.constant 0 : index
    %4 = vector.load %arg5[%c0_3, %c0_4] : memref<128x128xbf16, #tpu.memory_space<vmem>>, vector<128x128xbf16>
    %c0_5 = arith.constant 0 : index
    %c0_6 = arith.constant 0 : index
    %5 = vector.load %arg6[%c0_5, %c0_6] : memref<1x128xf32, #tpu.memory_space<vmem>>, vector<1x128xf32>
    %6 = vector.shape_cast %5 : vector<1x128xf32> to vector<128xf32>
    %c0_i32 = arith.constant 0 : i32
    %7 = arith.addi %0, %c0_i32 : i32
    %c0_i32_7 = arith.constant 0 : i32
    %8 = arith.addi %7, %c0_i32_7 : i32
    %c0_8 = arith.constant 0 : index
    %c0_9 = arith.constant 0 : index
    %9 = arith.index_cast %8 : i32 to index
    %c0_10 = arith.constant 0 : index
    %c0_11 = arith.constant 0 : index
    %10 = vector.load %arg2[%c0_8, %c0_9, %9, %c0_10, %c0_11] : memref<1x1x18x18x128xbf16, #tpu.memory_space<vmem>>, vector<1x1x8x16x128xbf16>
    %11 = vector.shape_cast %10 : vector<1x1x8x16x128xbf16> to vector<8x16x128xbf16>
    %12 = arith.extf %11 : vector<8x16x128xbf16> to vector<8x16x128xf32>
    %13 = vector.extract_strided_slice %1 {offsets = [0, 0], sizes = [1, 128], strides = [1, 1]} : vector<9x128xf32> to vector<1x128xf32>
    %14 = vector.shape_cast %13 : vector<1x128xf32> to vector<128xf32>
    %15 = vector.shape_cast %14 : vector<128xf32> to vector<1x1x128xf32>
    %16 = vector.broadcast %15 : vector<1x1x128xf32> to vector<8x16x128xf32>
    %17 = arith.mulf %12, %16 : vector<8x16x128xf32>
    %c0_i32_12 = arith.constant 0 : i32
    %18 = arith.addi %7, %c0_i32_12 : i32
    %c0_13 = arith.constant 0 : index
    %c0_14 = arith.constant 0 : index
    %19 = arith.index_cast %18 : i32 to index
    %c1 = arith.constant 1 : index
    %c0_15 = arith.constant 0 : index
    %20 = vector.load %arg2[%c0_13, %c0_14, %19, %c1, %c0_15] : memref<1x1x18x18x128xbf16, #tpu.memory_space<vmem>>, vector<1x1x8x16x128xbf16>
    %21 = vector.shape_cast %20 : vector<1x1x8x16x128xbf16> to vector<8x16x128xbf16>
    %22 = arith.extf %21 : vector<8x16x128xbf16> to vector<8x16x128xf32>
    %23 = vector.extract_strided_slice %1 {offsets = [1, 0], sizes = [1, 128], strides = [1, 1]} : vector<9x128xf32> to vector<1x128xf32>
    %24 = vector.shape_cast %23 : vector<1x128xf32> to vector<128xf32>
    %25 = vector.shape_cast %24 : vector<128xf32> to vector<1x1x128xf32>
    %26 = vector.broadcast %25 : vector<1x1x128xf32> to vector<8x16x128xf32>
    %27 = arith.mulf %22, %26 : vector<8x16x128xf32>
    %28 = arith.addf %17, %27 : vector<8x16x128xf32>
    %c0_i32_16 = arith.constant 0 : i32
    %29 = arith.addi %7, %c0_i32_16 : i32
    %c0_17 = arith.constant 0 : index
    %c0_18 = arith.constant 0 : index
    %30 = arith.index_cast %29 : i32 to index
    %c2 = arith.constant 2 : index
    %c0_19 = arith.constant 0 : index
    %31 = vector.load %arg2[%c0_17, %c0_18, %30, %c2, %c0_19] : memref<1x1x18x18x128xbf16, #tpu.memory_space<vmem>>, vector<1x1x8x16x128xbf16>
    %32 = vector.shape_cast %31 : vector<1x1x8x16x128xbf16> to vector<8x16x128xbf16>
    %33 = arith.extf %32 : vector<8x16x128xbf16> to vector<8x16x128xf32>
    %34 = vector.extract_strided_slice %1 {offsets = [2, 0], sizes = [1, 128], strides = [1, 1]} : vector<9x128xf32> to vector<1x128xf32>
    %35 = vector.shape_cast %34 : vector<1x128xf32> to vector<128xf32>
    %36 = vector.shape_cast %35 : vector<128xf32> to vector<1x1x128xf32>
    %37 = vector.broadcast %36 : vector<1x1x128xf32> to vector<8x16x128xf32>
    %38 = arith.mulf %33, %37 : vector<8x16x128xf32>
    %39 = arith.addf %28, %38 : vector<8x16x128xf32>
    %c1_i32 = arith.constant 1 : i32
    %40 = arith.addi %7, %c1_i32 : i32
    %c0_20 = arith.constant 0 : index
    %c0_21 = arith.constant 0 : index
    %41 = arith.index_cast %40 : i32 to index
    %c0_22 = arith.constant 0 : index
    %c0_23 = arith.constant 0 : index
    %42 = vector.load %arg2[%c0_20, %c0_21, %41, %c0_22, %c0_23] : memref<1x1x18x18x128xbf16, #tpu.memory_space<vmem>>, vector<1x1x8x16x128xbf16>
    %43 = vector.shape_cast %42 : vector<1x1x8x16x128xbf16> to vector<8x16x128xbf16>
    %44 = arith.extf %43 : vector<8x16x128xbf16> to vector<8x16x128xf32>
    %45 = vector.extract_strided_slice %1 {offsets = [3, 0], sizes = [1, 128], strides = [1, 1]} : vector<9x128xf32> to vector<1x128xf32>
    %46 = vector.shape_cast %45 : vector<1x128xf32> to vector<128xf32>
    %47 = vector.shape_cast %46 : vector<128xf32> to vector<1x1x128xf32>
    %48 = vector.broadcast %47 : vector<1x1x128xf32> to vector<8x16x128xf32>
    %49 = arith.mulf %44, %48 : vector<8x16x128xf32>
    %50 = arith.addf %39, %49 : vector<8x16x128xf32>
    %c1_i32_24 = arith.constant 1 : i32
    %51 = arith.addi %7, %c1_i32_24 : i32
    %c0_25 = arith.constant 0 : index
    %c0_26 = arith.constant 0 : index
    %52 = arith.index_cast %51 : i32 to index
    %c1_27 = arith.constant 1 : index
    %c0_28 = arith.constant 0 : index
    %53 = vector.load %arg2[%c0_25, %c0_26, %52, %c1_27, %c0_28] : memref<1x1x18x18x128xbf16, #tpu.memory_space<vmem>>, vector<1x1x8x16x128xbf16>
    %54 = vector.shape_cast %53 : vector<1x1x8x16x128xbf16> to vector<8x16x128xbf16>
    %55 = arith.extf %54 : vector<8x16x128xbf16> to vector<8x16x128xf32>
    %56 = vector.extract_strided_slice %1 {offsets = [4, 0], sizes = [1, 128], strides = [1, 1]} : vector<9x128xf32> to vector<1x128xf32>
    %57 = vector.shape_cast %56 : vector<1x128xf32> to vector<128xf32>
    %58 = vector.shape_cast %57 : vector<128xf32> to vector<1x1x128xf32>
    %59 = vector.broadcast %58 : vector<1x1x128xf32> to vector<8x16x128xf32>
    %60 = arith.mulf %55, %59 : vector<8x16x128xf32>
    %61 = arith.addf %50, %60 : vector<8x16x128xf32>
    %c1_i32_29 = arith.constant 1 : i32
    %62 = arith.addi %7, %c1_i32_29 : i32
    %c0_30 = arith.constant 0 : index
    %c0_31 = arith.constant 0 : index
    %63 = arith.index_cast %62 : i32 to index
    %c2_32 = arith.constant 2 : index
    %c0_33 = arith.constant 0 : index
    %64 = vector.load %arg2[%c0_30, %c0_31, %63, %c2_32, %c0_33] : memref<1x1x18x18x128xbf16, #tpu.memory_space<vmem>>, vector<1x1x8x16x128xbf16>
    %65 = vector.shape_cast %64 : vector<1x1x8x16x128xbf16> to vector<8x16x128xbf16>
    %66 = arith.extf %65 : vector<8x16x128xbf16> to vector<8x16x128xf32>
    %67 = vector.extract_strided_slice %1 {offsets = [5, 0], sizes = [1, 128], strides = [1, 1]} : vector<9x128xf32> to vector<1x128xf32>
    %68 = vector.shape_cast %67 : vector<1x128xf32> to vector<128xf32>
    %69 = vector.shape_cast %68 : vector<128xf32> to vector<1x1x128xf32>
    %70 = vector.broadcast %69 : vector<1x1x128xf32> to vector<8x16x128xf32>
    %71 = arith.mulf %66, %70 : vector<8x16x128xf32>
    %72 = arith.addf %61, %71 : vector<8x16x128xf32>
    %c2_i32 = arith.constant 2 : i32
    %73 = arith.addi %7, %c2_i32 : i32
    %c0_34 = arith.constant 0 : index
    %c0_35 = arith.constant 0 : index
    %74 = arith.index_cast %73 : i32 to index
    %c0_36 = arith.constant 0 : index
    %c0_37 = arith.constant 0 : index
    %75 = vector.load %arg2[%c0_34, %c0_35, %74, %c0_36, %c0_37] : memref<1x1x18x18x128xbf16, #tpu.memory_space<vmem>>, vector<1x1x8x16x128xbf16>
    %76 = vector.shape_cast %75 : vector<1x1x8x16x128xbf16> to vector<8x16x128xbf16>
    %77 = arith.extf %76 : vector<8x16x128xbf16> to vector<8x16x128xf32>
    %78 = vector.extract_strided_slice %1 {offsets = [6, 0], sizes = [1, 128], strides = [1, 1]} : vector<9x128xf32> to vector<1x128xf32>
    %79 = vector.shape_cast %78 : vector<1x128xf32> to vector<128xf32>
    %80 = vector.shape_cast %79 : vector<128xf32> to vector<1x1x128xf32>
    %81 = vector.broadcast %80 : vector<1x1x128xf32> to vector<8x16x128xf32>
    %82 = arith.mulf %77, %81 : vector<8x16x128xf32>
    %83 = arith.addf %72, %82 : vector<8x16x128xf32>
    %c2_i32_38 = arith.constant 2 : i32
    %84 = arith.addi %7, %c2_i32_38 : i32
    %c0_39 = arith.constant 0 : index
    %c0_40 = arith.constant 0 : index
    %85 = arith.index_cast %84 : i32 to index
    %c1_41 = arith.constant 1 : index
    %c0_42 = arith.constant 0 : index
    %86 = vector.load %arg2[%c0_39, %c0_40, %85, %c1_41, %c0_42] : memref<1x1x18x18x128xbf16, #tpu.memory_space<vmem>>, vector<1x1x8x16x128xbf16>
    %87 = vector.shape_cast %86 : vector<1x1x8x16x128xbf16> to vector<8x16x128xbf16>
    %88 = arith.extf %87 : vector<8x16x128xbf16> to vector<8x16x128xf32>
    %89 = vector.extract_strided_slice %1 {offsets = [7, 0], sizes = [1, 128], strides = [1, 1]} : vector<9x128xf32> to vector<1x128xf32>
    %90 = vector.shape_cast %89 : vector<1x128xf32> to vector<128xf32>
    %91 = vector.shape_cast %90 : vector<128xf32> to vector<1x1x128xf32>
    %92 = vector.broadcast %91 : vector<1x1x128xf32> to vector<8x16x128xf32>
    %93 = arith.mulf %88, %92 : vector<8x16x128xf32>
    %94 = arith.addf %83, %93 : vector<8x16x128xf32>
    %c2_i32_43 = arith.constant 2 : i32
    %95 = arith.addi %7, %c2_i32_43 : i32
    %c0_44 = arith.constant 0 : index
    %c0_45 = arith.constant 0 : index
    %96 = arith.index_cast %95 : i32 to index
    %c2_46 = arith.constant 2 : index
    %c0_47 = arith.constant 0 : index
    %97 = vector.load %arg2[%c0_44, %c0_45, %96, %c2_46, %c0_47] : memref<1x1x18x18x128xbf16, #tpu.memory_space<vmem>>, vector<1x1x8x16x128xbf16>
    %98 = vector.shape_cast %97 : vector<1x1x8x16x128xbf16> to vector<8x16x128xbf16>
    %99 = arith.extf %98 : vector<8x16x128xbf16> to vector<8x16x128xf32>
    %100 = vector.extract_strided_slice %1 {offsets = [8, 0], sizes = [1, 128], strides = [1, 1]} : vector<9x128xf32> to vector<1x128xf32>
    %101 = vector.shape_cast %100 : vector<1x128xf32> to vector<128xf32>
    %102 = vector.shape_cast %101 : vector<128xf32> to vector<1x1x128xf32>
    %103 = vector.broadcast %102 : vector<1x1x128xf32> to vector<8x16x128xf32>
    %104 = arith.mulf %99, %103 : vector<8x16x128xf32>
    %105 = arith.addf %94, %104 : vector<8x16x128xf32>
    %106 = vector.shape_cast %3 : vector<128xf32> to vector<1x1x128xf32>
    %107 = vector.broadcast %106 : vector<1x1x128xf32> to vector<8x16x128xf32>
    %108 = arith.addf %105, %107 : vector<8x16x128xf32>
    %cst = arith.constant 0.000000e+00 : f32
    %109 = vector.broadcast %cst : f32 to vector<8x16x128xf32>
    %110 = arith.maximumf %108, %109 : vector<8x16x128xf32>
    %111 = vector.shape_cast %110 : vector<8x16x128xf32> to vector<128x128xf32>
    %112 = arith.truncf %111 : vector<128x128xf32> to vector<128x128xbf16>
    %cst_48 = arith.constant dense<0.000000e+00> : vector<128x128xf32>
    %113 = tpu.matmul %112, %4, %cst_48 {dimension_numbers = #tpu.dot_dimension_numbers<[1], [0], [0], [1], [0, 0, 1, 1], [], []>} : vector<128x128xbf16>, vector<128x128xbf16>, vector<128x128xf32> -> vector<128x128xf32>
    %114 = vector.shape_cast %6 : vector<128xf32> to vector<1x128xf32>
    %115 = vector.broadcast %114 : vector<1x128xf32> to vector<128x128xf32>
    %116 = arith.addf %113, %115 : vector<128x128xf32>
    %cst_49 = arith.constant 0.000000e+00 : f32
    %117 = vector.broadcast %cst_49 : f32 to vector<128x128xf32>
    %118 = arith.maximumf %116, %117 : vector<128x128xf32>
    %119 = vector.shape_cast %118 : vector<128x128xf32> to vector<8x16x128xf32>
    %c0_50 = arith.constant 0 : index
    %c0_51 = arith.constant 0 : index
    %c0_52 = arith.constant 0 : index
    %c0_53 = arith.constant 0 : index
    %120 = vector.load %arg7[%c0_50, %c0_51, %c0_52, %c0_53] : memref<1x16x16x128xf32, #tpu.memory_space<vmem>>, vector<1x8x16x128xf32>
    %121 = vector.shape_cast %120 : vector<1x8x16x128xf32> to vector<8x16x128xf32>
    %122 = vector.shape_cast %119 : vector<8x16x128xf32> to vector<1x8x16x128xf32>
    tpu.vector_store %arg7[%c0_50, %c0_51, %c0_52, %c0_53], %122 {strides = array<i32>} : memref<1x16x16x128xf32, #tpu.memory_space<vmem>>, vector<1x8x16x128xf32>,
    %c8_i32 = arith.constant 8 : i32
    %123 = arith.addi %0, %c8_i32 : i32
    %c0_i32_54 = arith.constant 0 : i32
    %124 = arith.addi %123, %c0_i32_54 : i32
    %c0_55 = arith.constant 0 : index
    %c0_56 = arith.constant 0 : index
    %125 = arith.index_cast %124 : i32 to index
    %c0_57 = arith.constant 0 : index
    %c0_58 = arith.constant 0 : index
    %126 = vector.load %arg2[%c0_55, %c0_56, %125, %c0_57, %c0_58] : memref<1x1x18x18x128xbf16, #tpu.memory_space<vmem>>, vector<1x1x8x16x128xbf16>
    %127 = vector.shape_cast %126 : vector<1x1x8x16x128xbf16> to vector<8x16x128xbf16>
    %128 = arith.extf %127 : vector<8x16x128xbf16> to vector<8x16x128xf32>
    %129 = vector.extract_strided_slice %1 {offsets = [0, 0], sizes = [1, 128], strides = [1, 1]} : vector<9x128xf32> to vector<1x128xf32>
    %130 = vector.shape_cast %129 : vector<1x128xf32> to vector<128xf32>
    %131 = vector.shape_cast %130 : vector<128xf32> to vector<1x1x128xf32>
    %132 = vector.broadcast %131 : vector<1x1x128xf32> to vector<8x16x128xf32>
    %133 = arith.mulf %128, %132 : vector<8x16x128xf32>
    %c0_i32_59 = arith.constant 0 : i32
    %134 = arith.addi %123, %c0_i32_59 : i32
    %c0_60 = arith.constant 0 : index
    %c0_61 = arith.constant 0 : index
    %135 = arith.index_cast %134 : i32 to index
    %c1_62 = arith.constant 1 : index
    %c0_63 = arith.constant 0 : index
    %136 = vector.load %arg2[%c0_60, %c0_61, %135, %c1_62, %c0_63] : memref<1x1x18x18x128xbf16, #tpu.memory_space<vmem>>, vector<1x1x8x16x128xbf16>
    %137 = vector.shape_cast %136 : vector<1x1x8x16x128xbf16> to vector<8x16x128xbf16>
    %138 = arith.extf %137 : vector<8x16x128xbf16> to vector<8x16x128xf32>
    %139 = vector.extract_strided_slice %1 {offsets = [1, 0], sizes = [1, 128], strides = [1, 1]} : vector<9x128xf32> to vector<1x128xf32>
    %140 = vector.shape_cast %139 : vector<1x128xf32> to vector<128xf32>
    %141 = vector.shape_cast %140 : vector<128xf32> to vector<1x1x128xf32>
    %142 = vector.broadcast %141 : vector<1x1x128xf32> to vector<8x16x128xf32>
    %143 = arith.mulf %138, %142 : vector<8x16x128xf32>
    %144 = arith.addf %133, %143 : vector<8x16x128xf32>
    %c0_i32_64 = arith.constant 0 : i32
    %145 = arith.addi %123, %c0_i32_64 : i32
    %c0_65 = arith.constant 0 : index
    %c0_66 = arith.constant 0 : index
    %146 = arith.index_cast %145 : i32 to index
    %c2_67 = arith.constant 2 : index
    %c0_68 = arith.constant 0 : index
    %147 = vector.load %arg2[%c0_65, %c0_66, %146, %c2_67, %c0_68] : memref<1x1x18x18x128xbf16, #tpu.memory_space<vmem>>, vector<1x1x8x16x128xbf16>
    %148 = vector.shape_cast %147 : vector<1x1x8x16x128xbf16> to vector<8x16x128xbf16>
    %149 = arith.extf %148 : vector<8x16x128xbf16> to vector<8x16x128xf32>
    %150 = vector.extract_strided_slice %1 {offsets = [2, 0], sizes = [1, 128], strides = [1, 1]} : vector<9x128xf32> to vector<1x128xf32>
    %151 = vector.shape_cast %150 : vector<1x128xf32> to vector<128xf32>
    %152 = vector.shape_cast %151 : vector<128xf32> to vector<1x1x128xf32>
    %153 = vector.broadcast %152 : vector<1x1x128xf32> to vector<8x16x128xf32>
    %154 = arith.mulf %149, %153 : vector<8x16x128xf32>
    %155 = arith.addf %144, %154 : vector<8x16x128xf32>
    %c1_i32_69 = arith.constant 1 : i32
    %156 = arith.addi %123, %c1_i32_69 : i32
    %c0_70 = arith.constant 0 : index
    %c0_71 = arith.constant 0 : index
    %157 = arith.index_cast %156 : i32 to index
    %c0_72 = arith.constant 0 : index
    %c0_73 = arith.constant 0 : index
    %158 = vector.load %arg2[%c0_70, %c0_71, %157, %c0_72, %c0_73] : memref<1x1x18x18x128xbf16, #tpu.memory_space<vmem>>, vector<1x1x8x16x128xbf16>
    %159 = vector.shape_cast %158 : vector<1x1x8x16x128xbf16> to vector<8x16x128xbf16>
    %160 = arith.extf %159 : vector<8x16x128xbf16> to vector<8x16x128xf32>
    %161 = vector.extract_strided_slice %1 {offsets = [3, 0], sizes = [1, 128], strides = [1, 1]} : vector<9x128xf32> to vector<1x128xf32>
    %162 = vector.shape_cast %161 : vector<1x128xf32> to vector<128xf32>
    %163 = vector.shape_cast %162 : vector<128xf32> to vector<1x1x128xf32>
    %164 = vector.broadcast %163 : vector<1x1x128xf32> to vector<8x16x128xf32>
    %165 = arith.mulf %160, %164 : vector<8x16x128xf32>
    %166 = arith.addf %155, %165 : vector<8x16x128xf32>
    %c1_i32_74 = arith.constant 1 : i32
    %167 = arith.addi %123, %c1_i32_74 : i32
    %c0_75 = arith.constant 0 : index
    %c0_76 = arith.constant 0 : index
    %168 = arith.index_cast %167 : i32 to index
    %c1_77 = arith.constant 1 : index
    %c0_78 = arith.constant 0 : index
    %169 = vector.load %arg2[%c0_75, %c0_76, %168, %c1_77, %c0_78] : memref<1x1x18x18x128xbf16, #tpu.memory_space<vmem>>, vector<1x1x8x16x128xbf16>
    %170 = vector.shape_cast %169 : vector<1x1x8x16x128xbf16> to vector<8x16x128xbf16>
    %171 = arith.extf %170 : vector<8x16x128xbf16> to vector<8x16x128xf32>
    %172 = vector.extract_strided_slice %1 {offsets = [4, 0], sizes = [1, 128], strides = [1, 1]} : vector<9x128xf32> to vector<1x128xf32>
    %173 = vector.shape_cast %172 : vector<1x128xf32> to vector<128xf32>
    %174 = vector.shape_cast %173 : vector<128xf32> to vector<1x1x128xf32>
    %175 = vector.broadcast %174 : vector<1x1x128xf32> to vector<8x16x128xf32>
    %176 = arith.mulf %171, %175 : vector<8x16x128xf32>
    %177 = arith.addf %166, %176 : vector<8x16x128xf32>
    %c1_i32_79 = arith.constant 1 : i32
    %178 = arith.addi %123, %c1_i32_79 : i32
    %c0_80 = arith.constant 0 : index
    %c0_81 = arith.constant 0 : index
    %179 = arith.index_cast %178 : i32 to index
    %c2_82 = arith.constant 2 : index
    %c0_83 = arith.constant 0 : index
    %180 = vector.load %arg2[%c0_80, %c0_81, %179, %c2_82, %c0_83] : memref<1x1x18x18x128xbf16, #tpu.memory_space<vmem>>, vector<1x1x8x16x128xbf16>
    %181 = vector.shape_cast %180 : vector<1x1x8x16x128xbf16> to vector<8x16x128xbf16>
    %182 = arith.extf %181 : vector<8x16x128xbf16> to vector<8x16x128xf32>
    %183 = vector.extract_strided_slice %1 {offsets = [5, 0], sizes = [1, 128], strides = [1, 1]} : vector<9x128xf32> to vector<1x128xf32>
    %184 = vector.shape_cast %183 : vector<1x128xf32> to vector<128xf32>
    %185 = vector.shape_cast %184 : vector<128xf32> to vector<1x1x128xf32>
    %186 = vector.broadcast %185 : vector<1x1x128xf32> to vector<8x16x128xf32>
    %187 = arith.mulf %182, %186 : vector<8x16x128xf32>
    %188 = arith.addf %177, %187 : vector<8x16x128xf32>
    %c2_i32_84 = arith.constant 2 : i32
    %189 = arith.addi %123, %c2_i32_84 : i32
    %c0_85 = arith.constant 0 : index
    %c0_86 = arith.constant 0 : index
    %190 = arith.index_cast %189 : i32 to index
    %c0_87 = arith.constant 0 : index
    %c0_88 = arith.constant 0 : index
    %191 = vector.load %arg2[%c0_85, %c0_86, %190, %c0_87, %c0_88] : memref<1x1x18x18x128xbf16, #tpu.memory_space<vmem>>, vector<1x1x8x16x128xbf16>
    %192 = vector.shape_cast %191 : vector<1x1x8x16x128xbf16> to vector<8x16x128xbf16>
    %193 = arith.extf %192 : vector<8x16x128xbf16> to vector<8x16x128xf32>
    %194 = vector.extract_strided_slice %1 {offsets = [6, 0], sizes = [1, 128], strides = [1, 1]} : vector<9x128xf32> to vector<1x128xf32>
    %195 = vector.shape_cast %194 : vector<1x128xf32> to vector<128xf32>
    %196 = vector.shape_cast %195 : vector<128xf32> to vector<1x1x128xf32>
    %197 = vector.broadcast %196 : vector<1x1x128xf32> to vector<8x16x128xf32>
    %198 = arith.mulf %193, %197 : vector<8x16x128xf32>
    %199 = arith.addf %188, %198 : vector<8x16x128xf32>
    %c2_i32_89 = arith.constant 2 : i32
    %200 = arith.addi %123, %c2_i32_89 : i32
    %c0_90 = arith.constant 0 : index
    %c0_91 = arith.constant 0 : index
    %201 = arith.index_cast %200 : i32 to index
    %c1_92 = arith.constant 1 : index
    %c0_93 = arith.constant 0 : index
    %202 = vector.load %arg2[%c0_90, %c0_91, %201, %c1_92, %c0_93] : memref<1x1x18x18x128xbf16, #tpu.memory_space<vmem>>, vector<1x1x8x16x128xbf16>
    %203 = vector.shape_cast %202 : vector<1x1x8x16x128xbf16> to vector<8x16x128xbf16>
    %204 = arith.extf %203 : vector<8x16x128xbf16> to vector<8x16x128xf32>
    %205 = vector.extract_strided_slice %1 {offsets = [7, 0], sizes = [1, 128], strides = [1, 1]} : vector<9x128xf32> to vector<1x128xf32>
    %206 = vector.shape_cast %205 : vector<1x128xf32> to vector<128xf32>
    %207 = vector.shape_cast %206 : vector<128xf32> to vector<1x1x128xf32>
    %208 = vector.broadcast %207 : vector<1x1x128xf32> to vector<8x16x128xf32>
    %209 = arith.mulf %204, %208 : vector<8x16x128xf32>
    %210 = arith.addf %199, %209 : vector<8x16x128xf32>
    %c2_i32_94 = arith.constant 2 : i32
    %211 = arith.addi %123, %c2_i32_94 : i32
    %c0_95 = arith.constant 0 : index
    %c0_96 = arith.constant 0 : index
    %212 = arith.index_cast %211 : i32 to index
    %c2_97 = arith.constant 2 : index
    %c0_98 = arith.constant 0 : index
    %213 = vector.load %arg2[%c0_95, %c0_96, %212, %c2_97, %c0_98] : memref<1x1x18x18x128xbf16, #tpu.memory_space<vmem>>, vector<1x1x8x16x128xbf16>
    %214 = vector.shape_cast %213 : vector<1x1x8x16x128xbf16> to vector<8x16x128xbf16>
    %215 = arith.extf %214 : vector<8x16x128xbf16> to vector<8x16x128xf32>
    %216 = vector.extract_strided_slice %1 {offsets = [8, 0], sizes = [1, 128], strides = [1, 1]} : vector<9x128xf32> to vector<1x128xf32>
    %217 = vector.shape_cast %216 : vector<1x128xf32> to vector<128xf32>
    %218 = vector.shape_cast %217 : vector<128xf32> to vector<1x1x128xf32>
    %219 = vector.broadcast %218 : vector<1x1x128xf32> to vector<8x16x128xf32>
    %220 = arith.mulf %215, %219 : vector<8x16x128xf32>
    %221 = arith.addf %210, %220 : vector<8x16x128xf32>
    %222 = vector.shape_cast %3 : vector<128xf32> to vector<1x1x128xf32>
    %223 = vector.broadcast %222 : vector<1x1x128xf32> to vector<8x16x128xf32>
    %224 = arith.addf %221, %223 : vector<8x16x128xf32>
    %cst_99 = arith.constant 0.000000e+00 : f32
    %225 = vector.broadcast %cst_99 : f32 to vector<8x16x128xf32>
    %226 = arith.maximumf %224, %225 : vector<8x16x128xf32>
    %227 = vector.shape_cast %226 : vector<8x16x128xf32> to vector<128x128xf32>
    %228 = arith.truncf %227 : vector<128x128xf32> to vector<128x128xbf16>
    %cst_100 = arith.constant dense<0.000000e+00> : vector<128x128xf32>
    %229 = tpu.matmul %228, %4, %cst_100 {dimension_numbers = #tpu.dot_dimension_numbers<[1], [0], [0], [1], [0, 0, 1, 1], [], []>} : vector<128x128xbf16>, vector<128x128xbf16>, vector<128x128xf32> -> vector<128x128xf32>
    %230 = vector.shape_cast %6 : vector<128xf32> to vector<1x128xf32>
    %231 = vector.broadcast %230 : vector<1x128xf32> to vector<128x128xf32>
    %232 = arith.addf %229, %231 : vector<128x128xf32>
    %cst_101 = arith.constant 0.000000e+00 : f32
    %233 = vector.broadcast %cst_101 : f32 to vector<128x128xf32>
    %234 = arith.maximumf %232, %233 : vector<128x128xf32>
    %235 = vector.shape_cast %234 : vector<128x128xf32> to vector<8x16x128xf32>
    %c0_102 = arith.constant 0 : index
    %c8 = arith.constant 8 : index
    %c0_103 = arith.constant 0 : index
    %c0_104 = arith.constant 0 : index
    %236 = vector.load %arg7[%c0_102, %c8, %c0_103, %c0_104] : memref<1x16x16x128xf32, #tpu.memory_space<vmem>>, vector<1x8x16x128xf32>
    %237 = vector.shape_cast %236 : vector<1x8x16x128xf32> to vector<8x16x128xf32>
    %238 = vector.shape_cast %235 : vector<8x16x128xf32> to vector<1x8x16x128xf32>
    tpu.vector_store %arg7[%c0_102, %c8, %c0_103, %c0_104], %238 {strides = array<i32>} : memref<1x16x16x128xf32, #tpu.memory_space<vmem>>, vector<1x8x16x128xf32>,
    return
  }
  func.func @transform_0(%arg0: i32, %arg1: i32) -> (i32, i32, i32, i32, i32) {
    %c0_i32 = arith.constant 0 : i32
    %c0_i32_0 = arith.constant 0 : i32
    %c0_i32_1 = arith.constant 0 : i32
    %c0_i32_2 = arith.constant 0 : i32
    %c0_i32_3 = arith.constant 0 : i32
    return %arg0, %c0_i32, %c0_i32_0, %c0_i32_1, %c0_i32_2 : i32, i32, i32, i32, i32
  }
  func.func @transform_1(%arg0: i32, %arg1: i32) -> (i32, i32) {
    %c0_i32 = arith.constant 0 : i32
    %c0_i32_0 = arith.constant 0 : i32
    %c0_i32_1 = arith.constant 0 : i32
    return %c0_i32, %c0_i32_0 : i32, i32
  }
  func.func @transform_2(%arg0: i32, %arg1: i32) -> (i32, i32) {
    %c0_i32 = arith.constant 0 : i32
    %c0_i32_0 = arith.constant 0 : i32
    %c0_i32_1 = arith.constant 0 : i32
    return %c0_i32, %c0_i32_0 : i32, i32
  }
  func.func @transform_3(%arg0: i32, %arg1: i32) -> (i32, i32) {
    %c0_i32 = arith.constant 0 : i32
    %c0_i32_0 = arith.constant 0 : i32
    %c0_i32_1 = arith.constant 0 : i32
    return %c0_i32, %c0_i32_0 : i32, i32
  }
  func.func @transform_4(%arg0: i32, %arg1: i32) -> (i32, i32) {
    %c0_i32 = arith.constant 0 : i32
    %c0_i32_0 = arith.constant 0 : i32
    %c0_i32_1 = arith.constant 0 : i32
    return %c0_i32, %c0_i32_0 : i32, i32
  }
  func.func @transform_5(%arg0: i32, %arg1: i32) -> (i32, i32, i32, i32) {
    %c0_i32 = arith.constant 0 : i32
    %c0_i32_0 = arith.constant 0 : i32
    %c0_i32_1 = arith.constant 0 : i32
    return %arg0, %arg1, %c0_i32, %c0_i32_0 : i32, i32, i32, i32
  }
}

</mosaic_0001>

<bundles_post_ra>
// kernel: _dwsep_impl.1
= control target key start
LH: loop header
LB: loop body
LE: loop exit
PB: predicated region body
PF: predicated region fallthrough
CT: control target
= control target key end

     0   :  { %s3331_s18 = smov 0   ;;  %s3333_s19 = smov 0   ;;  %s4441_s0 = inlined_call_operand.vmem [shape: bf16[2,1,18,18,128], index: 0, kind: input, shape index: {}]   ;;  %s4442_s1 = inlined_call_operand.vmem [shape: f32[9,128], index: 1, kind: input, shape index: {}]   ;;  %s4443_s2 = inlined_call_operand.vmem [shape: f32[1,128], index: 2, kind: input, shape index: {}]   ;;  %s4444_s3 = inlined_call_operand.vmem [shape: bf16[128,128], index: 3, kind: input, shape index: {}]   ;;  %s4445_s4 = inlined_call_operand.vmem [shape: f32[1,128], index: 4, kind: input, shape index: {}]   ;;  %s4446_s5 = inlined_call_operand.vmem [shape: f32[2,16,16,128], index: 5, kind: output, shape index: {}]  }
   0x1   :  { %s3335_s20 = smov 0  }
   0x2 LB: > { %s27_s21 = sadd.s32 1, %s3295_s19  ;;  %p2831_p0 = scmp.ge.s32.totalorder %s3299_s20, 1  ;;  %s3299_s20 = sphi %s3335_s20, %s15_s20   ;;  %s3295_s19 = sphi %s3333_s19, %s4448_s19   ;;  %s3291_s18 = sphi %s3331_s18, %s4447_s18  }
   0x3   : > { %p29_p1 = scmp.ge.s32.totalorder %s27_s21, 2  ;;  %p201_p2 = scmp.lt.s32.totalorder %s3299_s20, 3 }
   0x5   : > { %s4450_s21 = smov (%p29_p1, %s27_s21), 0  ;;  %p202_p3 = pnand %p2831_p0, %p201_p2 }
   0x6   : > { %v3265_v0 = vld [vmem:[%s4444_s3] sm:$0xff] (!%p202_p3)   ;;  %p234_p4 = scmp.lt.s32.totalorder (!%p202_p3), %s3291_s18, 1  ;;  %v307_v1 = vlaneseq (!%p202_p3)  ;;  %v3266_v2 = vld [vmem:[%s4444_s3 + $0x8] sm:$0xff] (!%p202_p3)   ;;  %v3267_v4 = vld [vmem:[%s4444_s3 + $0x10] sm:$0xff] (!%p202_p3)   ;;  %vm395_vm0 = vcmask (!%p202_p3), 1046528   ;;  %vm536_vm1 = vcmask (!%p202_p3), 1045504  }
   0x7   : > { %205 = sbr.rel (%p202_p3) target bundleno = 589 (0x24d), region = 40  ;;  %3176 = vmatprep.subr.bf16.mxu0 (!%p202_p3), %v3265_v0  ;;  %3208 = vmatprep.subr.bf16.mxu1 (!%p202_p3), %v3265_v0  ;;  %v3268_v8 = vld [vmem:[%s4444_s3 + $0x18] sm:$0xff] (!%p202_p3)   ;;  %v3377_v9 = vld [vmem:[%s4442_s1] sm:$0xff] (!%p202_p3)  ;;  %v3270_v46 = vld [vmem:[%s4444_s3 + $0x28] sm:$0xff] (!%p202_p3)  }
   0x8   : > { %3177 = vmatpush3.bf16.msra.mxu0 (!%p202_p3), %v3265_v0  ;;  %3209 = vmatpush3.bf16.msra.mxu1 (!%p202_p3), %v3265_v0  ;;  %v3357_v3 = vshrl.u32 (!%p202_p3), %v307_v1, 7  ;;  %v3269_v27 = vld [vmem:[%s4444_s3 + $0x20] sm:$0xff] (!%p202_p3)   ;;  %v3271_v63 = vld [vmem:[%s4444_s3 + $0x30] sm:$0xff] (!%p202_p3)  }
   0x9   : > { %3178 = vmatprep.subr.bf16.mxu0 (!%p202_p3), %v3266_v2  ;;  %3210 = vmatprep.subr.bf16.mxu1 (!%p202_p3), %v3266_v2 }
   0xa   : > { %v309_v5 = vsub.s32 (!%p202_p3), 0, %v3357_v3  ;;  %v345_v6 = vsub.s32 (!%p202_p3), 1, %v3357_v3  ;;  %v486_v7 = vsub.s32 (!%p202_p3), 2, %v3357_v3  ;;  %v647_v16 = vsub.s32 (!%p202_p3), 3, %v3357_v3 }
   0xb   : > { %v699_v31 = vsub.s32 (!%p202_p3), 4, %v3357_v3  ;;  %v839_v50 = vsub.s32 (!%p202_p3), 5, %v3357_v3 }
   0xc   : > { %3179 = vmatpush3.bf16.msra.mxu0 (!%p202_p3), %v3266_v2  ;;  %3211 = vmatpush3.bf16.msra.mxu1 (!%p202_p3), %v3266_v2  ;;  %v3381_v11 = vrot.slane (!%p202_p3), %v3377_v9, %v309_v5  ;;  %v3385_v13 = vrot.slane (!%p202_p3), %v3377_v9, %v345_v6  ;;  %v3389_v15 = vrot.slane (!%p202_p3), %v3377_v9, %v486_v7 }
   0xd   : > { %3180 = vmatprep.subr.bf16.mxu0 (!%p202_p3), %v3267_v4  ;;  %3212 = vmatprep.subr.bf16.mxu1 (!%p202_p3), %v3267_v4  ;;  %v3397_v25 = vrot.slane (!%p202_p3), %v3377_v9, %v647_v16  ;;  %v3420_v48 = vrot.slane (!%p202_p3), %v3377_v9, %v699_v31  ;;  %v3433_v61 = vrot.slane (!%p202_p3), %v3377_v9, %v839_v50 }
   0xe   : > { %s4452_s18 = smov (!%p234_p4, %s3291_s18), 1 }
   0xf   : > { %s3240_s28 = smul.u32 216, %s4452_s18  ;;  %s3024_s13 = sshll.u32 %s4452_s18, 8 }
  0x10   : > { %3181 = vmatpush3.bf16.msra.mxu0 %v3267_v4  ;;  %3213 = vmatpush3.bf16.msra.mxu1 %v3267_v4  ;;  %v999_v4 = vsub.s32 6, %v3357_v3  ;;  %s4354_s18 = scalar_lea.vmem %s4446_s5, %s3024_s13 }
  0x11   : > { %s3367_s6 = scalar_lea.vmem %s4441_s0, %s3240_s28  ;;  %3182 = vmatprep.subr.bf16.mxu0 %v3268_v8  ;;  %3214 = vmatprep.subr.bf16.mxu1 %v3268_v8 }
  0x12   : > { %v3026_v10 = vld [vmem:[%s3367_s6] sm:$0xff]   ;;  %v327_v12 = vld [vmem:[%s3367_s6 + $0x8] sm:$0x1]  ;;  %v2835_v21 = vld [vmem:[%s3367_s6 + $0xc] sm:$0xff]   ;;  %v3445_v16 = vrot.slane %v3377_v9, %v999_v4 }
  0x13   : > { %v468_v14 = vld [vmem:[%s3367_s6] sm:$0xe]  ;;  %v3027_v17 = vunpack.c.l.bf16 %v3026_v10  ;;  %v3028_v18 = vunpack.c.h.bf16 %v3026_v10  ;;  %v335_v19 = vunpack.c.l.bf16 %v327_v12  ;;  %v3394_v22 = vld [vmem:[%s3367_s6 + $0x14] sm:$0x1]  ;;  %v629_v23 = vunpack.c.l.bf16 %v2835_v21  ;;  %v2859_v36 = vld [vmem:[%s3367_s6 + $0xc] sm:$0xe] }
  0x14   : > { %v476_v20 = vunpack.c.l.bf16 %v468_v14  ;;  %v630_v24 = vunpack.c.h.bf16 %v2835_v21  ;;  %v689_v26 = vunpack.c.l.bf16 %v3394_v22  ;;  %v3128_v41 = vld [vmem:[%s3367_s6 + $0x18] sm:$0xff]   ;;  %3183 = vmatpush3.bf16.msra.mxu0 %v3268_v8  ;;  %3215 = vmatpush3.bf16.msra.mxu1 %v3268_v8  ;;  %v829_v49 = vunpack.c.l.bf16 %v2859_v36 }
  0x15   : > { %v311_v28 = vmul.f32 %v3027_v17, %v3381_v11  ;;  %v312_v29 = vmul.f32 %v3028_v18, %v3381_v11  ;;  %v347_v30 = vmul.f32 %v3027_v17, %v3385_v13  ;;  %v348_v32 = vmul.f32 %v3028_v18, %v3385_v13  ;;  %3184 = vmatprep.subr.bf16.mxu0 %v3269_v27  ;;  %v2883_v17 = vld [vmem:[%s3367_s6 + $0x20] sm:$0x1] }
  0x16   : > { %v349_v33 = vmul.f32 %v3385_v13, %v335_v19  ;;  %v488_v34 = vmul.f32 %v3389_v15, %v476_v20  ;;  %v489_v35 = vmul.f32 %v3028_v18, %v3389_v15  ;;  %v490_v38 = vmul.f32 %v3389_v15, %v335_v19  ;;  %3216 = vmatprep.subr.bf16.mxu1 %v3269_v27  ;;  %v3451_v18 = vld [vmem:[%s4442_s1 + $0x8] ss:$0 sm:$0xff] }
  0x17   : > { %v396_v37 = vrot.slane %v347_v30, 1  ;;  %v649_v39 = vmul.f32 %v3397_v25, %v629_v23  ;;  %v650_v40 = vmul.f32 %v3397_v25, %v630_v24  ;;  %v397_v42 = vrot.slane %v348_v32, 1  ;;  %v3132_v30 = vld [vmem:[%s3367_s6 + $0x60] sm:$0xff]  }
  0x18   : > { %v399_v43 = vrot.slane %v349_v33, 1  ;;  %v537_v44 = vrot.slane %v488_v34, 2  ;;  %v538_v45 = vrot.slane %v489_v35, 2  ;;  %v540_v47 = vrot.slane %v490_v38, 2  ;;  %3185 = vmatpush3.bf16.msra.mxu0 %v3269_v27  ;;  %3217 = vmatpush3.bf16.msra.mxu1 %v3269_v27 }
  0x19   : > { %v398_v51 = vsel %vm395_vm0, %v396_v37, %v397_v42  ;;  %v3426_v54 = vunpack.c.l.bf16 %v3128_v41  ;;  %v701_v58 = vmul.f32 %v3420_v48, %v629_v23  ;;  %v702_v59 = vmul.f32 %v3420_v48, %v630_v24  ;;  %3186 = vmatprep.subr.bf16.mxu0 %v3270_v46  ;;  %3218 = vmatprep.subr.bf16.mxu1 %v3270_v46  ;;  %v2891_v23 = vld [vmem:[%s3367_s6 + $0x18] sm:$0xe] }
  0x1a   : > { %v400_v52 = vsel %vm395_vm0, %v397_v42, %v399_v43  ;;  %v539_v53 = vsel %vm536_vm1, %v537_v44, %v538_v45  ;;  %v452_v55 = vadd.f32 %v398_v51, %v311_v28  ;;  %v541_v57 = vsel %vm536_vm1, %v538_v45, %v540_v47 }
  0x1b   : > { %v453_v56 = vadd.f32 %v400_v52, %v312_v29  ;;  %v703_v60 = vmul.f32 %v3420_v48, %v689_v26  ;;  %v3435_v62 = vunpack.c.h.bf16 %v3128_v41  ;;  %v749_v2 = vrot.slane %v701_v58, 1 }
  0x1c   : > { %v593_v0 = vadd.f32 %v539_v53, %v452_v55  ;;  %v750_v5 = vrot.slane %v702_v59, 1  ;;  %v841_v7 = vmul.f32 %v3433_v61, %v829_v49  ;;  %v842_v8 = vmul.f32 %v3433_v61, %v630_v24  ;;  %3187 = vmatpush3.bf16.msra.mxu0 %v3270_v46  ;;  %3219 = vmatpush3.bf16.msra.mxu1 %v3270_v46  ;;  %v3272_v24 = vld [vmem:[%s4444_s3 + $0x38] sm:$0xff]   ;;  %v2926_v46 = vld [vmem:[%s3367_s6 + $0x68] sm:$0x1] }
  0x1d   : > { %v594_v1 = vadd.f32 %v541_v57, %v453_v56  ;;  %v752_v6 = vrot.slane %v703_v60, 1  ;;  %v843_v14 = vmul.f32 %v3433_v61, %v689_v26  ;;  %3188 = vmatprep.subr.bf16.mxu0 %v3271_v63  ;;  %3220 = vmatprep.subr.bf16.mxu1 %v3271_v63  ;;  %v1001_v29 = vmul.f32 %v3426_v54, %v3445_v16  ;;  %v2934_v56 = vld [vmem:[%s3367_s6 + $0x60] sm:$0xe] }
  0x1e   : > { %v665_v10 = vadd.f32 %v649_v39, %v593_v0  ;;  %v751_v19 = vsel %vm395_vm0, %v749_v2, %v750_v5  ;;  %v889_v21 = vrot.slane %v841_v7, 2  ;;  %v890_v22 = vrot.slane %v842_v8, 2  ;;  %v2942_v8 = vld [vmem:[%s3367_s6 + $0x6c] sm:$0xff]  }
  0x1f   : > { %v666_v12 = vadd.f32 %v650_v40, %v594_v1  ;;  %v753_v20 = vsel %vm395_vm0, %v750_v5, %v752_v6  ;;  %v892_v28 = vrot.slane %v843_v14, 2  ;;  %v1002_v32 = vmul.f32 %v3435_v62, %v3445_v16 }
  0x20   : > { %v805_v26 = vadd.f32 %v751_v19, %v665_v10  ;;  %v891_v31 = vsel %vm536_vm1, %v889_v21, %v890_v22  ;;  %v1041_v33 = vunpack.c.l.bf16 %v2883_v17  ;;  %v1051_v34 = vsub.s32 7, %v3357_v3  ;;  %3189 = vmatpush3.bf16.msra.mxu0 %v3271_v63  ;;  %3221 = vmatpush3.bf16.msra.mxu1 %v3271_v63  ;;  %v3494_v19 = vld [vmem:[%s4443_s2] ss:$0 sm:$0xff] }
  0x21   : > { %v806_v27 = vadd.f32 %v753_v20, %v666_v12  ;;  %v893_v35 = vsel %vm536_vm1, %v890_v22, %v892_v28  ;;  %v1181_v37 = vunpack.c.l.bf16 %v2891_v23  ;;  %v1194_v38 = vmul.f32 %v3435_v62, %v3451_v18  ;;  %3190 = vmatprep.subr.bf16.mxu0 %v3272_v24  ;;  %3222 = vmatprep.subr.bf16.mxu1 %v3272_v24 }
  0x22   : > { %v945_v36 = vadd.f32 %v891_v31, %v805_v26  ;;  %v3470_v40 = vrot.slane %v3377_v9, %v1051_v34  ;;  %v1195_v41 = vmul.f32 %v3451_v18, %v1041_v33  ;;  %v3075_v42 = vunpack.c.l.bf16 %v3132_v30 }
  0x23   : > { %v946_v39 = vadd.f32 %v893_v35, %v806_v27  ;;  %v1193_v43 = vmul.f32 %v3451_v18, %v1181_v37  ;;  %v1242_v44 = vrot.slane %v1194_v38, 2  ;;  %v3076_v45 = vunpack.c.h.bf16 %v3132_v30 }
  0x24   : > { %v1017_v3 = vadd.f32 %v1001_v29, %v945_v36  ;;  %v1053_v49 = vmul.f32 %v3426_v54, %v3470_v40  ;;  %v1054_v9 = vmul.f32 %v3435_v62, %v3470_v40  ;;  %v1055_v50 = vmul.f32 %v3470_v40, %v1041_v33  ;;  %3191 = vmatpush3.bf16.msra.mxu0 %v3272_v24  ;;  %v2958_v29 = vld [vmem:[%s3367_s6 + $0x74] sm:$0x1] }
  0x25   : > { %v1018_v47 = vadd.f32 %v1002_v32, %v946_v39  ;;  %v1241_v51 = vrot.slane %v1193_v43, 2  ;;  %v1244_v52 = vrot.slane %v1195_v41, 2  ;;  %v1578_v53 = vmul.f32 %v3075_v42, %v3381_v11  ;;  %3223 = vmatpush3.bf16.msra.mxu1 %v3272_v24 }
  0x26   : > { %v1579_v55 = vmul.f32 %v3076_v45, %v3381_v11  ;;  %v1101_v57 = vrot.slane %v1053_v49, 1  ;;  %v1102_v58 = vrot.slane %v1054_v9, 1  ;;  %v1104_v59 = vrot.slane %v1055_v50, 1 }
  0x27   : > { %v1602_v60 = vunpack.c.l.bf16 %v2926_v46  ;;  %v1243_v63 = vsel %vm536_vm1, %v1241_v51, %v1242_v44  ;;  %v1245_v0 = vsel %vm536_vm1, %v1242_v44, %v1244_v52  ;;  %v1610_v1 = vmul.f32 %v3075_v42, %v3385_v13  ;;  %v3140_v51 = vld [vmem:[%s3367_s6 + $0x78] sm:$0xff]  }
  0x28   : > { %v1611_v2 = vmul.f32 %v3076_v45, %v3385_v13  ;;  %v1103_v4 = vsel %vm395_vm0, %v1101_v57, %v1102_v58  ;;  %v1105_v5 = vsel %vm395_vm0, %v1102_v58, %v1104_v59  ;;  %v1738_v7 = vunpack.c.l.bf16 %v2934_v56  ;;  %v2990_v57 = vld [vmem:[%s3367_s6 + $0x80] sm:$0x1] }
  0x29   : > { %v1612_v6 = vmul.f32 %v1602_v60, %v3385_v13  ;;  %v1157_v10 = vadd.f32 %v1103_v4, %v1017_v3  ;;  %v1158_v12 = vadd.f32 %v1105_v5, %v1018_v47  ;;  %v1658_v14 = vrot.slane %v1610_v1, 1  ;;  %v2966_v3 = vld [vmem:[%s3367_s6 + $0x6c] sm:$0xe] }
  0x2a   : > { %v1659_v17 = vrot.slane %v1611_v2, 1  ;;  %v1746_v21 = vmul.f32 %v1738_v7, %v3389_v15  ;;  %v1747_v22 = vmul.f32 %v3076_v45, %v3389_v15  ;;  %v1748_v23 = vmul.f32 %v1602_v60, %v3389_v15 }
  0x2b   : > { %v1661_v20 = vrot.slane %v1612_v6, 1  ;;  %v1297_v24 = vadd.f32 %v1243_v63, %v1157_v10  ;;  %v1298_v26 = vadd.f32 %v1245_v0, %v1158_v12  ;;  %v1886_v28 = vunpack.c.l.bf16 %v2942_v8 }
  0x2c   : > { %v1660_v27 = vsel %vm395_vm0, %v1658_v14, %v1659_v17  ;;  %v1794_v32 = vrot.slane %v1746_v21, 2  ;;  %v1795_v33 = vrot.slane %v1747_v22, 2  ;;  %v1797_v37 = vrot.slane %v1748_v23, 2 }
  0x2d   : > { %v1662_v30 = vsel %vm395_vm0, %v1659_v17, %v1661_v20  ;;  %v1714_v31 = vadd.f32 %v1660_v27, %v1578_v53  ;;  %v1319_v34 = vadd.f32 %v3494_v19, %v1297_v24  ;;  %v1320_v35 = vadd.f32 %v3494_v19, %v1298_v26  ;;  %v2998_v20 = vld [vmem:[%s3367_s6 + $0x78] sm:$0xe] }
  0x2e   : > { %v1715_v36 = vadd.f32 %v1662_v30, %v1579_v55  ;;  %v1796_v38 = vsel %vm536_vm1, %v1794_v32, %v1795_v33  ;;  %v1887_v39 = vunpack.c.h.bf16 %v2942_v8  ;;  %v1902_v41 = vmul.f32 %v1886_v28, %v3397_v25  ;;  %v277_v30 = vld [vmem:[%s3367_s6 + $0xc] sm:$0xff]  }
  0x2f   : > { %v1942_v42 = vunpack.c.l.bf16 %v2958_v29  ;;  %v1335_v43 = vmax.f32 %v1319_v34, 0.0  ;;  %v1336_v44 = vmax.f32 %v1320_v35, 0.0  ;;  %v1798_v45 = vsel %vm536_vm1, %v1795_v33, %v1797_v37 }
  0x30   : > { %v1850_v46 = vadd.f32 %v1796_v38, %v1714_v31  ;;  %v1851_v47 = vadd.f32 %v1798_v45, %v1715_v36  ;;  %v1903_v49 = vmul.f32 %v1887_v39, %v3397_v25  ;;  %v1950_v9 = vmul.f32 %v1886_v28, %v3420_v48 }
  0x31   : > { %v1951_v50 = vmul.f32 %v1887_v39, %v3420_v48  ;;  %v1351_v52 = vpack.c.bf16 %v1336_v44, %v1335_v43  ;;  %v1952_v55 = vmul.f32 %v1942_v42, %v3420_v48  ;;  %v2078_v56 = vunpack.c.l.bf16 %v2966_v3  ;;  %v328_v43 = vld [vmem:[%s3367_s6 + $0x14] sm:$0x1] }
  0x32   : > { %v1918_v53 = vadd.f32 %v1902_v41, %v1850_v46  ;;  %v1919_v58 = vadd.f32 %v1903_v49, %v1851_v47  ;;  %v1998_v59 = vrot.slane %v1950_v9, 1  ;;  %v2087_v63 = vmul.f32 %v1887_v39, %v3433_v61 }
  0x33   : > { %v1999_v60 = vrot.slane %v1951_v50, 1  ;;  %3192 = vmatprep.mubr.bf16.mxu0 %v1351_v52  ;;  %v2001_v0 = vrot.slane %v1952_v55, 1  ;;  %v2086_v1 = vmul.f32 %v2078_v56, %v3433_v61  ;;  %v2088_v2 = vmul.f32 %v1942_v42, %v3433_v61  ;;  %v469_v52 = vld [vmem:[%s3367_s6 + $0xc] sm:$0xe] }
  0x34   : > { %v3517_v4 = vunpack.c.l.bf16 %v3140_v51  ;;  %v2135_v6 = vrot.slane %v2087_v63, 2  ;;  %v3520_v7 = vunpack.c.h.bf16 %v3140_v51  ;;  %v2282_v8 = vunpack.c.l.bf16 %v2990_v57 }
  0x35   : > { %v2000_v5 = vsel %vm395_vm0, %v1998_v59, %v1999_v60  ;;  %v2002_v10 = vsel %vm395_vm0, %v1999_v60, %v2001_v0  ;;  %v2134_v14 = vrot.slane %v2086_v1, 2  ;;  %v2137_v17 = vrot.slane %v2088_v2, 2 }
  0x36   : > { %v2054_v12 = vadd.f32 %v2000_v5, %v1918_v53  ;;  %v2055_v21 = vadd.f32 %v2002_v10, %v1919_v58  ;;  %v2242_v22 = vmul.f32 %v3517_v4, %v3445_v16  ;;  %v2243_v23 = vmul.f32 %v3520_v7, %v3445_v16 }
  0x37   : > { %v2290_v24 = vmul.f32 %v3517_v4, %v3470_v40  ;;  %v2136_v26 = vsel %vm536_vm1, %v2134_v14, %v2135_v6  ;;  %v2138_v27 = vsel %vm536_vm1, %v2135_v6, %v2137_v17  ;;  %v2291_v28 = vmul.f32 %v3520_v7, %v3470_v40 }
  0x38   : > { %v2292_v29 = vmul.f32 %v2282_v8, %v3470_v40  ;;  %v2190_v31 = vadd.f32 %v2136_v26, %v2054_v12  ;;  %v2191_v32 = vadd.f32 %v2138_v27, %v2055_v21  ;;  %v2418_v34 = vunpack.c.l.bf16 %v2998_v20 }
  0x39   : > { %v2338_v33 = vrot.slane %v2290_v24, 1  ;;  %v2339_v35 = vrot.slane %v2291_v28, 1  ;;  %v2427_v37 = vmul.f32 %v3520_v7, %v3451_v18  ;;  %v2428_v38 = vmul.f32 %v3451_v18, %v2282_v8 }
  0x3a   : > { %v2341_v36 = vrot.slane %v2292_v29, 1  ;;  %v2258_v39 = vadd.f32 %v2242_v22, %v2190_v31  ;;  %v2259_v41 = vadd.f32 %v2243_v23, %v2191_v32  ;;  %v2426_v42 = vmul.f32 %v3451_v18, %v2418_v34  ;;  %v2852_v22 = vld [vmem:[%s3367_s6 + $0x20] sm:$0x1]  ;;  %v2860_v32 = vld [vmem:[%s3367_s6 + $0x18] sm:$0xe] }
  0x3b   : > { %v293_v3 = vunpack.c.l.bf16 %v277_v30  ;;  %v2340_v44 = vsel %vm395_vm0, %v2338_v33, %v2339_v35  ;;  %v2475_v46 = vrot.slane %v2427_v37, 2  ;;  %v2477_v47 = vrot.slane %v2428_v38, 2 }
  0x3c   : > { %v2342_v45 = vsel %vm395_vm0, %v2339_v35, %v2341_v36  ;;  %v2394_v49 = vadd.f32 %v2340_v44, %v2258_v39  ;;  %v2474_v50 = vrot.slane %v2426_v42, 2  ;;  %v294_v51 = vunpack.c.h.bf16 %v277_v30 }
  0x3d   : > { %v2395_v9 = vadd.f32 %v2342_v45, %v2259_v41  ;;  %v2478_v53 = vsel %vm536_vm1, %v2475_v46, %v2477_v47  ;;  %v313_v55 = vmul.f32 %v3381_v11, %v293_v3  ;;  %v336_v56 = vunpack.c.l.bf16 %v328_v43  ;;  %v2869_v45 = vld [vmem:[%s3367_s6 + $0x24] sm:$0xff]  }
  0x3e   : > { %v350_v57 = vmul.f32 %v3385_v13, %v293_v3  ;;  %v2476_v58 = vsel %vm536_vm1, %v2474_v50, %v2475_v46  ;;  %v314_v60 = vmul.f32 %v3381_v11, %v294_v51  ;;  %v351_v63 = vmul.f32 %v3385_v13, %v294_v51 }
  0x3f   : > { %v2531_v59 = vadd.f32 %v2478_v53, %v2395_v9  ;;  %v2530_v0 = vadd.f32 %v2476_v58, %v2394_v49  ;;  %v352_v1 = vmul.f32 %v3385_v13, %v336_v56  ;;  %v477_v5 = vunpack.c.l.bf16 %v469_v52 }
  0x40   : > { %v401_v2 = vrot.slane %v350_v57, 1  ;;  %v402_v8 = vrot.slane %v351_v63, 1  ;;  %v492_v10 = vmul.f32 %v3389_v15, %v294_v51  ;;  %v493_v12 = vmul.f32 %v3389_v15, %v336_v56 }
  0x41   : > { %v2547_v6 = vadd.f32 %v3494_v19, %v2531_v59  ;;  %v2546_v14 = vadd.f32 %v3494_v19, %v2530_v0  ;;  %v404_v17 = vrot.slane %v352_v1, 1  ;;  %v491_v20 = vmul.f32 %v3389_v15, %v477_v5 }
  0x42   : > { %v651_v21 = vmul.f32 %v3426_v54, %v3397_v25  ;;  %v403_v24 = vsel %vm395_vm0, %v401_v2, %v402_v8  ;;  %v543_v26 = vrot.slane %v492_v10, 2  ;;  %v545_v27 = vrot.slane %v493_v12, 2  ;;  %v2892_v2 = vld [vmem:[%s3367_s6 + $0x24] sm:$0xe] }
  0x43   : > { %v2563_v23 = vmax.f32 %v2547_v6, 0.0  ;;  %v2562_v28 = vmax.f32 %v2546_v14, 0.0  ;;  %v405_v29 = vsel %vm395_vm0, %v402_v8, %v404_v17  ;;  %v454_v30 = vadd.f32 %v403_v24, %v313_v55  ;;  %v2884_v55 = vld [vmem:[%s3367_s6 + $0x2c] sm:$0x1] }
  0x44   : > { %v542_v31 = vrot.slane %v491_v20, 2  ;;  %v455_v33 = vadd.f32 %v405_v29, %v314_v60  ;;  %v546_v34 = vsel %vm536_vm1, %v543_v26, %v545_v27  ;;  %v652_v35 = vmul.f32 %v3435_v62, %v3397_v25 }
  0x45   : > { %v690_v36 = vunpack.c.l.bf16 %v2852_v22  ;;  %v2578_v37 = vpack.c.bf16 %v2563_v23, %v2562_v28  ;;  %v704_v39 = vmul.f32 %v3426_v54, %v3420_v48  ;;  %v705_v41 = vmul.f32 %v3435_v62, %v3420_v48 }
  0x46   : > { %v544_v38 = vsel %vm536_vm1, %v542_v31, %v543_v26  ;;  %v596_v3 = vadd.f32 %v546_v34, %v455_v33  ;;  %v830_v44 = vunpack.c.l.bf16 %v2860_v32  ;;  %v845_v49 = vmul.f32 %v3435_v62, %v3433_v61  ;;  %v2912_v26 = vld [vmem:[%s3367_s6 + $0x6c] sm:$0xff]  }
  0x47   : > { %v595_v42 = vadd.f32 %v544_v38, %v454_v30  ;;  %v706_v43 = vmul.f32 %v3420_v48, %v690_v36  ;;  %3224 = vmatprep.mubr.bf16.mxu1 %v2578_v37  ;;  %v754_v46 = vrot.slane %v704_v39, 1  ;;  %v755_v47 = vrot.slane %v705_v41, 1 }
  0x48   : > { %v846_v9 = vmul.f32 %v3433_v61, %v690_v36  ;;  %v668_v51 = vadd.f32 %v652_v35, %v596_v3  ;;  %v844_v53 = vmul.f32 %v3433_v61, %v830_v44  ;;  %v895_v57 = vrot.slane %v845_v49, 2  ;;  %v2927_v35 = vld [vmem:[%s3367_s6 + $0x74] sm:$0x1]  ;;  %v2935_v44 = vld [vmem:[%s3367_s6 + $0x6c] sm:$0xe] }
  0x49   : > { %v667_v50 = vadd.f32 %v651_v21, %v595_v42  ;;  %v757_v52 = vrot.slane %v706_v43, 1  ;;  %v756_v56 = vsel %vm395_vm0, %v754_v46, %v755_v47  ;;  %v983_v59 = vunpack.c.l.bf16 %v2869_v45 }
  0x4a   : > { %v897_v58 = vrot.slane %v846_v9, 2  ;;  %v894_v0 = vrot.slane %v844_v53, 2  ;;  %v984_v1 = vunpack.c.h.bf16 %v2869_v45  ;;  %v1042_v10 = vunpack.c.l.bf16 %v2884_v55 }
  0x4b   : > { %v758_v60 = vsel %vm395_vm0, %v755_v47, %v757_v52  ;;  %v807_v63 = vadd.f32 %v756_v56, %v667_v50  ;;  %v1003_v8 = vmul.f32 %v3445_v16, %v983_v59  ;;  %v1056_v17 = vmul.f32 %v3470_v40, %v983_v59 }
  0x4c   : > { %v808_v5 = vadd.f32 %v758_v60, %v668_v51  ;;  %v898_v6 = vsel %vm536_vm1, %v895_v57, %v897_v58  ;;  %v896_v12 = vsel %vm536_vm1, %v894_v0, %v895_v57  ;;  %v1004_v14 = vmul.f32 %v3445_v16, %v984_v1 }
  0x4d   : > { %v1057_v20 = vmul.f32 %v3470_v40, %v984_v1  ;;  %v947_v21 = vadd.f32 %v896_v12, %v807_v63  ;;  %v1058_v23 = vmul.f32 %v3470_v40, %v1042_v10  ;;  %v1182_v24 = vunpack.c.l.bf16 %v2892_v2 }
  0x4e   : > { %v948_v22 = vadd.f32 %v898_v6, %v808_v5  ;;  %v1106_v27 = vrot.slane %v1056_v17, 1  ;;  %v1197_v29 = vmul.f32 %v3451_v18, %v984_v1  ;;  %v1198_v30 = vmul.f32 %v3451_v18, %v1042_v10 }
  0x4f   : > { %v1107_v28 = vrot.slane %v1057_v20, 1  ;;  %v1019_v31 = vadd.f32 %v1003_v8, %v947_v21  ;;  %v1109_v33 = vrot.slane %v1058_v23, 1  ;;  %v1196_v34 = vmul.f32 %v3451_v18, %v1182_v24  ;;  %v2967_v23 = vld [vmem:[%s3367_s6 + $0x78] sm:$0xe] }
  0x50   : > { %v1020_v32 = vadd.f32 %v1004_v14, %v948_v22  ;;  %v1247_v37 = vrot.slane %v1197_v29, 2  ;;  %v1249_v38 = vrot.slane %v1198_v30, 2  ;;  %v1564_v39 = vunpack.c.l.bf16 %v2912_v26  ;;  %v2959_v14 = vld [vmem:[%s3367_s6 + $0x80] sm:$0x1] }
  0x51   : > { %v1108_v36 = vsel %vm395_vm0, %v1106_v27, %v1107_v28  ;;  %v1110_v41 = vsel %vm395_vm0, %v1107_v28, %v1109_v33  ;;  %v1246_v3 = vrot.slane %v1196_v34, 2  ;;  %v1565_v43 = vunpack.c.h.bf16 %v2912_v26 }
  0x52   : > { %v1159_v42 = vadd.f32 %v1108_v36, %v1019_v31  ;;  %v1160_v45 = vadd.f32 %v1110_v41, %v1020_v32  ;;  %v1250_v46 = vsel %vm536_vm1, %v1247_v37, %v1249_v38  ;;  %v1580_v47 = vmul.f32 %v1564_v39, %v3381_v11 }
  0x53   : > { %v1603_v49 = vunpack.c.l.bf16 %v2927_v35  ;;  %v1248_v9 = vsel %vm536_vm1, %v1246_v3, %v1247_v37  ;;  %v1581_v50 = vmul.f32 %v1565_v43, %v3381_v11  ;;  %v1613_v51 = vmul.f32 %v1564_v39, %v3385_v13  ;;  %v2976_v37 = vld [vmem:[%s3367_s6 + $0x84] sm:$0xff]   ;;  %v2991_v3 = vld [vmem:[%s3367_s6 + $0x8c] sm:$0x1] }
  0x54   : > { %v1614_v52 = vmul.f32 %v1565_v43, %v3385_v13  ;;  %v1299_v53 = vadd.f32 %v1248_v9, %v1159_v42  ;;  %v1300_v55 = vadd.f32 %v1250_v46, %v1160_v45  ;;  %v1739_v57 = vunpack.c.l.bf16 %v2935_v44 }
  0x55   : > { %v1615_v56 = vmul.f32 %v1603_v49, %v3385_v13  ;;  %v1663_v58 = vrot.slane %v1613_v51, 1  ;;  %v1750_v60 = vmul.f32 %v1565_v43, %v3389_v15  ;;  %v1751_v63 = vmul.f32 %v1603_v49, %v3389_v15 }
  0x56   : > { %v1664_v59 = vrot.slane %v1614_v52, 1  ;;  %v1321_v0 = vadd.f32 %v3494_v19, %v1299_v53  ;;  %v1322_v1 = vadd.f32 %v3494_v19, %v1300_v55  ;;  %v1749_v5 = vmul.f32 %v1739_v57, %v3389_v15 }
  0x57   : > { %v1666_v2 = vrot.slane %v1615_v56, 1  ;;  %v1800_v8 = vrot.slane %v1750_v60, 2  ;;  %v1802_v10 = vrot.slane %v1751_v63, 2  ;;  %v1904_v12 = vmul.f32 %v3517_v4, %v3397_v25  ;;  %v2999_v60 = vld [vmem:[%s3367_s6 + $0x84] sm:$0xe] }
  0x58   : > { %v1665_v6 = vsel %vm395_vm0, %v1663_v58, %v1664_v59  ;;  %v1337_v17 = vmax.f32 %v1321_v0, 0.0  ;;  %v1338_v20 = vmax.f32 %v1322_v1, 0.0  ;;  %v1799_v26 = vrot.slane %v1749_v5, 2 }
  0x59   : > { %v1667_v21 = vsel %vm395_vm0, %v1664_v59, %v1666_v2  ;;  %v1716_v22 = vadd.f32 %v1665_v6, %v1580_v47  ;;  %v1803_v27 = vsel %vm536_vm1, %v1800_v8, %v1802_v10  ;;  %v1905_v28 = vmul.f32 %v3520_v7, %v3397_v25 }
  0x5a   : > { %v1717_v24 = vadd.f32 %v1667_v21, %v1581_v50  ;;  %v1352_v29 = vpack.c.bf16 %v1338_v20, %v1337_v17  ;;  %v1943_v30 = vunpack.c.l.bf16 %v2959_v14  ;;  %v1953_v31 = vmul.f32 %v3517_v4, %v3420_v48  ;;  %v329_v21 = vld [vmem:[%s3367_s6 + $0x20] sm:$0x1] }
  0x5b   : > { %v1954_v32 = vmul.f32 %v3520_v7, %v3420_v48  ;;  %v1801_v33 = vsel %vm536_vm1, %v1799_v26, %v1800_v8  ;;  %v2079_v35 = vunpack.c.l.bf16 %v2967_v23  ;;  %v2090_v36 = vmul.f32 %v3520_v7, %v3433_v61 }
  0x5c   : > { %v1853_v34 = vadd.f32 %v1803_v27, %v1717_v24  ;;  %3193 = vmatmul.mubr.bf16.vlgmr.msra.gmra.mrb[0].mxu0 %v1352_v29  ;;  %v1852_v38 = vadd.f32 %v1801_v33, %v1716_v22  ;;  %v1955_v39 = vmul.f32 %v1943_v30, %v3420_v48  ;;  %v2003_v41 = vrot.slane %v1953_v31, 1  ;;  %v470_v31 = vld [vmem:[%s3367_s6 + $0x18] sm:$0xe] }
  0x5d   : > { %v2004_v42 = vrot.slane %v1954_v32, 1  ;;  %v2089_v44 = vmul.f32 %v2079_v35, %v3433_v61  ;;  %v2091_v45 = vmul.f32 %v1943_v30, %v3433_v61  ;;  %v2140_v46 = vrot.slane %v2090_v36, 2 }
  0x5e   : > { %v1921_v43 = vadd.f32 %v1905_v28, %v1853_v34  ;;  %v1920_v47 = vadd.f32 %v1904_v12, %v1852_v38  ;;  %v2006_v9 = vrot.slane %v1955_v39, 1  ;;  %v2228_v50 = vunpack.c.l.bf16 %v2976_v37 }
  0x5f   : > { %v2005_v49 = vsel %vm395_vm0, %v2003_v41, %v2004_v42  ;;  %v2139_v51 = vrot.slane %v2089_v44, 2  ;;  %v2142_v52 = vrot.slane %v2091_v45, 2  ;;  %v2229_v53 = vunpack.c.h.bf16 %v2976_v37 }
  0x60   : > { %v2283_v55 = vunpack.c.l.bf16 %v2991_v3  ;;  %v2007_v56 = vsel %vm395_vm0, %v2004_v42, %v2006_v9  ;;  %v2056_v57 = vadd.f32 %v2005_v49, %v1920_v47  ;;  %v2244_v58 = vmul.f32 %v2228_v50, %v3445_v16  ;;  %v2839_v49 = vld [vmem:[%s3367_s6 + $0x24] sm:$0xff]  }
  0x61   : > { %v2293_v59 = vmul.f32 %v2228_v50, %v3470_v40  ;;  %v2057_v63 = vadd.f32 %v2007_v56, %v1921_v43  ;;  %v2141_v0 = vsel %vm536_vm1, %v2139_v51, %v2140_v46  ;;  %v2143_v1 = vsel %vm536_vm1, %v2140_v46, %v2142_v52 }
  0x62   : > { %v2245_v2 = vmul.f32 %v2229_v53, %v3445_v16  ;;  %v2192_v5 = vadd.f32 %v2141_v0, %v2056_v57  ;;  %v2294_v6 = vmul.f32 %v2229_v53, %v3470_v40  ;;  %v2295_v8 = vmul.f32 %v2283_v55, %v3470_v40 }
  0x63   : > { %v2343_v10 = vrot.slane %v2293_v59, 1  ;;  %v2193_v12 = vadd.f32 %v2143_v1, %v2057_v63  ;;  %v2419_v14 = vunpack.c.l.bf16 %v2999_v60  ;;  %v2430_v17 = vmul.f32 %v3451_v18, %v2229_v53  ;;  %v2853_v60 = vld [vmem:[%s3367_s6 + $0x2c] sm:$0x1] }
  0x64   : > { %v2431_v20 = vmul.f32 %v3451_v18, %v2283_v55  ;;  %v2260_v22 = vadd.f32 %v2244_v58, %v2192_v5  ;;  %v2344_v23 = vrot.slane %v2294_v6, 1  ;;  %v2346_v24 = vrot.slane %v2295_v8, 1 }
  0x65   : > { %v315_v26 = vmul.f32 %v3426_v54, %v3381_v11  ;;  %v2261_v27 = vadd.f32 %v2245_v2, %v2193_v12  ;;  %v2429_v28 = vmul.f32 %v3451_v18, %v2419_v14  ;;  %v2480_v29 = vrot.slane %v2430_v17, 2  ;;  %v2861_v12 = vld [vmem:[%s3367_s6 + $0x24] sm:$0xe] }
  0x66   : > { %v2482_v30 = vrot.slane %v2431_v20, 2  ;;  %v2345_v32 = vsel %vm395_vm0, %v2343_v10, %v2344_v23  ;;  %v2347_v33 = vsel %vm395_vm0, %v2344_v23, %v2346_v24  ;;  %v316_v34 = vmul.f32 %v3435_v62, %v3381_v11 }
  0x67   : > { %v337_v35 = vunpack.c.l.bf16 %v329_v21  ;;  %v2396_v36 = vadd.f32 %v2345_v32, %v2260_v22  ;;  %v2397_v37 = vadd.f32 %v2347_v33, %v2261_v27  ;;  %v2479_v38 = vrot.slane %v2429_v28, 2  ;;  %v3129_v27 = vld [vmem:[%s3367_s6 + $0x30] sm:$0xff]   ;;  %v2885_v32 = vld [vmem:[%s3367_s6 + $0x38] sm:$0x1] }
  0x68   : > { %v2483_v39 = vsel %vm536_vm1, %v2480_v29, %v2482_v30  ;;  %v353_v41 = vmul.f32 %v3426_v54, %v3385_v13  ;;  %v354_v42 = vmul.f32 %v3435_v62, %v3385_v13  ;;  %v478_v43 = vunpack.c.l.bf16 %v470_v31 }
  0x69   : > { %v355_v3 = vmul.f32 %v3385_v13, %v337_v35  ;;  %v2481_v44 = vsel %vm536_vm1, %v2479_v38, %v2480_v29  ;;  %v2533_v45 = vadd.f32 %v2483_v39, %v2397_v37  ;;  %v495_v46 = vmul.f32 %v3435_v62, %v3389_v15 }
  0x6a   : > { %v496_v47 = vmul.f32 %v3389_v15, %v337_v35  ;;  %v2532_v9 = vadd.f32 %v2481_v44, %v2396_v36  ;;  %v406_v50 = vrot.slane %v353_v41, 1  ;;  %v407_v51 = vrot.slane %v354_v42, 1 }
  0x6b   : > { %v409_v54 = vrot.slane %v355_v3, 1  ;;  %v2549_v52 = vadd.f32 %v3494_v19, %v2533_v45  ;;  %v494_v53 = vmul.f32 %v3389_v15, %v478_v43  ;;  %v548_v55 = vrot.slane %v495_v46, 2  ;;  %v2893_v45 = vld [vmem:[%s3367_s6 + $0x30] sm:$0xe] }
  0x6c   : > { %v550_v56 = vrot.slane %v496_v47, 2  ;;  %v2548_v57 = vadd.f32 %v3494_v19, %v2532_v9  ;;  %v408_v58 = vsel %vm395_vm0, %v406_v50, %v407_v51  ;;  %v633_v59 = vunpack.c.l.bf16 %v2839_v49 }
  0x6d   : > { %v410_v62 = vsel %vm395_vm0, %v407_v51, %v409_v54  ;;  %v2565_v63 = vmax.f32 %v2549_v52, 0.0  ;;  %v456_v0 = vadd.f32 %v408_v58, %v315_v26  ;;  %v547_v2 = vrot.slane %v494_v53, 2 }
  0x6e   : > { %v457_v1 = vadd.f32 %v410_v62, %v316_v34  ;;  %v2564_v5 = vmax.f32 %v2548_v57, 0.0  ;;  %v551_v6 = vsel %vm536_vm1, %v548_v55, %v550_v56  ;;  %v634_v8 = vunpack.c.h.bf16 %v2839_v49 }
  0x6f   : > { %v653_v10 = vmul.f32 %v3397_v25, %v633_v59  ;;  %v549_v14 = vsel %vm536_vm1, %v547_v2, %v548_v55  ;;  %v691_v20 = vunpack.c.l.bf16 %v2853_v60  ;;  %v707_v21 = vmul.f32 %v3420_v48, %v633_v59 }
  0x70   : > { %v598_v17 = vadd.f32 %v551_v6, %v457_v1  ;;  %v2579_v22 = vpack.c.bf16 %v2565_v63, %v2564_v5  ;;  %v597_v23 = vadd.f32 %v549_v14, %v456_v0  ;;  %v654_v24 = vmul.f32 %v3397_v25, %v634_v8  ;;  %v2928_v5 = vld [vmem:[%s3367_s6 + $0x80] sm:$0x1] }
  0x71   : > { %v708_v26 = vmul.f32 %v3420_v48, %v634_v8  ;;  %v709_v28 = vmul.f32 %v3420_v48, %v691_v20  ;;  %v759_v29 = vrot.slane %v707_v21, 1  ;;  %v831_v30 = vunpack.c.l.bf16 %v2861_v12 }
  0x72   : > { %v848_v31 = vmul.f32 %v3433_v61, %v634_v8  ;;  %3225 = vmatmul.mubr.bf16.vlgmr.msra.gmra.mrb[0].mxu1 %v2579_v22  ;;  %v669_v33 = vadd.f32 %v653_v10, %v597_v23  ;;  %v670_v34 = vadd.f32 %v654_v24, %v598_v17  ;;  %v849_v36 = vmul.f32 %v3433_v61, %v691_v20  ;;  %v2936_v22 = vld [vmem:[%s3367_s6 + $0x78] sm:$0xe] }
  0x73   : > { %v760_v35 = vrot.slane %v708_v26, 1  ;;  %v762_v37 = vrot.slane %v709_v28, 1  ;;  %v847_v38 = vmul.f32 %v3433_v61, %v831_v30  ;;  %v3679_v41 = vunpack.c.l.bf16 %v3129_v27 }
  0x74   : > { %v900_v39 = vrot.slane %v848_v31, 2  ;;  %v902_v3 = vrot.slane %v849_v36, 2  ;;  %v3682_v43 = vunpack.c.h.bf16 %v3129_v27  ;;  %v1043_v44 = vunpack.c.l.bf16 %v2885_v32  ;;  %v2946_v36 = vld [vmem:[%s3367_s6 + $0x84] sm:$0xff]  }
  0x75   : > { %v761_v42 = vsel %vm395_vm0, %v759_v29, %v760_v35  ;;  %v763_v46 = vsel %vm395_vm0, %v760_v35, %v762_v37  ;;  %v899_v49 = vrot.slane %v847_v38, 2  ;;  %v1005_v9 = vmul.f32 %v3679_v41, %v3445_v16 }
  0x76   : > { %v809_v47 = vadd.f32 %v761_v42, %v669_v33  ;;  %v810_v50 = vadd.f32 %v763_v46, %v670_v34  ;;  %v903_v51 = vsel %vm536_vm1, %v900_v39, %v902_v3  ;;  %v1006_v54 = vmul.f32 %v3682_v43, %v3445_v16 }
  0x77   : > { %v1059_v52 = vmul.f32 %v3679_v41, %v3470_v40  ;;  %v901_v53 = vsel %vm536_vm1, %v899_v49, %v900_v39  ;;  %v1060_v55 = vmul.f32 %v3682_v43, %v3470_v40  ;;  %v1061_v56 = vmul.f32 %v3470_v40, %v1043_v44 }
  0x78   : > { %v1183_v57 = vunpack.c.l.bf16 %v2893_v45  ;;  %v949_v58 = vadd.f32 %v901_v53, %v809_v47  ;;  %v950_v62 = vadd.f32 %v903_v51, %v810_v50  ;;  %v1200_v60 = vmul.f32 %v3682_v43, %v3451_v18  ;;  %v2960_v50 = vld [vmem:[%s3367_s6 + $0x8c] sm:$0x1] }
  0x79   : > { %v1111_v59 = vrot.slane %v1059_v52, 1  ;;  %v1112_v63 = vrot.slane %v1060_v55, 1  ;;  %v1114_v0 = vrot.slane %v1061_v56, 1  ;;  %v1201_v2 = vmul.f32 %v3451_v18, %v1043_v44 }
  0x7a   : > { %v1199_v1 = vmul.f32 %v3451_v18, %v1183_v57  ;;  %v1021_v6 = vadd.f32 %v1005_v9, %v949_v58  ;;  %v1022_v8 = vadd.f32 %v1006_v54, %v950_v62  ;;  %v1252_v10 = vrot.slane %v1200_v60, 2  ;;  %v2968_v58 = vld [vmem:[%s3367_s6 + $0x84] sm:$0xe] }
  0x7b   : > { %v1582_v12 = vmul.f32 %v3517_v4, %v3381_v11  ;;  %v1113_v14 = vsel %vm395_vm0, %v1111_v59, %v1112_v63  ;;  %v1115_v17 = vsel %vm395_vm0, %v1112_v63, %v1114_v0  ;;  %v1254_v21 = vrot.slane %v1201_v2, 2 }
  0x7c   : > { %v1251_v20 = vrot.slane %v1199_v1, 2  ;;  %v1161_v23 = vadd.f32 %v1113_v14, %v1021_v6  ;;  %v1162_v24 = vadd.f32 %v1115_v17, %v1022_v8  ;;  %v1583_v26 = vmul.f32 %v3520_v7, %v3381_v11  ;;  %v3141_v6 = vld [vmem:[%s3367_s6 + $0x90] sm:$0xff]  }
  0x7d   : > { %v1604_v27 = vunpack.c.l.bf16 %v2928_v5  ;;  %v1255_v29 = vsel %vm536_vm1, %v1252_v10, %v1254_v21  ;;  %v1616_v30 = vmul.f32 %v3517_v4, %v3385_v13  ;;  %v1617_v31 = vmul.f32 %v3520_v7, %v3385_v13 }
  0x7e   : > { %v1253_v28 = vsel %vm536_vm1, %v1251_v20, %v1252_v10  ;;  %v1302_v33 = vadd.f32 %v1255_v29, %v1162_v24  ;;  %v1740_v35 = vunpack.c.l.bf16 %v2936_v22  ;;  %v1753_v39 = vmul.f32 %v3520_v7, %v3389_v15 }
  0x7f   : > { %v1301_v32 = vadd.f32 %v1253_v28, %v1161_v23  ;;  %v1618_v34 = vmul.f32 %v1604_v27, %v3385_v13  ;;  %v1668_v37 = vrot.slane %v1616_v30, 1  ;;  %v1669_v38 = vrot.slane %v1617_v31, 1  ;;  %v2992_v28 = vld [vmem:[%s3367_s6 + $0x98] sm:$0x1] }
  0x80   : > { %v1754_v42 = vmul.f32 %v1604_v27, %v3389_v15  ;;  %v1324_v4 = vadd.f32 %v3494_v19, %v1302_v33  ;;  %v1752_v45 = vmul.f32 %v1740_v35, %v3389_v15  ;;  %v1805_v47 = vrot.slane %v1753_v39, 2  ;;  %v3000_v33 = vld [vmem:[%s3367_s6 + $0x90] sm:$0xe] }
  0x81   : > { %v1323_v3 = vadd.f32 %v3494_v19, %v1301_v32  ;;  %v1671_v44 = vrot.slane %v1618_v34, 1  ;;  %v1670_v46 = vsel %vm395_vm0, %v1668_v37, %v1669_v38  ;;  %v1890_v9 = vunpack.c.l.bf16 %v2946_v36 }
  0x82   : > { %v1807_v49 = vrot.slane %v1754_v42, 2  ;;  %v1340_v54 = vmax.f32 %v1324_v4, 0.0  ;;  %v1718_v52 = vadd.f32 %v1670_v46, %v1582_v12  ;;  %v1804_v55 = vrot.slane %v1752_v45, 2 }
  0x83   : > { %v1339_v51 = vmax.f32 %v1323_v3, 0.0  ;;  %v1672_v7 = vsel %vm395_vm0, %v1669_v38, %v1671_v44  ;;  %v1891_v57 = vunpack.c.h.bf16 %v2946_v36  ;;  %v1906_v59 = vmul.f32 %v1890_v9, %v3397_v25 }
  0x84   : > { %v1719_v53 = vadd.f32 %v1672_v7, %v1583_v26  ;;  %v1808_v56 = vsel %vm536_vm1, %v1805_v47, %v1807_v49  ;;  %v1944_v60 = vunpack.c.l.bf16 %v2960_v50  ;;  %v1956_v63 = vmul.f32 %v1890_v9, %v3420_v48 }
  0x85   : > { %v1353_v62 = vpack.c.bf16 %v1340_v54, %v1339_v51  ;;  %v1806_v0 = vsel %vm536_vm1, %v1804_v55, %v1805_v47  ;;  %v1907_v2 = vmul.f32 %v1891_v57, %v3397_v25  ;;  %v1957_v5 = vmul.f32 %v1891_v57, %v3420_v48  ;;  %v281_v51 = vld [vmem:[%s3367_s6 + $0x24] sm:$0xff]   ;;  %v330_v55 = vld [vmem:[%s3367_s6 + $0x2c] sm:$0x1] }
  0x86   : > { %v1855_v1 = vadd.f32 %v1808_v56, %v1719_v53  ;;  %v1854_v8 = vadd.f32 %v1806_v0, %v1718_v52  ;;  %v1958_v10 = vmul.f32 %v1944_v60, %v3420_v48  ;;  %v2008_v12 = vrot.slane %v1956_v63, 1 }
  0x87   : > { %3196 = vmatprep.mubr.bf16.mxu0 %v1353_v62  ;;  %v2080_v14 = vunpack.c.l.bf16 %v2968_v58  ;;  %v2009_v20 = vrot.slane %v1957_v5, 1  ;;  %v2093_v21 = vmul.f32 %v1891_v57, %v3433_v61  ;;  %v2094_v22 = vmul.f32 %v1944_v60, %v3433_v61 }
  0x88   : > { %v1923_v17 = vadd.f32 %v1907_v2, %v1855_v1  ;;  %v1922_v23 = vadd.f32 %v1906_v59, %v1854_v8  ;;  %v2011_v24 = vrot.slane %v1958_v10, 1  ;;  %v3738_v27 = vunpack.c.l.bf16 %v3141_v6  ;;  %v471_v8 = vld [vmem:[%s3367_s6 + $0x24] sm:$0xe] }
  0x89   : > { %v2092_v26 = vmul.f32 %v2080_v14, %v3433_v61  ;;  %v2010_v29 = vsel %vm395_vm0, %v2008_v12, %v2009_v20  ;;  %v2145_v30 = vrot.slane %v2093_v21, 2  ;;  %v2147_v31 = vrot.slane %v2094_v22, 2 }
  0x8a   : > { %v3742_v32 = vunpack.c.h.bf16 %v3141_v6  ;;  %v2012_v34 = vsel %vm395_vm0, %v2009_v20, %v2011_v24  ;;  %v2058_v35 = vadd.f32 %v2010_v29, %v1922_v23  ;;  %v2246_v37 = vmul.f32 %v3738_v27, %v3445_v16 }
  0x8b   : > { %v2144_v36 = vrot.slane %v2092_v26, 2  ;;  %v2059_v38 = vadd.f32 %v2012_v34, %v1923_v17  ;;  %v2148_v39 = vsel %vm536_vm1, %v2145_v30, %v2147_v31  ;;  %v2284_v3 = vunpack.c.l.bf16 %v2992_v28 }
  0x8c   : > { %v2247_v42 = vmul.f32 %v3742_v32, %v3445_v16  ;;  %v2296_v44 = vmul.f32 %v3738_v27, %v3470_v40  ;;  %v2297_v45 = vmul.f32 %v3742_v32, %v3470_v40  ;;  %v2420_v46 = vunpack.c.l.bf16 %v3000_v33 }
  0x8d   : > { %v2146_v4 = vsel %vm536_vm1, %v2144_v36, %v2145_v30  ;;  %v2195_v49 = vadd.f32 %v2148_v39, %v2059_v38  ;;  %v2298_v9 = vmul.f32 %v2284_v3, %v3470_v40  ;;  %v2433_v50 = vmul.f32 %v3742_v32, %v3451_v18  ;;  %v2854_v38 = vld [vmem:[%s3367_s6 + $0x38] sm:$0x1] }
  0x8e   : > { %v2194_v47 = vadd.f32 %v2146_v4, %v2058_v35  ;;  %v2348_v54 = vrot.slane %v2296_v44, 1  ;;  %v2349_v7 = vrot.slane %v2297_v45, 1  ;;  %v2432_v52 = vmul.f32 %v3451_v18, %v2420_v46 }
  0x8f   : > { %v2434_v53 = vmul.f32 %v3451_v18, %v2284_v3  ;;  %v2263_v57 = vadd.f32 %v2247_v42, %v2195_v49  ;;  %v2351_v58 = vrot.slane %v2298_v9, 1  ;;  %v2485_v62 = vrot.slane %v2433_v50, 2  ;;  %v2862_v49 = vld [vmem:[%s3367_s6 + $0x30] sm:$0xe] }
  0x90   : > { %v2262_v56 = vadd.f32 %v2246_v37, %v2194_v47  ;;  %v2350_v59 = vsel %vm395_vm0, %v2348_v54, %v2349_v7  ;;  %v2484_v60 = vrot.slane %v2432_v52, 2  ;;  %v297_v0 = vunpack.c.l.bf16 %v281_v51 }
  0x91   : > { %v2487_v63 = vrot.slane %v2434_v53, 2  ;;  %v2352_v1 = vsel %vm395_vm0, %v2349_v7, %v2351_v58  ;;  %v298_v5 = vunpack.c.h.bf16 %v281_v51  ;;  %v338_v6 = vunpack.c.l.bf16 %v330_v55 }
  0x92   : > { %v2398_v2 = vadd.f32 %v2350_v59, %v2262_v56  ;;  %v2399_v10 = vadd.f32 %v2352_v1, %v2263_v57  ;;  %v2486_v12 = vsel %vm536_vm1, %v2484_v60, %v2485_v62  ;;  %v317_v14 = vmul.f32 %v3381_v11, %v297_v0 }
  0x93   : > { %v2488_v18 = vsel %vm536_vm1, %v2485_v62, %v2487_v63  ;;  %v318_v20 = vmul.f32 %v3381_v11, %v298_v5  ;;  %v356_v21 = vmul.f32 %v3385_v13, %v297_v0  ;;  %v357_v22 = vmul.f32 %v3385_v13, %v298_v5  ;;  %v2873_v62 = vld [vmem:[%s3367_s6 + $0x3c] sm:$0xff]  }
  0x94   : > { %v2534_v17 = vadd.f32 %v2486_v12, %v2398_v2  ;;  %v2535_v23 = vadd.f32 %v2488_v18, %v2399_v10  ;;  %v358_v24 = vmul.f32 %v3385_v13, %v338_v6  ;;  %v479_v26 = vunpack.c.l.bf16 %v471_v8  ;;  %v2886_v8 = vld [vmem:[%s3367_s6 + $0x44] sm:$0x1] }
  0x95   : > { %v498_v28 = vmul.f32 %v3389_v15, %v298_v5  ;;  %v411_v30 = vrot.slane %v356_v21, 1  ;;  %v412_v31 = vrot.slane %v357_v22, 1  ;;  %v499_v33 = vmul.f32 %v3389_v15, %v338_v6 }
  0x96   : > { %v2550_v29 = vadd.f32 %v3494_v19, %v2534_v17  ;;  %v2551_v34 = vadd.f32 %v3494_v19, %v2535_v23  ;;  %v414_v35 = vrot.slane %v358_v24, 1  ;;  %v497_v36 = vmul.f32 %v3389_v15, %v479_v26  ;;  %v2894_v23 = vld [vmem:[%s3367_s6 + $0x3c] sm:$0xe] }
  0x97   : > { %v553_v37 = vrot.slane %v498_v28, 2  ;;  %v413_v42 = vsel %vm395_vm0, %v411_v30, %v412_v31  ;;  %v555_v3 = vrot.slane %v499_v33, 2  ;;  %v655_v4 = vmul.f32 %v3679_v41, %v3397_v25 }
  0x98   : > { %v2566_v39 = vmax.f32 %v2550_v29, 0.0  ;;  %v2567_v44 = vmax.f32 %v2551_v34, 0.0  ;;  %v415_v45 = vsel %vm395_vm0, %v412_v31, %v414_v35  ;;  %v458_v46 = vadd.f32 %v413_v42, %v317_v14 }
  0x99   : > { %v552_v47 = vrot.slane %v497_v36, 2  ;;  %v459_v19 = vadd.f32 %v415_v45, %v318_v20  ;;  %v556_v9 = vsel %vm536_vm1, %v553_v37, %v555_v3  ;;  %v656_v50 = vmul.f32 %v3682_v43, %v3397_v25 }
  0x9a   : > { %v692_v51 = vunpack.c.l.bf16 %v2854_v38  ;;  %v2580_v54 = vpack.c.bf16 %v2567_v44, %v2566_v39  ;;  %v710_v52 = vmul.f32 %v3679_v41, %v3420_v48  ;;  %v711_v53 = vmul.f32 %v3682_v43, %v3420_v48  ;;  %v2916_v39 = vld [vmem:[%s3367_s6 + $0x84] sm:$0xff]  }
  0x9b   : > { %v554_v7 = vsel %vm536_vm1, %v552_v47, %v553_v37  ;;  %v600_v56 = vadd.f32 %v556_v9, %v459_v19  ;;  %v832_v58 = vunpack.c.l.bf16 %v2862_v49  ;;  %v851_v63 = vmul.f32 %v3682_v43, %v3433_v61  ;;  %v2929_v9 = vld [vmem:[%s3367_s6 + $0x8c] sm:$0x1] }
  0x9c   : > { %v599_v55 = vadd.f32 %v554_v7, %v458_v46  ;;  %v712_v57 = vmul.f32 %v3420_v48, %v692_v51  ;;  %3228 = vmatprep.mubr.bf16.mxu1 %v2580_v54  ;;  %v764_v59 = vrot.slane %v710_v52, 1  ;;  %v765_v60 = vrot.slane %v711_v53, 1 }
  0x9d   : > { %v852_v0 = vmul.f32 %v3433_v61, %v692_v51  ;;  %v672_v2 = vadd.f32 %v656_v50, %v600_v56  ;;  %v850_v6 = vmul.f32 %v3433_v61, %v832_v58  ;;  %v905_v12 = vrot.slane %v851_v63, 2 }
  0x9e   : > { %v671_v1 = vadd.f32 %v655_v4, %v599_v55  ;;  %v767_v5 = vrot.slane %v712_v57, 1  ;;  %v766_v10 = vsel %vm395_vm0, %v764_v59, %v765_v60  ;;  %v987_v14 = vunpack.c.l.bf16 %v2873_v62  ;;  %v3813_v4 = vld [vmem:[%s4442_s1 + $0x8] ss:$0 sm:$0xff]  ;;  %v2937_v57 = vld [vmem:[%s3367_s6 + $0x84] sm:$0xe] }
  0x9f   : > { %v907_v18 = vrot.slane %v852_v0, 2  ;;  %v904_v21 = vrot.slane %v850_v6, 2  ;;  %v988_v22 = vunpack.c.h.bf16 %v2873_v62  ;;  %v1044_v29 = vunpack.c.l.bf16 %v2886_v8 }
  0xa0   : > { %v768_v17 = vsel %vm395_vm0, %v765_v60, %v767_v5  ;;  %v811_v20 = vadd.f32 %v766_v10, %v671_v1  ;;  %v1007_v28 = vmul.f32 %v3445_v16, %v987_v14  ;;  %v1062_v33 = vmul.f32 %v3470_v40, %v987_v14 }
  0xa1   : > { %v812_v24 = vadd.f32 %v768_v17, %v672_v2  ;;  %v908_v26 = vsel %vm536_vm1, %v905_v12, %v907_v18  ;;  %v906_v30 = vsel %vm536_vm1, %v904_v21, %v905_v12  ;;  %v1008_v31 = vmul.f32 %v3445_v16, %v988_v22 }
  0xa2   : > { %v1063_v34 = vmul.f32 %v3470_v40, %v988_v22  ;;  %v951_v35 = vadd.f32 %v906_v30, %v811_v20  ;;  %v1064_v37 = vmul.f32 %v3470_v40, %v1044_v29  ;;  %v1184_v38 = vunpack.c.l.bf16 %v2894_v23  ;;  %v3834_v20 = vld [vmem:[%s4443_s2] ss:$0 sm:$0xff] }
  0xa3   : > { %v952_v36 = vadd.f32 %v908_v26, %v812_v24  ;;  %v1116_v42 = vrot.slane %v1062_v33, 1  ;;  %v1203_v44 = vmul.f32 %v3813_v4, %v988_v22  ;;  %v1204_v45 = vmul.f32 %v3813_v4, %v1044_v29 }
  0xa4   : > { %v1117_v3 = vrot.slane %v1063_v34, 1  ;;  %v1023_v46 = vadd.f32 %v1007_v28, %v951_v35  ;;  %v1119_v49 = vrot.slane %v1064_v37, 1  ;;  %v1202_v19 = vmul.f32 %v3813_v4, %v1184_v38  ;;  %v2969_v37 = vld [vmem:[%s3367_s6 + $0x90] sm:$0xe] }
  0xa5   : > { %v1024_v47 = vadd.f32 %v1008_v31, %v952_v36  ;;  %v1257_v51 = vrot.slane %v1203_v44, 2  ;;  %v1259_v54 = vrot.slane %v1204_v45, 2  ;;  %v1568_v7 = vunpack.c.l.bf16 %v2916_v39  ;;  %v2961_v31 = vld [vmem:[%s3367_s6 + $0x98] sm:$0x1] }
  0xa6   : > { %v1118_v50 = vsel %vm395_vm0, %v1116_v42, %v1117_v3  ;;  %v1120_v52 = vsel %vm395_vm0, %v1117_v3, %v1119_v49  ;;  %v1256_v55 = vrot.slane %v1202_v19, 2  ;;  %v1569_v56 = vunpack.c.h.bf16 %v2916_v39 }
  0xa7   : > { %v1163_v53 = vadd.f32 %v1118_v50, %v1023_v46  ;;  %v1164_v58 = vadd.f32 %v1120_v52, %v1024_v47  ;;  %v1260_v62 = vsel %vm536_vm1, %v1257_v51, %v1259_v54  ;;  %v1584_v59 = vmul.f32 %v1568_v7, %v3381_v11 }
  0xa8   : > { %v1605_v60 = vunpack.c.l.bf16 %v2929_v9  ;;  %v1258_v63 = vsel %vm536_vm1, %v1256_v55, %v1257_v51  ;;  %v1585_v0 = vmul.f32 %v1569_v56, %v3381_v11  ;;  %v1619_v1 = vmul.f32 %v1568_v7, %v3385_v13  ;;  %v2980_v51 = vld [vmem:[%s3367_s6 + $0x9c] sm:$0xff]   ;;  %v2993_v55 = vld [vmem:[%s3367_s6 + $0xa4] sm:$0x1] }
  0xa9   : > { %v1620_v2 = vmul.f32 %v1569_v56, %v3385_v13  ;;  %v1303_v5 = vadd.f32 %v1258_v63, %v1163_v53  ;;  %v1304_v6 = vadd.f32 %v1260_v62, %v1164_v58  ;;  %v1741_v10 = vunpack.c.l.bf16 %v2937_v57 }
  0xaa   : > { %v1621_v8 = vmul.f32 %v1605_v60, %v3385_v13  ;;  %v1673_v12 = vrot.slane %v1619_v1, 1  ;;  %v1756_v14 = vmul.f32 %v1569_v56, %v3389_v15  ;;  %v1757_v17 = vmul.f32 %v1605_v60, %v3389_v15 }
  0xab   : > { %v1674_v18 = vrot.slane %v1620_v2, 1  ;;  %v1325_v21 = vadd.f32 %v3834_v20, %v1303_v5  ;;  %v1326_v22 = vadd.f32 %v3834_v20, %v1304_v6  ;;  %v1755_v24 = vmul.f32 %v1741_v10, %v3389_v15 }
  0xac   : > { %v1676_v23 = vrot.slane %v1621_v8, 1  ;;  %v1810_v28 = vrot.slane %v1756_v14, 2  ;;  %v1812_v29 = vrot.slane %v1757_v17, 2  ;;  %v1908_v30 = vmul.f32 %v3738_v27, %v3397_v25  ;;  %v3001_v14 = vld [vmem:[%s3367_s6 + $0x9c] sm:$0xe] }
  0xad   : > { %v1675_v26 = vsel %vm395_vm0, %v1673_v12, %v1674_v18  ;;  %v1341_v33 = vmax.f32 %v1325_v21, 0.0  ;;  %v1342_v34 = vmax.f32 %v1326_v22, 0.0  ;;  %v1809_v39 = vrot.slane %v1755_v24, 2 }
  0xae   : > { %v1677_v35 = vsel %vm395_vm0, %v1674_v18, %v1676_v23  ;;  %v1720_v36 = vadd.f32 %v1675_v26, %v1584_v59  ;;  %v1813_v42 = vsel %vm536_vm1, %v1810_v28, %v1812_v29  ;;  %v1909_v3 = vmul.f32 %v3742_v32, %v3397_v25 }
  0xaf   : > { %v1721_v38 = vadd.f32 %v1677_v35, %v1585_v0  ;;  %v1354_v44 = vpack.c.bf16 %v1342_v34, %v1341_v33  ;;  %v1945_v45 = vunpack.c.l.bf16 %v2961_v31  ;;  %v1959_v46 = vmul.f32 %v3738_v27, %v3420_v48  ;;  %v331_v35 = vld [vmem:[%s3367_s6 + $0x38] sm:$0x1] }
  0xb0   : > { %v1960_v47 = vmul.f32 %v3742_v32, %v3420_v48  ;;  %v1811_v49 = vsel %vm536_vm1, %v1809_v39, %v1810_v28  ;;  %v2081_v9 = vunpack.c.l.bf16 %v2969_v37  ;;  %v2096_v50 = vmul.f32 %v3742_v32, %v3433_v61 }
  0xb1   : > { %v1857_v19 = vadd.f32 %v1813_v42, %v1721_v38  ;;  %3197 = vmatmul.mubr.bf16.gmra.mrb[4].mxu0 %v1354_v44  ;;  %v1856_v54 = vadd.f32 %v1811_v49, %v1720_v36  ;;  %v1961_v7 = vmul.f32 %v1945_v45, %v3420_v48  ;;  %v2013_v52 = vrot.slane %v1959_v46, 1  ;;  %v472_v46 = vld [vmem:[%s3367_s6 + $0x30] sm:$0xe] }
  0xb2   : > { %v2014_v53 = vrot.slane %v1960_v47, 1  ;;  %v2095_v57 = vmul.f32 %v2081_v9, %v3433_v61  ;;  %v2097_v58 = vmul.f32 %v1945_v45, %v3433_v61  ;;  %v2150_v62 = vrot.slane %v2096_v50, 2 }
  0xb3   : > { %v1925_v56 = vadd.f32 %v1909_v3, %v1857_v19  ;;  %v1924_v59 = vadd.f32 %v1908_v30, %v1856_v54  ;;  %v2016_v63 = vrot.slane %v1961_v7, 1  ;;  %v2232_v0 = vunpack.c.l.bf16 %v2980_v51 }
  0xb4   : > { %v2015_v60 = vsel %vm395_vm0, %v2013_v52, %v2014_v53  ;;  %v2149_v1 = vrot.slane %v2095_v57, 2  ;;  %v2152_v2 = vrot.slane %v2097_v58, 2  ;;  %v2233_v5 = vunpack.c.h.bf16 %v2980_v51 }
  0xb5   : > { %v2285_v6 = vunpack.c.l.bf16 %v2993_v55  ;;  %v2017_v8 = vsel %vm395_vm0, %v2014_v53, %v2016_v63  ;;  %v2060_v10 = vadd.f32 %v2015_v60, %v1924_v59  ;;  %v2248_v12 = vmul.f32 %v2232_v0, %v3445_v16  ;;  %v2843_v60 = vld [vmem:[%s3367_s6 + $0x3c] sm:$0xff]  }
  0xb6   : > { %v2299_v18 = vmul.f32 %v2232_v0, %v3470_v40  ;;  %v2061_v17 = vadd.f32 %v2017_v8, %v1925_v56  ;;  %v2151_v21 = vsel %vm536_vm1, %v2149_v1, %v2150_v62  ;;  %v2153_v22 = vsel %vm536_vm1, %v2150_v62, %v2152_v2 }
  0xb7   : > { %v2249_v23 = vmul.f32 %v2233_v5, %v3445_v16  ;;  %v2196_v24 = vadd.f32 %v2151_v21, %v2060_v10  ;;  %v2300_v26 = vmul.f32 %v2233_v5, %v3470_v40  ;;  %v2301_v28 = vmul.f32 %v2285_v6, %v3470_v40 }
  0xb8   : > { %v2353_v29 = vrot.slane %v2299_v18, 1  ;;  %v2197_v30 = vadd.f32 %v2153_v22, %v2061_v17  ;;  %v2421_v31 = vunpack.c.l.bf16 %v3001_v14  ;;  %v2436_v33 = vmul.f32 %v3813_v4, %v2233_v5  ;;  %v2855_v14 = vld [vmem:[%s3367_s6 + $0x44] sm:$0x1] }
  0xb9   : > { %v2437_v34 = vmul.f32 %v3813_v4, %v2285_v6  ;;  %v2264_v36 = vadd.f32 %v2248_v12, %v2196_v24  ;;  %v2354_v37 = vrot.slane %v2300_v26, 1  ;;  %v2356_v38 = vrot.slane %v2301_v28, 1 }
  0xba   : > { %v319_v39 = vmul.f32 %v3679_v41, %v3381_v11  ;;  %v2265_v42 = vadd.f32 %v2249_v23, %v2197_v30  ;;  %v2435_v3 = vmul.f32 %v3813_v4, %v2421_v31  ;;  %v2490_v44 = vrot.slane %v2436_v33, 2  ;;  %v2863_v30 = vld [vmem:[%s3367_s6 + $0x3c] sm:$0xe] }
  0xbb   : > { %v2492_v45 = vrot.slane %v2437_v34, 2  ;;  %v2355_v47 = vsel %vm395_vm0, %v2353_v29, %v2354_v37  ;;  %v2357_v49 = vsel %vm395_vm0, %v2354_v37, %v2356_v38  ;;  %v320_v19 = vmul.f32 %v3682_v43, %v3381_v11 }
  0xbc   : > { %v339_v9 = vunpack.c.l.bf16 %v331_v35  ;;  %v2400_v50 = vadd.f32 %v2355_v47, %v2264_v36  ;;  %v2401_v51 = vadd.f32 %v2357_v49, %v2265_v42  ;;  %v2489_v54 = vrot.slane %v2435_v3, 2  ;;  %v3130_v42 = vld [vmem:[%s3367_s6 + $0x48] sm:$0xff]   ;;  %v2887_v47 = vld [vmem:[%s3367_s6 + $0x50] sm:$0x1] }
  0xbd   : > { %v2493_v7 = vsel %vm536_vm1, %v2490_v44, %v2492_v45  ;;  %v359_v52 = vmul.f32 %v3679_v41, %v3385_v13  ;;  %v360_v53 = vmul.f32 %v3682_v43, %v3385_v13  ;;  %v480_v56 = vunpack.c.l.bf16 %v472_v46 }
  0xbe   : > { %v361_v55 = vmul.f32 %v3385_v13, %v339_v9  ;;  %v2491_v57 = vsel %vm536_vm1, %v2489_v54, %v2490_v44  ;;  %v2537_v58 = vadd.f32 %v2493_v7, %v2401_v51  ;;  %v501_v62 = vmul.f32 %v3682_v43, %v3389_v15 }
  0xbf   : > { %v502_v59 = vmul.f32 %v3389_v15, %v339_v9  ;;  %v2536_v63 = vadd.f32 %v2491_v57, %v2400_v50  ;;  %v416_v0 = vrot.slane %v359_v52, 1  ;;  %v417_v1 = vrot.slane %v360_v53, 1 }
  0xc0   : > { %v419_v41 = vrot.slane %v361_v55, 1  ;;  %v2553_v2 = vadd.f32 %v3834_v20, %v2537_v58  ;;  %v500_v5 = vmul.f32 %v3389_v15, %v480_v56  ;;  %v558_v6 = vrot.slane %v501_v62, 2  ;;  %v2895_v58 = vld [vmem:[%s3367_s6 + $0x48] sm:$0xe] }
  0xc1   : > { %v560_v8 = vrot.slane %v502_v59, 2  ;;  %v2552_v10 = vadd.f32 %v3834_v20, %v2536_v63  ;;  %v418_v12 = vsel %vm395_vm0, %v416_v0, %v417_v1  ;;  %v637_v18 = vunpack.c.l.bf16 %v2843_v60 }
  0xc2   : > { %v420_v43 = vsel %vm395_vm0, %v417_v1, %v419_v41  ;;  %v2569_v17 = vmax.f32 %v2553_v2, 0.0  ;;  %v460_v21 = vadd.f32 %v418_v12, %v319_v39  ;;  %v557_v23 = vrot.slane %v500_v5, 2 }
  0xc3   : > { %v461_v22 = vadd.f32 %v420_v43, %v320_v19  ;;  %v2568_v24 = vmax.f32 %v2552_v10, 0.0  ;;  %v561_v26 = vsel %vm536_vm1, %v558_v6, %v560_v8  ;;  %v638_v28 = vunpack.c.h.bf16 %v2843_v60 }
  0xc4   : > { %v657_v29 = vmul.f32 %v3397_v25, %v637_v18  ;;  %v559_v31 = vsel %vm536_vm1, %v557_v23, %v558_v6  ;;  %v693_v34 = vunpack.c.l.bf16 %v2855_v14  ;;  %v713_v35 = vmul.f32 %v3420_v48, %v637_v18 }
  0xc5   : > { %v602_v33 = vadd.f32 %v561_v26, %v461_v22  ;;  %v2581_v36 = vpack.c.bf16 %v2569_v17, %v2568_v24  ;;  %v601_v37 = vadd.f32 %v559_v31, %v460_v21  ;;  %v658_v38 = vmul.f32 %v3397_v25, %v638_v28  ;;  %v2930_v24 = vld [vmem:[%s3367_s6 + $0x98] sm:$0x1] }
  0xc6   : > { %v714_v39 = vmul.f32 %v3420_v48, %v638_v28  ;;  %v715_v3 = vmul.f32 %v3420_v48, %v693_v34  ;;  %v769_v44 = vrot.slane %v713_v35, 1  ;;  %v833_v45 = vunpack.c.l.bf16 %v2863_v30 }
  0xc7   : > { %v854_v46 = vmul.f32 %v3433_v61, %v638_v28  ;;  %3229 = vmatmul.mubr.bf16.gmra.mrb[4].mxu1 %v2581_v36  ;;  %v673_v49 = vadd.f32 %v657_v29, %v601_v37  ;;  %v674_v19 = vadd.f32 %v658_v38, %v602_v33  ;;  %v855_v50 = vmul.f32 %v3433_v61, %v693_v34  ;;  %v2938_v36 = vld [vmem:[%s3367_s6 + $0x90] sm:$0xe] }
  0xc8   : > { %v770_v9 = vrot.slane %v714_v39, 1  ;;  %v772_v51 = vrot.slane %v715_v3, 1  ;;  %v853_v54 = vmul.f32 %v3433_v61, %v833_v45  ;;  %v3911_v52 = vunpack.c.l.bf16 %v3130_v42 }
  0xc9   : > { %v910_v7 = vrot.slane %v854_v46, 2  ;;  %v912_v55 = vrot.slane %v855_v50, 2  ;;  %v3914_v56 = vunpack.c.h.bf16 %v3130_v42  ;;  %v1045_v57 = vunpack.c.l.bf16 %v2887_v47  ;;  %v2950_v50 = vld [vmem:[%s3367_s6 + $0x9c] sm:$0xff]  }
  0xca   : > { %v771_v53 = vsel %vm395_vm0, %v769_v44, %v770_v9  ;;  %v773_v62 = vsel %vm395_vm0, %v770_v9, %v772_v51  ;;  %v909_v60 = vrot.slane %v853_v54, 2  ;;  %v1009_v63 = vmul.f32 %v3911_v52, %v3445_v16 }
  0xcb   : > { %v813_v59 = vadd.f32 %v771_v53, %v673_v49  ;;  %v814_v0 = vadd.f32 %v773_v62, %v674_v19  ;;  %v913_v1 = vsel %vm536_vm1, %v910_v7, %v912_v55  ;;  %v1010_v41 = vmul.f32 %v3914_v56, %v3445_v16 }
  0xcc   : > { %v1065_v2 = vmul.f32 %v3911_v52, %v3470_v40  ;;  %v911_v5 = vsel %vm536_vm1, %v909_v60, %v910_v7  ;;  %v1066_v6 = vmul.f32 %v3914_v56, %v3470_v40  ;;  %v1067_v8 = vmul.f32 %v3470_v40, %v1045_v57 }
  0xcd   : > { %v1185_v10 = vunpack.c.l.bf16 %v2895_v58  ;;  %v953_v12 = vadd.f32 %v911_v5, %v813_v59  ;;  %v954_v43 = vadd.f32 %v913_v1, %v814_v0  ;;  %v1206_v14 = vmul.f32 %v3813_v4, %v3914_v56  ;;  %v2962_v0 = vld [vmem:[%s3367_s6 + $0xa4] sm:$0x1] }
  0xce   : > { %v1121_v18 = vrot.slane %v1065_v2, 1  ;;  %v1122_v17 = vrot.slane %v1066_v6, 1  ;;  %v1124_v21 = vrot.slane %v1067_v8, 1  ;;  %v1207_v23 = vmul.f32 %v3813_v4, %v1045_v57 }
  0xcf   : > { %v1205_v22 = vmul.f32 %v3813_v4, %v1185_v10  ;;  %v1025_v26 = vadd.f32 %v1009_v63, %v953_v12  ;;  %v1026_v28 = vadd.f32 %v1010_v41, %v954_v43  ;;  %v1262_v29 = vrot.slane %v1206_v14, 2  ;;  %v2970_v12 = vld [vmem:[%s3367_s6 + $0x9c] sm:$0xe] }
  0xd0   : > { %v1586_v30 = vmul.f32 %v3738_v27, %v3381_v11  ;;  %v1123_v31 = vsel %vm395_vm0, %v1121_v18, %v1122_v17  ;;  %v1125_v33 = vsel %vm395_vm0, %v1122_v17, %v1124_v21  ;;  %v1264_v35 = vrot.slane %v1207_v23, 2 }
  0xd1   : > { %v1261_v34 = vrot.slane %v1205_v22, 2  ;;  %v1165_v37 = vadd.f32 %v1123_v31, %v1025_v26  ;;  %v1166_v38 = vadd.f32 %v1125_v33, %v1026_v28  ;;  %v1587_v39 = vmul.f32 %v3742_v32, %v3381_v11  ;;  %v3142_v26 = vld [vmem:[%s3367_s6 + $0xa8] sm:$0xff]  }
  0xd2   : > { %v1606_v42 = vunpack.c.l.bf16 %v2930_v24  ;;  %v1265_v44 = vsel %vm536_vm1, %v1262_v29, %v1264_v35  ;;  %v1622_v45 = vmul.f32 %v3738_v27, %v3385_v13  ;;  %v1623_v46 = vmul.f32 %v3742_v32, %v3385_v13 }
  0xd3   : > { %v1263_v3 = vsel %vm536_vm1, %v1261_v34, %v1262_v29  ;;  %v1306_v49 = vadd.f32 %v1265_v44, %v1166_v38  ;;  %v1742_v9 = vunpack.c.l.bf16 %v2938_v36  ;;  %v1759_v7 = vmul.f32 %v3742_v32, %v3389_v15 }
  0xd4   : > { %v1305_v47 = vadd.f32 %v1263_v3, %v1165_v37  ;;  %v1624_v19 = vmul.f32 %v1606_v42, %v3385_v13  ;;  %v1678_v51 = vrot.slane %v1622_v45, 1  ;;  %v1679_v54 = vrot.slane %v1623_v46, 1  ;;  %v2994_v3 = vld [vmem:[%s3367_s6 + $0xb0] sm:$0x1] }
  0xd5   : > { %v1760_v53 = vmul.f32 %v1606_v42, %v3389_v15  ;;  %v1328_v27 = vadd.f32 %v3834_v20, %v1306_v49  ;;  %v1758_v58 = vmul.f32 %v1742_v9, %v3389_v15  ;;  %v1815_v59 = vrot.slane %v1759_v7, 2  ;;  %v3002_v49 = vld [vmem:[%s3367_s6 + $0xa8] sm:$0xe] }
  0xd6   : > { %v1327_v55 = vadd.f32 %v3834_v20, %v1305_v47  ;;  %v1681_v57 = vrot.slane %v1624_v19, 1  ;;  %v1680_v62 = vsel %vm395_vm0, %v1678_v51, %v1679_v54  ;;  %v1894_v63 = vunpack.c.l.bf16 %v2950_v50 }
  0xd7   : > { %v1817_v60 = vrot.slane %v1760_v53, 2  ;;  %v1344_v41 = vmax.f32 %v1328_v27, 0.0  ;;  %v1722_v2 = vadd.f32 %v1680_v62, %v1586_v30  ;;  %v1814_v6 = vrot.slane %v1758_v58, 2 }
  0xd8   : > { %v1343_v1 = vmax.f32 %v1327_v55, 0.0  ;;  %v1682_v32 = vsel %vm395_vm0, %v1679_v54, %v1681_v57  ;;  %v1895_v10 = vunpack.c.h.bf16 %v2950_v50  ;;  %v1910_v18 = vmul.f32 %v1894_v63, %v3397_v25 }
  0xd9   : > { %v1723_v5 = vadd.f32 %v1682_v32, %v1587_v39  ;;  %v1818_v8 = vsel %vm536_vm1, %v1815_v59, %v1817_v60  ;;  %v1946_v14 = vunpack.c.l.bf16 %v2962_v0  ;;  %v1962_v17 = vmul.f32 %v1894_v63, %v3420_v48 }
  0xda   : > { %v1355_v43 = vpack.c.bf16 %v1344_v41, %v1343_v1  ;;  %v1816_v21 = vsel %vm536_vm1, %v1814_v6, %v1815_v59  ;;  %v1911_v23 = vmul.f32 %v1895_v10, %v3397_v25  ;;  %v1963_v24 = vmul.f32 %v1895_v10, %v3420_v48  ;;  %v285_v1 = vld [vmem:[%s3367_s6 + $0x3c] sm:$0xff]   ;;  %v332_v6 = vld [vmem:[%s3367_s6 + $0x44] sm:$0x1] }
  0xdb   : > { %v1859_v22 = vadd.f32 %v1818_v8, %v1723_v5  ;;  %v1858_v28 = vadd.f32 %v1816_v21, %v1722_v2  ;;  %v1964_v29 = vmul.f32 %v1946_v14, %v3420_v48  ;;  %v2018_v30 = vrot.slane %v1962_v17, 1 }
  0xdc   : > { %3200 = vmatprep.mubr.bf16.mxu0 %v1355_v43  ;;  %v2082_v31 = vunpack.c.l.bf16 %v2970_v12  ;;  %v2019_v34 = vrot.slane %v1963_v24, 1  ;;  %v2099_v35 = vmul.f32 %v1895_v10, %v3433_v61  ;;  %v2100_v36 = vmul.f32 %v1946_v14, %v3433_v61 }
  0xdd   : > { %v1927_v33 = vadd.f32 %v1911_v23, %v1859_v22  ;;  %v1926_v37 = vadd.f32 %v1910_v18, %v1858_v28  ;;  %v2021_v38 = vrot.slane %v1964_v29, 1  ;;  %v3970_v42 = vunpack.c.l.bf16 %v3142_v26  ;;  %v473_v28 = vld [vmem:[%s3367_s6 + $0x3c] sm:$0xe] }
  0xde   : > { %v2098_v39 = vmul.f32 %v2082_v31, %v3433_v61  ;;  %v2020_v44 = vsel %vm395_vm0, %v2018_v30, %v2019_v34  ;;  %v2155_v45 = vrot.slane %v2099_v35, 2  ;;  %v2157_v46 = vrot.slane %v2100_v36, 2 }
  0xdf   : > { %v3974_v47 = vunpack.c.h.bf16 %v3142_v26  ;;  %v2022_v19 = vsel %vm395_vm0, %v2019_v34, %v2021_v38  ;;  %v2062_v9 = vadd.f32 %v2020_v44, %v1926_v37  ;;  %v2250_v51 = vmul.f32 %v3970_v42, %v3445_v16 }
  0xe0   : > { %v2154_v50 = vrot.slane %v2098_v39, 2  ;;  %v2063_v54 = vadd.f32 %v2022_v19, %v1927_v33  ;;  %v2158_v7 = vsel %vm536_vm1, %v2155_v45, %v2157_v46  ;;  %v2286_v55 = vunpack.c.l.bf16 %v2994_v3 }
  0xe1   : > { %v2251_v53 = vmul.f32 %v3974_v47, %v3445_v16  ;;  %v2302_v57 = vmul.f32 %v3970_v42, %v3470_v40  ;;  %v2303_v58 = vmul.f32 %v3974_v47, %v3470_v40  ;;  %v2422_v62 = vunpack.c.l.bf16 %v3002_v49 }
  0xe2   : > { %v2156_v27 = vsel %vm536_vm1, %v2154_v50, %v2155_v45  ;;  %v2199_v60 = vadd.f32 %v2158_v7, %v2063_v54  ;;  %v2304_v63 = vmul.f32 %v2286_v55, %v3470_v40  ;;  %v2439_v0 = vmul.f32 %v3813_v4, %v3974_v47  ;;  %v2856_v7 = vld [vmem:[%s3367_s6 + $0x50] sm:$0x1] }
  0xe3   : > { %v2198_v59 = vadd.f32 %v2156_v27, %v2062_v9  ;;  %v2358_v41 = vrot.slane %v2302_v57, 1  ;;  %v2359_v32 = vrot.slane %v2303_v58, 1  ;;  %v2438_v2 = vmul.f32 %v3813_v4, %v2422_v62 }
  0xe4   : > { %v2440_v5 = vmul.f32 %v3813_v4, %v2286_v55  ;;  %v2267_v10 = vadd.f32 %v2251_v53, %v2199_v60  ;;  %v2361_v12 = vrot.slane %v2304_v63, 1  ;;  %v2495_v43 = vrot.slane %v2439_v0, 2  ;;  %v2864_v63 = vld [vmem:[%s3367_s6 + $0x48] sm:$0xe] }
  0xe5   : > { %v2266_v8 = vadd.f32 %v2250_v51, %v2198_v59  ;;  %v2360_v18 = vsel %vm395_vm0, %v2358_v41, %v2359_v32  ;;  %v2494_v14 = vrot.slane %v2438_v2, 2  ;;  %v301_v21 = vunpack.c.l.bf16 %v285_v1 }
  0xe6   : > { %v2497_v17 = vrot.slane %v2440_v5, 2  ;;  %v2362_v22 = vsel %vm395_vm0, %v2359_v32, %v2361_v12  ;;  %v302_v24 = vunpack.c.h.bf16 %v285_v1  ;;  %v340_v26 = vunpack.c.l.bf16 %v332_v6 }
  0xe7   : > { %v2402_v23 = vadd.f32 %v2360_v18, %v2266_v8  ;;  %v2403_v29 = vadd.f32 %v2362_v22, %v2267_v10  ;;  %v2496_v30 = vsel %vm536_vm1, %v2494_v14, %v2495_v43  ;;  %v321_v33 = vmul.f32 %v3381_v11, %v301_v21  ;;  %v2877_v14 = vld [vmem:[%s3367_s6 + $0x54] sm:$0xff]  }
  0xe8   : > { %v2498_v31 = vsel %vm536_vm1, %v2495_v43, %v2497_v17  ;;  %v322_v35 = vmul.f32 %v3381_v11, %v302_v24  ;;  %v362_v36 = vmul.f32 %v3385_v13, %v301_v21  ;;  %v363_v37 = vmul.f32 %v3385_v13, %v302_v24 }
  0xe9   : > { %v2538_v34 = vadd.f32 %v2496_v30, %v2402_v23  ;;  %v2539_v38 = vadd.f32 %v2498_v31, %v2403_v29  ;;  %v364_v39 = vmul.f32 %v3385_v13, %v340_v26  ;;  %v481_v3 = vunpack.c.l.bf16 %v473_v28  ;;  %v2888_v30 = vld [vmem:[%s3367_s6 + $0x5c] sm:$0x1] }
  0xea   : > { %v504_v44 = vmul.f32 %v3389_v15, %v302_v24  ;;  %v421_v46 = vrot.slane %v362_v36, 1  ;;  %v422_v49 = vrot.slane %v363_v37, 1  ;;  %v505_v19 = vmul.f32 %v3389_v15, %v340_v26 }
  0xeb   : > { %v2554_v45 = vadd.f32 %v3834_v20, %v2538_v34  ;;  %v2555_v9 = vadd.f32 %v3834_v20, %v2539_v38  ;;  %v424_v50 = vrot.slane %v364_v39, 1  ;;  %v503_v51 = vmul.f32 %v3389_v15, %v481_v3  ;;  %v2896_v3 = vld [vmem:[%s3367_s6 + $0x54] sm:$0xe] }
  0xec   : > { %v563_v54 = vrot.slane %v504_v44, 2  ;;  %v423_v55 = vsel %vm395_vm0, %v421_v46, %v422_v49  ;;  %v565_v27 = vrot.slane %v505_v19, 2  ;;  %v659_v57 = vmul.f32 %v3911_v52, %v3397_v25 }
  0xed   : > { %v2570_v53 = vmax.f32 %v2554_v45, 0.0  ;;  %v2571_v58 = vmax.f32 %v2555_v9, 0.0  ;;  %v425_v62 = vsel %vm395_vm0, %v422_v49, %v424_v50  ;;  %v462_v59 = vadd.f32 %v423_v55, %v321_v33 }
  0xee   : > { %v562_v60 = vrot.slane %v503_v51, 2  ;;  %v463_v0 = vadd.f32 %v425_v62, %v322_v35  ;;  %v566_v1 = vsel %vm536_vm1, %v563_v54, %v565_v27  ;;  %v660_v41 = vmul.f32 %v3914_v56, %v3397_v25  ;;  %v2920_v27 = vld [vmem:[%s3367_s6 + $0x9c] sm:$0xff]  }
  0xef   : > { %v694_v32 = vunpack.c.l.bf16 %v2856_v7  ;;  %v2582_v2 = vpack.c.bf16 %v2571_v58, %v2570_v53  ;;  %v716_v6 = vmul.f32 %v3911_v52, %v3420_v48  ;;  %v717_v8 = vmul.f32 %v3914_v56, %v3420_v48 }
  0xf0   : > { %v564_v5 = vsel %vm536_vm1, %v562_v60, %v563_v54  ;;  %v604_v12 = vadd.f32 %v566_v1, %v463_v0  ;;  %v834_v18 = vunpack.c.l.bf16 %v2864_v63  ;;  %v857_v22 = vmul.f32 %v3914_v56, %v3433_v61 }
  0xf1   : > { %v603_v10 = vadd.f32 %v564_v5, %v462_v59  ;;  %v718_v43 = vmul.f32 %v3420_v48, %v694_v32  ;;  %3232 = vmatprep.mubr.bf16.mxu1 %v2582_v2  ;;  %v774_v17 = vrot.slane %v716_v6, 1  ;;  %v775_v21 = vrot.slane %v717_v8, 1 }
  0xf2   : > { %v858_v23 = vmul.f32 %v3433_v61, %v694_v32  ;;  %v676_v26 = vadd.f32 %v660_v41, %v604_v12  ;;  %v856_v29 = vmul.f32 %v3433_v61, %v834_v18  ;;  %v915_v33 = vrot.slane %v857_v22, 2  ;;  %v2931_v41 = vld [vmem:[%s3367_s6 + $0xa4] sm:$0x1]  ;;  %v2939_v18 = vld [vmem:[%s3367_s6 + $0x9c] sm:$0xe] }
  0xf3   : > { %v675_v24 = vadd.f32 %v659_v57, %v603_v10  ;;  %v777_v28 = vrot.slane %v718_v43, 1  ;;  %v776_v31 = vsel %vm395_vm0, %v774_v17, %v775_v21  ;;  %v991_v35 = vunpack.c.l.bf16 %v2877_v14 }
  0xf4   : > { %v917_v34 = vrot.slane %v858_v23, 2  ;;  %v914_v38 = vrot.slane %v856_v29, 2  ;;  %v992_v39 = vunpack.c.h.bf16 %v2877_v14  ;;  %v1046_v49 = vunpack.c.l.bf16 %v2888_v30 }
  0xf5   : > { %v778_v36 = vsel %vm395_vm0, %v775_v21, %v777_v28  ;;  %v815_v37 = vadd.f32 %v776_v31, %v675_v24  ;;  %v1011_v46 = vmul.f32 %v3445_v16, %v991_v35  ;;  %v1068_v50 = vmul.f32 %v3470_v40, %v991_v35 }
  0xf6   : > { %v816_v44 = vadd.f32 %v778_v36, %v676_v26  ;;  %v918_v45 = vsel %vm536_vm1, %v915_v33, %v917_v34  ;;  %v916_v19 = vsel %vm536_vm1, %v914_v38, %v915_v33  ;;  %v1012_v9 = vmul.f32 %v3445_v16, %v992_v39 }
  0xf7   : > { %v1069_v51 = vmul.f32 %v3470_v40, %v992_v39  ;;  %v955_v54 = vadd.f32 %v916_v19, %v815_v37  ;;  %v1070_v53 = vmul.f32 %v3470_v40, %v1046_v49  ;;  %v1186_v55 = vunpack.c.l.bf16 %v2896_v3 }
  0xf8   : > { %v956_v7 = vadd.f32 %v918_v45, %v816_v44  ;;  %v1126_v57 = vrot.slane %v1068_v50, 1  ;;  %v1209_v62 = vmul.f32 %v3813_v4, %v992_v39  ;;  %v1210_v59 = vmul.f32 %v3813_v4, %v1046_v49 }
  0xf9   : > { %v1127_v58 = vrot.slane %v1069_v51, 1  ;;  %v1027_v60 = vadd.f32 %v1011_v46, %v955_v54  ;;  %v1129_v0 = vrot.slane %v1070_v53, 1  ;;  %v1208_v1 = vmul.f32 %v3813_v4, %v1186_v55  ;;  %v2971_v53 = vld [vmem:[%s3367_s6 + $0xa8] sm:$0xe] }
  0xfa   : > { %v1028_v63 = vadd.f32 %v1012_v9, %v956_v7  ;;  %v1267_v2 = vrot.slane %v1209_v62, 2  ;;  %v1269_v5 = vrot.slane %v1210_v59, 2  ;;  %v1572_v6 = vunpack.c.l.bf16 %v2920_v27  ;;  %v2963_v9 = vld [vmem:[%s3367_s6 + $0xb0] sm:$0x1] }
  0xfb   : > { %v1128_v32 = vsel %vm395_vm0, %v1126_v57, %v1127_v58  ;;  %v1130_v8 = vsel %vm395_vm0, %v1127_v58, %v1129_v0  ;;  %v1266_v12 = vrot.slane %v1208_v1, 2  ;;  %v1573_v43 = vunpack.c.h.bf16 %v2920_v27 }
  0xfc   : > { %v1167_v10 = vadd.f32 %v1128_v32, %v1027_v60  ;;  %v1168_v14 = vadd.f32 %v1130_v8, %v1028_v63  ;;  %v1270_v17 = vsel %vm536_vm1, %v1267_v2, %v1269_v5  ;;  %v1588_v21 = vmul.f32 %v1572_v6, %v3381_v11 }
  0xfd   : > { %v1607_v22 = vunpack.c.l.bf16 %v2931_v41  ;;  %v1268_v23 = vsel %vm536_vm1, %v1266_v12, %v1267_v2  ;;  %v1589_v24 = vmul.f32 %v1573_v43, %v3381_v11  ;;  %v1625_v26 = vmul.f32 %v1572_v6, %v3385_v13  ;;  %v2984_v2 = vld [vmem:[%s3367_s6 + $0xb4] sm:$0xff]   ;;  %v2995_v12 = vld [vmem:[%s3367_s6 + $0xbc] sm:$0x1] }
  0xfe   : > { %v1626_v28 = vmul.f32 %v1573_v43, %v3385_v13  ;;  %v1307_v29 = vadd.f32 %v1268_v23, %v1167_v10  ;;  %v1308_v30 = vadd.f32 %v1270_v17, %v1168_v14  ;;  %v1743_v33 = vunpack.c.l.bf16 %v2939_v18 }
  0xff   : > { %v1627_v31 = vmul.f32 %v1607_v22, %v3385_v13  ;;  %v1683_v34 = vrot.slane %v1625_v26, 1  ;;  %v1762_v36 = vmul.f32 %v1573_v43, %v3389_v15  ;;  %v1763_v37 = vmul.f32 %v1607_v22, %v3389_v15 }
 0x100   : > { %v1684_v35 = vrot.slane %v1626_v28, 1  ;;  %v1329_v38 = vadd.f32 %v3834_v20, %v1307_v29  ;;  %v1330_v39 = vadd.f32 %v3834_v20, %v1308_v30  ;;  %v1761_v44 = vmul.f32 %v1743_v33, %v3389_v15 }
 0x101   : > { %v1686_v3 = vrot.slane %v1627_v31, 1  ;;  %v1820_v46 = vrot.slane %v1762_v36, 2  ;;  %v1822_v49 = vrot.slane %v1763_v37, 2  ;;  %v1912_v19 = vmul.f32 %v3970_v42, %v3397_v25  ;;  %v3003_v36 = vld [vmem:[%s3367_s6 + $0xb4] sm:$0xe] }
 0x102   : > { %v1685_v45 = vsel %vm395_vm0, %v1683_v34, %v1684_v35  ;;  %v1345_v50 = vmax.f32 %v1329_v38, 0.0  ;;  %v1346_v51 = vmax.f32 %v1330_v39, 0.0  ;;  %v1819_v27 = vrot.slane %v1761_v44, 2 }
 0x103   : > { %v1687_v54 = vsel %vm395_vm0, %v1684_v35, %v1686_v3  ;;  %v1724_v7 = vadd.f32 %v1685_v45, %v1588_v21  ;;  %v1823_v57 = vsel %vm536_vm1, %v1820_v46, %v1822_v49  ;;  %v1913_v58 = vmul.f32 %v3974_v47, %v3397_v25 }
 0x104   : > { %v1725_v55 = vadd.f32 %v1687_v54, %v1589_v24  ;;  %v1356_v62 = vpack.c.bf16 %v1346_v51, %v1345_v50  ;;  %v1947_v59 = vunpack.c.l.bf16 %v2963_v9  ;;  %v1965_v60 = vmul.f32 %v3970_v42, %v3420_v48  ;;  %v333_v54 = vld [vmem:[%s3367_s6 + $0x50] sm:$0x1] }
 0x105   : > { %v1966_v63 = vmul.f32 %v3974_v47, %v3420_v48  ;;  %v1821_v0 = vsel %vm536_vm1, %v1819_v27, %v1820_v46  ;;  %v2083_v41 = vunpack.c.l.bf16 %v2971_v53  ;;  %v2102_v32 = vmul.f32 %v3974_v47, %v3433_v61 }
 0x106   : > { %v1861_v1 = vadd.f32 %v1823_v57, %v1725_v55  ;;  %3201 = vmatmul.mubr.bf16.gmra.mrb[8].mxu0 %v1356_v62  ;;  %v1860_v5 = vadd.f32 %v1821_v0, %v1724_v7  ;;  %v1967_v6 = vmul.f32 %v1947_v59, %v3420_v48  ;;  %v2023_v8 = vrot.slane %v1965_v60, 1  ;;  %v474_v60 = vld [vmem:[%s3367_s6 + $0x48] sm:$0xe] }
 0x107   : > { %v2024_v10 = vrot.slane %v1966_v63, 1  ;;  %v2101_v18 = vmul.f32 %v2083_v41, %v3433_v61  ;;  %v2103_v14 = vmul.f32 %v1947_v59, %v3433_v61  ;;  %v2160_v17 = vrot.slane %v2102_v32, 2 }
 0x108   : > { %v1929_v43 = vadd.f32 %v1913_v58, %v1861_v1  ;;  %v1928_v21 = vadd.f32 %v1912_v19, %v1860_v5  ;;  %v2026_v23 = vrot.slane %v1967_v6, 1  ;;  %v2236_v24 = vunpack.c.l.bf16 %v2984_v2 }
 0x109   : > { %v2025_v22 = vsel %vm395_vm0, %v2023_v8, %v2024_v10  ;;  %v2159_v26 = vrot.slane %v2101_v18, 2  ;;  %v2162_v28 = vrot.slane %v2103_v14, 2  ;;  %v2237_v29 = vunpack.c.h.bf16 %v2984_v2 }
 0x10a   : > { %v2287_v30 = vunpack.c.l.bf16 %v2995_v12  ;;  %v2027_v31 = vsel %vm395_vm0, %v2024_v10, %v2026_v23  ;;  %v2064_v33 = vadd.f32 %v2025_v22, %v1928_v21  ;;  %v2252_v34 = vmul.f32 %v2236_v24, %v3445_v16  ;;  %v2847_v21 = vld [vmem:[%s3367_s6 + $0x54] sm:$0xff]  }
 0x10b   : > { %v2305_v35 = vmul.f32 %v2236_v24, %v3470_v40  ;;  %v2065_v37 = vadd.f32 %v2027_v31, %v1929_v43  ;;  %v2161_v38 = vsel %vm536_vm1, %v2159_v26, %v2160_v17  ;;  %v2163_v39 = vsel %vm536_vm1, %v2160_v17, %v2162_v28 }
 0x10c   : > { %v2253_v3 = vmul.f32 %v2237_v29, %v3445_v16  ;;  %v2200_v44 = vadd.f32 %v2161_v38, %v2064_v33  ;;  %v2306_v45 = vmul.f32 %v2237_v29, %v3470_v40  ;;  %v2307_v46 = vmul.f32 %v2287_v30, %v3470_v40 }
 0x10d   : > { %v2363_v49 = vrot.slane %v2305_v35, 1  ;;  %v2201_v19 = vadd.f32 %v2163_v39, %v2065_v37  ;;  %v2423_v9 = vunpack.c.l.bf16 %v3003_v36  ;;  %v2442_v50 = vmul.f32 %v3813_v4, %v2237_v29  ;;  %v2857_v35 = vld [vmem:[%s3367_s6 + $0x5c] sm:$0x1] }
 0x10e   : > { %v2443_v51 = vmul.f32 %v3813_v4, %v2287_v30  ;;  %v2268_v7 = vadd.f32 %v2252_v34, %v2200_v44  ;;  %v2364_v53 = vrot.slane %v2306_v45, 1  ;;  %v2366_v55 = vrot.slane %v2307_v46, 1 }
 0x10f   : > { %v323_v27 = vmul.f32 %v3911_v52, %v3381_v11  ;;  %v2269_v57 = vadd.f32 %v2253_v3, %v2201_v19  ;;  %v2441_v58 = vmul.f32 %v3813_v4, %v2423_v9  ;;  %v2500_v62 = vrot.slane %v2442_v50, 2 }
 0x110   : > { %v2502_v59 = vrot.slane %v2443_v51, 2  ;;  %v2365_v63 = vsel %vm395_vm0, %v2363_v49, %v2364_v53  ;;  %v2367_v0 = vsel %vm395_vm0, %v2364_v53, %v2366_v55  ;;  %v324_v1 = vmul.f32 %v3914_v56, %v3381_v11  ;;  %v2865_v49 = vld [vmem:[%s3367_s6 + $0x54] sm:$0xe]  ;;  %v3131_v55 = vld [vmem:[%s3367_s6 + $0x60] sm:$0xff]  }
 0x111   : > { %v341_v41 = vunpack.c.l.bf16 %v333_v54  ;;  %v2404_v32 = vadd.f32 %v2365_v63, %v2268_v7  ;;  %v2405_v2 = vadd.f32 %v2367_v0, %v2269_v57  ;;  %v2499_v5 = vrot.slane %v2441_v58, 2 }
 0x112   : > { %v2503_v6 = vsel %vm536_vm1, %v2500_v62, %v2502_v59  ;;  %v365_v4 = vmul.f32 %v3911_v52, %v3385_v13  ;;  %v366_v8 = vmul.f32 %v3914_v56, %v3385_v13  ;;  %v482_v12 = vunpack.c.l.bf16 %v474_v60  ;;  %v2889_v59 = vld [vmem:[%s3367_s6 + $0x68] sm:$0x1] }
 0x113   : > { %v367_v10 = vmul.f32 %v3385_v13, %v341_v41  ;;  %v2501_v43 = vsel %vm536_vm1, %v2499_v5, %v2500_v62  ;;  %v2541_v18 = vadd.f32 %v2503_v6, %v2405_v2  ;;  %v507_v14 = vmul.f32 %v3914_v56, %v3389_v15 }
 0x114   : > { %v508_v17 = vmul.f32 %v3389_v15, %v341_v41  ;;  %v2540_v22 = vadd.f32 %v2501_v43, %v2404_v32  ;;  %v426_v23 = vrot.slane %v365_v4, 1  ;;  %v427_v24 = vrot.slane %v366_v8, 1 }
 0x115   : > { %v429_v52 = vrot.slane %v367_v10, 1  ;;  %v2557_v26 = vadd.f32 %v3834_v20, %v2541_v18  ;;  %v506_v28 = vmul.f32 %v3389_v15, %v482_v12  ;;  %v568_v29 = vrot.slane %v507_v14, 2  ;;  %v2897_v12 = vld [vmem:[%s3367_s6 + $0x60] sm:$0xe] }
 0x116   : > { %v570_v30 = vrot.slane %v508_v17, 2  ;;  %v2556_v31 = vadd.f32 %v3834_v20, %v2540_v22  ;;  %v428_v33 = vsel %vm395_vm0, %v426_v23, %v427_v24  ;;  %v641_v34 = vunpack.c.l.bf16 %v2847_v21 }
 0x117   : > { %v430_v56 = vsel %vm395_vm0, %v427_v24, %v429_v52  ;;  %v2573_v36 = vmax.f32 %v2557_v26, 0.0  ;;  %v464_v37 = vadd.f32 %v428_v33, %v323_v27  ;;  %v567_v39 = vrot.slane %v506_v28, 2 }
 0x118   : > { %v465_v38 = vadd.f32 %v430_v56, %v324_v1  ;;  %v2572_v3 = vmax.f32 %v2556_v31, 0.0  ;;  %v571_v44 = vsel %vm536_vm1, %v568_v29, %v570_v30  ;;  %v642_v45 = vunpack.c.h.bf16 %v2847_v21  ;;  %v4154_v56 = vld [vmem:[%s4442_s1 + $0x8] ss:$0 sm:$0xff] }
 0x119   : > { %v661_v46 = vmul.f32 %v3397_v25, %v641_v34  ;;  %v569_v20 = vsel %vm536_vm1, %v567_v39, %v568_v29  ;;  %v695_v9 = vunpack.c.l.bf16 %v2857_v35  ;;  %v719_v50 = vmul.f32 %v3420_v48, %v641_v34  ;;  %v2932_v39 = vld [vmem:[%s3367_s6 + $0xb0] sm:$0x1] }
 0x11a   : > { %v606_v19 = vadd.f32 %v571_v44, %v465_v38  ;;  %v2583_v51 = vpack.c.bf16 %v2573_v36, %v2572_v3  ;;  %v605_v54 = vadd.f32 %v569_v20, %v464_v37  ;;  %v662_v7 = vmul.f32 %v3397_v25, %v642_v45 }
 0x11b   : > { %v720_v53 = vmul.f32 %v3420_v48, %v642_v45  ;;  %v721_v27 = vmul.f32 %v3420_v48, %v695_v9  ;;  %v779_v57 = vrot.slane %v719_v50, 1  ;;  %v835_v58 = vunpack.c.l.bf16 %v2865_v49  ;;  %v2940_v50 = vld [vmem:[%s3367_s6 + $0xa8] sm:$0xe] }
 0x11c   : > { %v860_v62 = vmul.f32 %v3433_v61, %v642_v45  ;;  %3233 = vmatmul.mubr.bf16.gmra.mrb[8].mxu1 %v2583_v51  ;;  %v677_v60 = vadd.f32 %v661_v46, %v605_v54  ;;  %v678_v63 = vadd.f32 %v662_v7, %v606_v19  ;;  %v861_v1 = vmul.f32 %v3433_v61, %v695_v9 }
 0x11d   : > { %v780_v0 = vrot.slane %v720_v53, 1  ;;  %v782_v41 = vrot.slane %v721_v27, 1  ;;  %v859_v32 = vmul.f32 %v3433_v61, %v835_v58  ;;  %v4133_v5 = vunpack.c.l.bf16 %v3131_v55 }
 0x11e   : > { %v920_v2 = vrot.slane %v860_v62, 2  ;;  %v922_v4 = vrot.slane %v861_v1, 2  ;;  %v4136_v8 = vunpack.c.h.bf16 %v3131_v55  ;;  %v1047_v10 = vunpack.c.l.bf16 %v2889_v59 }
 0x11f   : > { %v781_v6 = vsel %vm395_vm0, %v779_v57, %v780_v0  ;;  %v783_v43 = vsel %vm395_vm0, %v780_v0, %v782_v41  ;;  %v919_v14 = vrot.slane %v859_v32, 2  ;;  %v1013_v17 = vmul.f32 %v4133_v5, %v3445_v16  ;;  %v2954_v0 = vld [vmem:[%s3367_s6 + $0xb4] sm:$0xff]  }
 0x120   : > { %v817_v18 = vadd.f32 %v781_v6, %v677_v60  ;;  %v818_v21 = vadd.f32 %v783_v43, %v678_v63  ;;  %v923_v22 = vsel %vm536_vm1, %v920_v2, %v922_v4  ;;  %v1014_v23 = vmul.f32 %v4136_v8, %v3445_v16 }
 0x121   : > { %v1071_v24 = vmul.f32 %v4133_v5, %v3470_v40  ;;  %v921_v52 = vsel %vm536_vm1, %v919_v14, %v920_v2  ;;  %v1072_v26 = vmul.f32 %v4136_v8, %v3470_v40  ;;  %v1073_v28 = vmul.f32 %v3470_v40, %v1047_v10 }
 0x122   : > { %v1187_v29 = vunpack.c.l.bf16 %v2897_v12  ;;  %v957_v30 = vadd.f32 %v921_v52, %v817_v18  ;;  %v958_v31 = vadd.f32 %v923_v22, %v818_v21  ;;  %v1212_v34 = vmul.f32 %v4154_v56, %v4136_v8 }
 0x123   : > { %v1131_v33 = vrot.slane %v1071_v24, 1  ;;  %v1132_v35 = vrot.slane %v1072_v26, 1  ;;  %v1134_v36 = vrot.slane %v1073_v28, 1  ;;  %v1213_v38 = vmul.f32 %v4154_v56, %v1047_v10 }
 0x124   : > { %v1211_v37 = vmul.f32 %v4154_v56, %v1187_v29  ;;  %v1029_v3 = vadd.f32 %v1013_v17, %v957_v30  ;;  %v1030_v44 = vadd.f32 %v1014_v23, %v958_v31  ;;  %v1272_v45 = vrot.slane %v1212_v34, 2  ;;  %v2964_v17 = vld [vmem:[%s3367_s6 + $0xbc] sm:$0x1]  ;;  %v2972_v30 = vld [vmem:[%s3367_s6 + $0xb4] sm:$0xe] }
 0x125   : > { %v1590_v46 = vmul.f32 %v3970_v42, %v3381_v11  ;;  %v1133_v49 = vsel %vm395_vm0, %v1131_v33, %v1132_v35  ;;  %v1135_v20 = vsel %vm395_vm0, %v1132_v35, %v1134_v36  ;;  %v1274_v9 = vrot.slane %v1213_v38, 2 }
 0x126   : > { %v1271_v19 = vrot.slane %v1211_v37, 2  ;;  %v1169_v51 = vadd.f32 %v1133_v49, %v1029_v3  ;;  %v1170_v54 = vadd.f32 %v1135_v20, %v1030_v44  ;;  %v1591_v7 = vmul.f32 %v3974_v47, %v3381_v11  ;;  %v3143_v3 = vld [vmem:[%s3367_s6 + $0xc0] sm:$0xff]  }
 0x127   : > { %v1608_v53 = vunpack.c.l.bf16 %v2932_v39  ;;  %v1275_v27 = vsel %vm536_vm1, %v1272_v45, %v1274_v9  ;;  %v1628_v57 = vmul.f32 %v3970_v42, %v3385_v13  ;;  %v1629_v58 = vmul.f32 %v3974_v47, %v3385_v13  ;;  %v4182_v42 = vld [vmem:[%s4443_s2] ss:$0 sm:$0xff] }
 0x128   : > { %v1273_v55 = vsel %vm536_vm1, %v1271_v19, %v1272_v45  ;;  %v1310_v59 = vadd.f32 %v1275_v27, %v1170_v54  ;;  %v1744_v63 = vunpack.c.l.bf16 %v2940_v50  ;;  %v1765_v32 = vmul.f32 %v3974_v47, %v3389_v15 }
 0x129   : > { %v1309_v62 = vadd.f32 %v1273_v55, %v1169_v51  ;;  %v1630_v60 = vmul.f32 %v1608_v53, %v3385_v13  ;;  %v1688_v1 = vrot.slane %v1628_v57, 1  ;;  %v1689_v41 = vrot.slane %v1629_v58, 1  ;;  %v2996_v58 = vld [vmem:[%s3367_s6 + $0xc8] sm:$0x1] }
 0x12a   : > { %v1766_v2 = vmul.f32 %v1608_v53, %v3389_v15  ;;  %v1332_v4 = vadd.f32 %v4182_v42, %v1310_v59  ;;  %v1764_v12 = vmul.f32 %v1744_v63, %v3389_v15  ;;  %v1825_v18 = vrot.slane %v1765_v32, 2 }
 0x12b   : > { %v1331_v6 = vadd.f32 %v4182_v42, %v1309_v62  ;;  %v1691_v10 = vrot.slane %v1630_v60, 1  ;;  %v1690_v43 = vsel %vm395_vm0, %v1688_v1, %v1689_v41  ;;  %v1898_v47 = vunpack.c.l.bf16 %v2954_v0  ;;  %v3004_v1 = vld [vmem:[%s3367_s6 + $0xc0] sm:$0xe] }
 0x12c   : > { %v1827_v14 = vrot.slane %v1766_v2, 2  ;;  %v1348_v22 = vmax.f32 %v1332_v4, 0.0  ;;  %v1726_v24 = vadd.f32 %v1690_v43, %v1590_v46  ;;  %v1824_v26 = vrot.slane %v1764_v12, 2 }
 0x12d   : > { %v1347_v21 = vmax.f32 %v1331_v6, 0.0  ;;  %v1692_v23 = vsel %vm395_vm0, %v1689_v41, %v1691_v10  ;;  %v1899_v29 = vunpack.c.h.bf16 %v2954_v0  ;;  %v1914_v33 = vmul.f32 %v1898_v47, %v3397_v25 }
 0x12e   : > { %v1727_v52 = vadd.f32 %v1692_v23, %v1591_v7  ;;  %v1828_v28 = vsel %vm536_vm1, %v1825_v18, %v1827_v14  ;;  %v1948_v34 = vunpack.c.l.bf16 %v2964_v17  ;;  %v1968_v35 = vmul.f32 %v1898_v47, %v3420_v48 }
 0x12f   : > { %v1357_v31 = vpack.c.bf16 %v1348_v22, %v1347_v21  ;;  %v1826_v36 = vsel %vm536_vm1, %v1824_v26, %v1825_v18  ;;  %v1915_v38 = vmul.f32 %v1899_v29, %v3397_v25  ;;  %v1969_v39 = vmul.f32 %v1899_v29, %v3420_v48  ;;  %v4198_v44 = vpop.f32.mrb[0].mxu0 }
 0x130   : > { %v1863_v37 = vadd.f32 %v1828_v28, %v1727_v52  ;;  %v1862_v45 = vadd.f32 %v1826_v36, %v1726_v24  ;;  %v1970_v46 = vmul.f32 %v1948_v34, %v3420_v48  ;;  %v2028_v49 = vrot.slane %v1968_v35, 1  ;;  %v4201_v19 = vpop.f32.mrb[1].mxu0  ;;  %v289_v52 = vld [vmem:[%s3367_s6 + $0x54] sm:$0xff]  }
 0x131   : > { %3204 = vmatprep.mubr.bf16.mxu0 %v1357_v31  ;;  %v2084_v20 = vunpack.c.l.bf16 %v2972_v30  ;;  %v2029_v50 = vrot.slane %v1969_v39, 1  ;;  %v2105_v51 = vmul.f32 %v1899_v29, %v3433_v61  ;;  %v2106_v54 = vmul.f32 %v1948_v34, %v3433_v61  ;;  %v4205_v7 = vpop.f32.mrb[2].mxu0  ;;  %v334_v31 = vld [vmem:[%s3367_s6 + $0x5c] sm:$0x1] }
 0x132   : > { %v1931_v9 = vadd.f32 %v1915_v38, %v1863_v37  ;;  %v1930_v53 = vadd.f32 %v1914_v33, %v1862_v45  ;;  %v2031_v55 = vrot.slane %v1970_v46, 1  ;;  %v4208_v57 = vunpack.c.l.bf16 %v3143_v3  ;;  %v4211_v62 = vpop.f32.mrb[3].mxu0 }
 0x133   : > { %v2104_v27 = vmul.f32 %v2084_v20, %v3433_v61  ;;  %v2030_v59 = vsel %vm395_vm0, %v2028_v49, %v2029_v50  ;;  %v2165_v60 = vrot.slane %v2105_v51, 2  ;;  %v2167_v63 = vrot.slane %v2106_v54, 2 }
 0x134   : > { %v4214_v0 = vunpack.c.h.bf16 %v3143_v3  ;;  %v2032_v41 = vsel %vm395_vm0, %v2029_v50, %v2031_v55  ;;  %v2066_v32 = vadd.f32 %v2030_v59, %v1930_v53  ;;  %v2254_v6 = vmul.f32 %v4208_v57, %v3445_v16 }
 0x135   : > { %v2164_v2 = vrot.slane %v2104_v27, 2  ;;  %v2067_v4 = vadd.f32 %v2032_v41, %v1931_v9  ;;  %v2168_v10 = vsel %vm536_vm1, %v2165_v60, %v2167_v63  ;;  %v2288_v43 = vunpack.c.l.bf16 %v2996_v58  ;;  %v475_v9 = vld [vmem:[%s3367_s6 + $0x54] sm:$0xe] }
 0x136   : > { %v2255_v12 = vmul.f32 %v4214_v0, %v3445_v16  ;;  %v2308_v14 = vmul.f32 %v4208_v57, %v3470_v40  ;;  %v2309_v47 = vmul.f32 %v4214_v0, %v3470_v40  ;;  %v2424_v17 = vunpack.c.l.bf16 %v3004_v1 }
 0x137   : > { %v2166_v18 = vsel %vm536_vm1, %v2164_v2, %v2165_v60  ;;  %v2203_v22 = vadd.f32 %v2168_v10, %v2067_v4  ;;  %v2310_v23 = vmul.f32 %v2288_v43, %v3470_v40  ;;  %v2445_v24 = vmul.f32 %v4154_v56, %v4214_v0 }
 0x138   : > { %v2202_v21 = vadd.f32 %v2166_v18, %v2066_v32  ;;  %v2368_v26 = vrot.slane %v2308_v14, 1  ;;  %v2369_v28 = vrot.slane %v2309_v47, 1  ;;  %v2444_v29 = vmul.f32 %v4154_v56, %v2424_v17  ;;  %v2858_v14 = vld [vmem:[%s3367_s6 + $0x68] sm:$0x1] }
 0x139   : > { %v2446_v30 = vmul.f32 %v4154_v56, %v2288_v43  ;;  %v2271_v34 = vadd.f32 %v2255_v12, %v2203_v22  ;;  %v2371_v35 = vrot.slane %v2310_v23, 1  ;;  %v2505_v36 = vrot.slane %v2445_v24, 2 }
 0x13a   : > { %v2270_v33 = vadd.f32 %v2254_v6, %v2202_v21  ;;  %v2370_v37 = vsel %vm395_vm0, %v2368_v26, %v2369_v28  ;;  %v2504_v38 = vrot.slane %v2444_v29, 2  ;;  %v305_v3 = vunpack.c.l.bf16 %v289_v52 }
 0x13b   : > { %v2507_v39 = vrot.slane %v2446_v30, 2  ;;  %v2372_v45 = vsel %vm395_vm0, %v2369_v28, %v2371_v35  ;;  %v306_v49 = vunpack.c.h.bf16 %v289_v52  ;;  %v342_v20 = vunpack.c.l.bf16 %v334_v31  ;;  %v2866_v28 = vld [vmem:[%s3367_s6 + $0x60] sm:$0xe] }
 0x13c   : > { %v2406_v46 = vadd.f32 %v2370_v37, %v2270_v33  ;;  %v2407_v50 = vadd.f32 %v2372_v45, %v2271_v34  ;;  %v2506_v51 = vsel %vm536_vm1, %v2504_v38, %v2505_v36  ;;  %v325_v53 = vmul.f32 %v3381_v11, %v305_v3 }
 0x13d   : > { %v2508_v54 = vsel %vm536_vm1, %v2505_v36, %v2507_v39  ;;  %v326_v27 = vmul.f32 %v3381_v11, %v306_v49  ;;  %v368_v58 = vmul.f32 %v3385_v13, %v305_v3  ;;  %v369_v59 = vmul.f32 %v3385_v13, %v306_v49 }
 0x13e   : > { %v2542_v55 = vadd.f32 %v2506_v51, %v2406_v46  ;;  %v2543_v60 = vadd.f32 %v2508_v54, %v2407_v50  ;;  %v370_v63 = vmul.f32 %v3385_v13, %v342_v20  ;;  %v483_v1 = vunpack.c.l.bf16 %v475_v9  ;;  %v2881_v46 = vld [vmem:[%s3367_s6 + $0x6c] sm:$0xff]  }
 0x13f   : > { %v510_v41 = vmul.f32 %v3389_v15, %v306_v49  ;;  %v431_v2 = vrot.slane %v368_v58, 1  ;;  %v432_v6 = vrot.slane %v369_v59, 1  ;;  %v511_v4 = vmul.f32 %v3389_v15, %v342_v20  ;;  %v2890_v58 = vld [vmem:[%s3367_s6 + $0x74] sm:$0x1] }
 0x140   : > { %v2558_v32 = vadd.f32 %v4182_v42, %v2542_v55  ;;  %v2559_v10 = vadd.f32 %v4182_v42, %v2543_v60  ;;  %v434_v12 = vrot.slane %v370_v63, 1  ;;  %v509_v43 = vmul.f32 %v3389_v15, %v483_v1 }
 0x141   : > { %v573_v18 = vrot.slane %v510_v41, 2  ;;  %v433_v17 = vsel %vm395_vm0, %v431_v2, %v432_v6  ;;  %v575_v21 = vrot.slane %v511_v4, 2  ;;  %v663_v22 = vmul.f32 %v4133_v5, %v3397_v25 }
 0x142   : > { %v2574_v47 = vmax.f32 %v2558_v32, 0.0  ;;  %v2575_v23 = vmax.f32 %v2559_v10, 0.0  ;;  %v435_v24 = vsel %vm395_vm0, %v432_v6, %v434_v12  ;;  %v466_v52 = vadd.f32 %v433_v17, %v325_v53  ;;  %v2898_v10 = vld [vmem:[%s3367_s6 + $0x6c] sm:$0xe] }
 0x143   : > { %v572_v26 = vrot.slane %v509_v43, 2  ;;  %v467_v29 = vadd.f32 %v435_v24, %v326_v27  ;;  %v576_v30 = vsel %vm536_vm1, %v573_v18, %v575_v21  ;;  %v664_v31 = vmul.f32 %v4136_v8, %v3397_v25 }
 0x144   : > { %v696_v33 = vunpack.c.l.bf16 %v2858_v14  ;;  %v2584_v34 = vpack.c.bf16 %v2575_v23, %v2574_v47  ;;  %v722_v36 = vmul.f32 %v4133_v5, %v3420_v48  ;;  %v723_v37 = vmul.f32 %v4136_v8, %v3420_v48 }
 0x145   : > { %v574_v35 = vsel %vm536_vm1, %v572_v26, %v573_v18  ;;  %v608_v39 = vadd.f32 %v576_v30, %v467_v29  ;;  %v836_v45 = vunpack.c.l.bf16 %v2866_v28  ;;  %v4266_v49 = vpop.f32.mrb[0].mxu1  ;;  %v863_v50 = vmul.f32 %v4136_v8, %v3433_v61  ;;  %v2924_v28 = vld [vmem:[%s3367_s6 + $0xb4] sm:$0xff]  }
 0x146   : > { %v607_v38 = vadd.f32 %v574_v35, %v466_v52  ;;  %v724_v3 = vmul.f32 %v3420_v48, %v696_v33  ;;  %3236 = vmatprep.mubr.bf16.mxu1 %v2584_v34  ;;  %v784_v20 = vrot.slane %v722_v36, 1  ;;  %v785_v9 = vrot.slane %v723_v37, 1  ;;  %v4271_v51 = vpop.f32.mrb[1].mxu1 }
 0x147   : > { %v864_v5 = vmul.f32 %v3433_v61, %v696_v33  ;;  %v680_v53 = vadd.f32 %v664_v31, %v608_v39  ;;  %v862_v27 = vmul.f32 %v3433_v61, %v836_v45  ;;  %v4275_v59 = vpop.f32.mrb[2].mxu1  ;;  %v925_v63 = vrot.slane %v863_v50, 2 }
 0x148   : > { %v679_v54 = vadd.f32 %v663_v22, %v607_v38  ;;  %v787_v55 = vrot.slane %v724_v3, 1  ;;  %v786_v60 = vsel %vm395_vm0, %v784_v20, %v785_v9  ;;  %v995_v41 = vunpack.c.l.bf16 %v2881_v46  ;;  %v4278_v32 = vpop.f32.mrb[3].mxu1  ;;  %v2933_v38 = vld [vmem:[%s3367_s6 + $0xbc] sm:$0x1] }
 0x149   : > { %v927_v1 = vrot.slane %v864_v5, 2  ;;  %v924_v6 = vrot.slane %v862_v27, 2  ;;  %v996_v4 = vunpack.c.h.bf16 %v2881_v46  ;;  %v1048_v14 = vunpack.c.l.bf16 %v2890_v58 }
 0x14a   : > { %v788_v8 = vsel %vm395_vm0, %v785_v9, %v787_v55  ;;  %v819_v2 = vadd.f32 %v786_v60, %v679_v54  ;;  %v1015_v18 = vmul.f32 %v3445_v16, %v995_v41  ;;  %v1074_v21 = vmul.f32 %v3470_v40, %v995_v41  ;;  %v2941_v54 = vld [vmem:[%s3367_s6 + $0xb4] sm:$0xe] }
 0x14b   : > { %v820_v12 = vadd.f32 %v788_v8, %v680_v53  ;;  %v928_v43 = vsel %vm536_vm1, %v925_v63, %v927_v1  ;;  %v926_v47 = vsel %vm536_vm1, %v924_v6, %v925_v63  ;;  %v1016_v17 = vmul.f32 %v3445_v16, %v996_v4 }
 0x14c   : > { %v1075_v22 = vmul.f32 %v3470_v40, %v996_v4  ;;  %v959_v23 = vadd.f32 %v926_v47, %v819_v2  ;;  %v1076_v52 = vmul.f32 %v3470_v40, %v1048_v14  ;;  %v1188_v26 = vunpack.c.l.bf16 %v2898_v10 }
 0x14d   : > { %v960_v24 = vadd.f32 %v928_v43, %v820_v12  ;;  %v1136_v29 = vrot.slane %v1074_v21, 1  ;;  %v1215_v31 = vmul.f32 %v4154_v56, %v996_v4  ;;  %v1216_v33 = vmul.f32 %v4154_v56, %v1048_v14 }
 0x14e   : > { %v1137_v30 = vrot.slane %v1075_v22, 1  ;;  %v1031_v34 = vadd.f32 %v1015_v18, %v959_v23  ;;  %v1139_v36 = vrot.slane %v1076_v52, 1  ;;  %v1214_v37 = vmul.f32 %v4154_v56, %v1188_v26 }
 0x14f   : > { %v1032_v35 = vadd.f32 %v1016_v17, %v960_v24  ;;  %v1277_v3 = vrot.slane %v1215_v31, 2  ;;  %v1279_v45 = vrot.slane %v1216_v33, 2  ;;  %v1576_v46 = vunpack.c.l.bf16 %v2924_v28  ;;  %v2965_v24 = vld [vmem:[%s3367_s6 + $0xc8] sm:$0x1] }
 0x150   : > { %v1138_v39 = vsel %vm395_vm0, %v1136_v29, %v1137_v30  ;;  %v1140_v20 = vsel %vm395_vm0, %v1137_v30, %v1139_v36  ;;  %v1276_v50 = vrot.slane %v1214_v37, 2  ;;  %v1577_v5 = vunpack.c.h.bf16 %v2924_v28  ;;  %v2973_v30 = vld [vmem:[%s3367_s6 + $0xc0] sm:$0xe] }
 0x151   : > { %v1171_v9 = vadd.f32 %v1138_v39, %v1031_v34  ;;  %v1172_v53 = vadd.f32 %v1140_v20, %v1032_v35  ;;  %v1280_v55 = vsel %vm536_vm1, %v1277_v3, %v1279_v45  ;;  %v1592_v27 = vmul.f32 %v1576_v46, %v3381_v11  ;;  %v2988_v20 = vld [vmem:[%s3367_s6 + $0xcc] sm:$0xff]  }
 0x152   : > { %v1609_v58 = vunpack.c.l.bf16 %v2933_v38  ;;  %v1278_v60 = vsel %vm536_vm1, %v1276_v50, %v1277_v3  ;;  %v1593_v63 = vmul.f32 %v1577_v5, %v3381_v11  ;;  %v1631_v1 = vmul.f32 %v1576_v46, %v3385_v13 }
 0x153   : > { %v1632_v41 = vmul.f32 %v1577_v5, %v3385_v13  ;;  %v1311_v8 = vadd.f32 %v1278_v60, %v1171_v9  ;;  %v1312_v2 = vadd.f32 %v1280_v55, %v1172_v53  ;;  %v1745_v4 = vunpack.c.l.bf16 %v2941_v54  ;;  %v2997_v54 = vld [vmem:[%s3367_s6 + $0xd4] sm:$0x1] }
 0x154   : > { %v1633_v6 = vmul.f32 %v1609_v58, %v3385_v13  ;;  %v1693_v10 = vrot.slane %v1631_v1, 1  ;;  %v1768_v43 = vmul.f32 %v1577_v5, %v3389_v15  ;;  %v1769_v18 = vmul.f32 %v1609_v58, %v3389_v15 }
 0x155   : > { %v1694_v12 = vrot.slane %v1632_v41, 1  ;;  %v1333_v14 = vadd.f32 %v4182_v42, %v1311_v8  ;;  %v1334_v11 = vadd.f32 %v4182_v42, %v1312_v2  ;;  %v1767_v17 = vmul.f32 %v1745_v4, %v3389_v15 }
 0x156   : > { %v1696_v47 = vrot.slane %v1633_v6, 1  ;;  %v1830_v22 = vrot.slane %v1768_v43, 2  ;;  %v1832_v23 = vrot.slane %v1769_v18, 2  ;;  %v1916_v13 = vmul.f32 %v4208_v57, %v3397_v25 }
 0x157   : > { %v1695_v21 = vsel %vm395_vm0, %v1693_v10, %v1694_v12  ;;  %v1349_v52 = vmax.f32 %v1333_v14, 0.0  ;;  %v1350_v26 = vmax.f32 %v1334_v11, 0.0  ;;  %v1829_v33 = vrot.slane %v1767_v17, 2  ;;  %v4341_v11 = vld [vmem:[%s4445_s4] ss:$0 sm:$0xff] }
 0x158   : > { %v1697_v28 = vsel %vm395_vm0, %v1694_v12, %v1696_v47  ;;  %v1728_v29 = vadd.f32 %v1695_v21, %v1592_v27  ;;  %v1833_v34 = vsel %vm536_vm1, %v1830_v22, %v1832_v23  ;;  %v1917_v15 = vmul.f32 %v4214_v0, %v3397_v25  ;;  %v3005_v12 = vld [vmem:[%s3367_s6 + $0xcc] sm:$0xe] }
 0x159   : > { %v1729_v31 = vadd.f32 %v1697_v28, %v1593_v63  ;;  %v1358_v35 = vpack.c.bf16 %v1350_v26, %v1349_v52  ;;  %v1949_v36 = vunpack.c.l.bf16 %v2965_v24  ;;  %v1971_v37 = vmul.f32 %v4208_v57, %v3420_v48 }
 0x15a   : > { %v1972_v38 = vmul.f32 %v4214_v0, %v3420_v48  ;;  %v1831_v39 = vsel %vm536_vm1, %v1829_v33, %v1830_v22  ;;  %v2085_v45 = vunpack.c.l.bf16 %v2973_v30  ;;  %v2108_v46 = vmul.f32 %v4214_v0, %v3433_v61 }
 0x15b   : > { %v1865_v3 = vadd.f32 %v1833_v34, %v1729_v31  ;;  %3205 = vmatmul.mubr.bf16.gmra.mrb[12].mxu0 %v1358_v35  ;;  %v1864_v9 = vadd.f32 %v1831_v39, %v1728_v29  ;;  %v1973_v25 = vmul.f32 %v1949_v36, %v3420_v48  ;;  %v2033_v50 = vrot.slane %v1971_v37, 1 }
 0x15c   : > { %v2034_v5 = vrot.slane %v1972_v38, 1  ;;  %v2107_v57 = vmul.f32 %v2085_v45, %v3433_v61  ;;  %v2109_v55 = vmul.f32 %v1949_v36, %v3433_v61  ;;  %v2170_v27 = vrot.slane %v2108_v46, 2 }
 0x15d   : > { %v1933_v53 = vadd.f32 %v1917_v15, %v1865_v3  ;;  %v1932_v58 = vadd.f32 %v1916_v13, %v1864_v9  ;;  %v2036_v63 = vrot.slane %v1973_v25, 1  ;;  %v2240_v0 = vunpack.c.l.bf16 %v2988_v20 }
 0x15e   : > { %v2035_v60 = vsel %vm395_vm0, %v2033_v50, %v2034_v5  ;;  %v2169_v1 = vrot.slane %v2107_v57, 2  ;;  %v2172_v41 = vrot.slane %v2109_v55, 2  ;;  %v2241_v8 = vunpack.c.h.bf16 %v2988_v20 }
 0x15f   : > { %v2289_v48 = vunpack.c.l.bf16 %v2997_v54  ;;  %v2037_v2 = vsel %vm395_vm0, %v2034_v5, %v2036_v63  ;;  %v2068_v6 = vadd.f32 %v2035_v60, %v1932_v58  ;;  %v2256_v4 = vmul.f32 %v2240_v0, %v3445_v16 }
 0x160   : > { %v2311_v10 = vmul.f32 %v2240_v0, %v3470_v40  ;;  %v2069_v61 = vadd.f32 %v2037_v2, %v1933_v53  ;;  %v2171_v43 = vsel %vm536_vm1, %v2169_v1, %v2170_v27  ;;  %v2173_v18 = vsel %vm536_vm1, %v2170_v27, %v2172_v41 }
 0x161   : > { %v2257_v14 = vmul.f32 %v2241_v8, %v3445_v16  ;;  %v2204_v47 = vadd.f32 %v2171_v43, %v2068_v6  ;;  %v2312_v17 = vmul.f32 %v2241_v8, %v3470_v40  ;;  %v2313_v21 = vmul.f32 %v2289_v48, %v3470_v40 }
 0x162   : > { %v2373_v22 = vrot.slane %v2311_v10, 1  ;;  %v2205_v23 = vadd.f32 %v2173_v18, %v2069_v61  ;;  %v2425_v13 = vunpack.c.l.bf16 %v3005_v12  ;;  %v2448_v24 = vmul.f32 %v4154_v56, %v2241_v8 }
 0x163   : > { %v2449_v52 = vmul.f32 %v4154_v56, %v2289_v48  ;;  %v2272_v26 = vadd.f32 %v2256_v4, %v2204_v47  ;;  %v2374_v16 = vrot.slane %v2312_v17, 1  ;;  %v2376_v28 = vrot.slane %v2313_v21, 1 }
 0x164   : > { %v1456_v29 = vadd.f32 %v4198_v44, %v4341_v11  ;;  %v2273_v30 = vadd.f32 %v2257_v14, %v2205_v23  ;;  %v2447_v31 = vmul.f32 %v4154_v56, %v2425_v13  ;;  %v2510_v33 = vrot.slane %v2448_v24, 2 }
 0x165   : > { %v2512_v34 = vrot.slane %v2449_v52, 2  ;;  %v2375_v40 = vsel %vm395_vm0, %v2373_v22, %v2374_v16  ;;  %v2377_v15 = vsel %vm395_vm0, %v2374_v16, %v2376_v28  ;;  %v2629_v44 = vadd.f32 %v4266_v49, %v4341_v11 }
 0x166   : > { %v1512_v35 = vmax.f32 %v1456_v29, 0.0  ;;  %v2408_v36 = vadd.f32 %v2375_v40, %v2272_v26  ;;  %v2409_v37 = vadd.f32 %v2377_v15, %v2273_v30  ;;  %v2509_v56 = vrot.slane %v2447_v31, 2 }
 0x167   : > { %v2513_v38 = vsel %vm536_vm1, %v2510_v33, %v2512_v34  ;;  %v2685_v39 = vmax.f32 %v2629_v44, 0.0  ;;  %v1448_v3 = vadd.f32 %v4341_v11, %v4201_v19  ;;  %v2621_v45 = vadd.f32 %v4341_v11, %v4271_v51 }
 0x168   : > { %1528 = vst [vmem:[%s4354_s18 + $0x10] sm:$0xff] %v1512_v35  ;;  %v1459_v46 = vadd.f32 %v4205_v7, %v4341_v11  ;;  %v2511_v49 = vsel %vm536_vm1, %v2509_v56, %v2510_v33  ;;  %v2545_v20 = vadd.f32 %v2513_v38, %v2409_v37  ;;  %v2632_v9 = vadd.f32 %v4275_v59, %v4341_v11 }
 0x169   : > { %v1451_v25 = vadd.f32 %v4341_v11, %v4211_v62  ;;  %v2544_v19 = vadd.f32 %v2511_v49, %v2408_v36  ;;  %3008 = vst [vmem:[%s4354_s18 + $0x90] sm:$0xff] %v2685_v39  ;;  %v1510_v51 = vmax.f32 %v1448_v3, 0.0  ;;  %v2683_v50 = vmax.f32 %v2621_v45, 0.0 }
 0x16a   : > { %v1513_v5 = vmax.f32 %v1459_v46, 0.0  ;;  %v2561_v7 = vadd.f32 %v4182_v42, %v2545_v20  ;;  %v2686_v54 = vmax.f32 %v2632_v9, 0.0  ;;  %v2624_v57 = vadd.f32 %v4341_v11, %v4278_v32 }
 0x16b   : > { %v1511_v53 = vmax.f32 %v1451_v25, 0.0  ;;  %v2560_v59 = vadd.f32 %v4182_v42, %v2544_v19  ;;  %1526 = vst [vmem:[%s4354_s18] sm:$0xff] %v1510_v51  ;;  %3006 = vst [vmem:[%s4354_s18 + $0x80] sm:$0xff] %v2683_v50 }
 0x16c   : > { %1529 = vst [vmem:[%s4354_s18 + $0x18] sm:$0xff] %v1513_v5  ;;  %v2577_v62 = vmax.f32 %v2561_v7, 0.0  ;;  %3009 = vst [vmem:[%s4354_s18 + $0x98] sm:$0xff] %v2686_v54  ;;  %v2684_v55 = vmax.f32 %v2624_v57, 0.0 }
 0x16d   : > { %1527 = vst [vmem:[%s4354_s18 + $0x8] sm:$0xff] %v1511_v53  ;;  %v2576_v27 = vmax.f32 %v2560_v59, 0.0 }
 0x16e   : > { %3007 = vst [vmem:[%s4354_s18 + $0x88] sm:$0xff] %v2684_v55 }
 0x16f   : > { %v2585_v58 = vpack.c.bf16 %v2577_v62, %v2576_v27 }
 0x171   : > { %3237 = vmatmul.mubr.bf16.gmra.mrb[12].mxu1 %v2585_v58 }
 0x184   : > { %v3198_v60 = vpop.f32.mrb[4].mxu0 }
 0x185   : > { %v1472_v32 = vadd.f32 %v3198_v60, %v4341_v11  ;;  %v1463_v63 = vpop.f32.mrb[5].mxu0 }
 0x186   : > { %v1464_v42 = vadd.f32 %v4341_v11, %v1463_v63  ;;  %v3199_v0 = vpop.f32.mrb[6].mxu0 }
 0x187   : > { %v1516_v1 = vmax.f32 %v1472_v32, 0.0  ;;  %v1475_v41 = vadd.f32 %v3199_v0, %v4341_v11  ;;  %v1466_v8 = vpop.f32.mrb[7].mxu0 }
 0x188   : > { %v1514_v48 = vmax.f32 %v1464_v42, 0.0  ;;  %v1467_v2 = vadd.f32 %v4341_v11, %v1466_v8 }
 0x189   : > { %1532 = vst [vmem:[%s4354_s18 + $0x30] sm:$0xff] %v1516_v1  ;;  %v1517_v6 = vmax.f32 %v1475_v41, 0.0 }
 0x18a   : > { %1530 = vst [vmem:[%s4354_s18 + $0x20] sm:$0xff] %v1514_v48  ;;  %v1515_v4 = vmax.f32 %v1467_v2, 0.0 }
 0x18b   : > { %1533 = vst [vmem:[%s4354_s18 + $0x38] sm:$0xff] %v1517_v6 }
 0x18c   : > { %1531 = vst [vmem:[%s4354_s18 + $0x28] sm:$0xff] %v1515_v4 }
 0x19a   : > { %v3230_v10 = vpop.f32.mrb[4].mxu1 }
 0x19b   : > { %v2645_v12 = vadd.f32 %v3230_v10, %v4341_v11  ;;  %v2636_v61 = vpop.f32.mrb[5].mxu1 }
 0x19c   : > { %v2637_v43 = vadd.f32 %v4341_v11, %v2636_v61  ;;  %v3231_v18 = vpop.f32.mrb[6].mxu1 }
 0x19d   : > { %v2689_v14 = vmax.f32 %v2645_v12, 0.0  ;;  %v2648_v47 = vadd.f32 %v3231_v18, %v4341_v11  ;;  %v2639_v17 = vpop.f32.mrb[7].mxu1 }
 0x19e   : > { %v2687_v21 = vmax.f32 %v2637_v43, 0.0  ;;  %v2640_v22 = vadd.f32 %v4341_v11, %v2639_v17 }
 0x19f   : > { %3012 = vst [vmem:[%s4354_s18 + $0xb0] sm:$0xff] %v2689_v14  ;;  %v2690_v23 = vmax.f32 %v2648_v47, 0.0 }
 0x1a0   : > { %3010 = vst [vmem:[%s4354_s18 + $0xa0] sm:$0xff] %v2687_v21  ;;  %v2688_v13 = vmax.f32 %v2640_v22, 0.0 }
 0x1a1   : > { %3013 = vst [vmem:[%s4354_s18 + $0xb8] sm:$0xff] %v2690_v23 }
 0x1a2   : > { %3011 = vst [vmem:[%s4354_s18 + $0xa8] sm:$0xff] %v2688_v13 }
 0x1d9   : > { %v3202_v24 = vpop.f32.mrb[8].mxu0 }
 0x1da   : > { %v1488_v52 = vadd.f32 %v3202_v24, %v4341_v11  ;;  %v1479_v26 = vpop.f32.mrb[9].mxu0 }
 0x1db   : > { %v1480_v16 = vadd.f32 %v4341_v11, %v1479_v26  ;;  %v3203_v28 = vpop.f32.mrb[10].mxu0 }
 0x1dc   : > { %v1520_v29 = vmax.f32 %v1488_v52, 0.0  ;;  %v1491_v30 = vadd.f32 %v3203_v28, %v4341_v11  ;;  %v1482_v31 = vpop.f32.mrb[11].mxu0 }
 0x1dd   : > { %v1518_v33 = vmax.f32 %v1480_v16, 0.0  ;;  %v1483_v34 = vadd.f32 %v4341_v11, %v1482_v31 }
 0x1de   : > { %1536 = vst [vmem:[%s4354_s18 + $0x50] sm:$0xff] %v1520_v29  ;;  %v1521_v40 = vmax.f32 %v1491_v30, 0.0 }
 0x1df   : > { %1534 = vst [vmem:[%s4354_s18 + $0x40] sm:$0xff] %v1518_v33  ;;  %v1519_v15 = vmax.f32 %v1483_v34, 0.0 }
 0x1e0   : > { %1537 = vst [vmem:[%s4354_s18 + $0x58] sm:$0xff] %v1521_v40 }
 0x1e1   : > { %1535 = vst [vmem:[%s4354_s18 + $0x48] sm:$0xff] %v1519_v15 }
 0x1ef   : > { %v3234_v35 = vpop.f32.mrb[8].mxu1 }
 0x1f0   : > { %v2661_v44 = vadd.f32 %v3234_v35, %v4341_v11  ;;  %v2652_v36 = vpop.f32.mrb[9].mxu1 }
 0x1f1   : > { %v2653_v37 = vadd.f32 %v4341_v11, %v2652_v36  ;;  %v3235_v56 = vpop.f32.mrb[10].mxu1 }
 0x1f2   : > { %v2693_v38 = vmax.f32 %v2661_v44, 0.0  ;;  %v2664_v39 = vadd.f32 %v3235_v56, %v4341_v11  ;;  %v2655_v3 = vpop.f32.mrb[11].mxu1 }
 0x1f3   : > { %v2691_v45 = vmax.f32 %v2653_v37, 0.0  ;;  %v2656_v46 = vadd.f32 %v4341_v11, %v2655_v3 }
 0x1f4   : > { %3016 = vst [vmem:[%s4354_s18 + $0xd0] sm:$0xff] %v2693_v38  ;;  %v2694_v49 = vmax.f32 %v2664_v39, 0.0 }
 0x1f5   : > { %3014 = vst [vmem:[%s4354_s18 + $0xc0] sm:$0xff] %v2691_v45  ;;  %v2692_v20 = vmax.f32 %v2656_v46, 0.0 }
 0x1f6   : > { %3017 = vst [vmem:[%s4354_s18 + $0xd8] sm:$0xff] %v2694_v49 }
 0x1f7   : > { %3015 = vst [vmem:[%s4354_s18 + $0xc8] sm:$0xff] %v2692_v20 }
 0x22e   : > { %v3206_v9 = vpop.f32.mrb[12].mxu0 }
 0x22f   : > { %v1504_v25 = vadd.f32 %v3206_v9, %v4341_v11  ;;  %v1495_v19 = vpop.f32.mrb[13].mxu0 }
 0x230   : > { %v1496_v51 = vadd.f32 %v4341_v11, %v1495_v19  ;;  %v3207_v50 = vpop.f32.mrb[14].mxu0 }
 0x231   : > { %v1524_v5 = vmax.f32 %v1504_v25, 0.0  ;;  %v1507_v7 = vadd.f32 %v3207_v50, %v4341_v11  ;;  %v1498_v54 = vpop.f32.mrb[15].mxu0 }
 0x232   : > { %v1522_v53 = vmax.f32 %v1496_v51, 0.0  ;;  %v1499_v57 = vadd.f32 %v4341_v11, %v1498_v54 }
 0x233   : > { %1540 = vst [vmem:[%s4354_s18 + $0x70] sm:$0xff] %v1524_v5  ;;  %v1525_v59 = vmax.f32 %v1507_v7, 0.0 }
 0x234   : > { %1538 = vst [vmem:[%s4354_s18 + $0x60] sm:$0xff] %v1522_v53  ;;  %v1523_v62 = vmax.f32 %v1499_v57, 0.0 }
 0x235   : > { %1541 = vst [vmem:[%s4354_s18 + $0x78] sm:$0xff] %v1525_v59 }
 0x236   : > { %1539 = vst [vmem:[%s4354_s18 + $0x68] sm:$0xff] %v1523_v62 }
 0x244   : > { %v3238_v55 = vpop.f32.mrb[12].mxu1 }
 0x245   : > { %v2677_v27 = vadd.f32 %v3238_v55, %v4341_v11  ;;  %v2668_v58 = vpop.f32.mrb[13].mxu1 }
 0x246   : > { %v2669_v60 = vadd.f32 %v4341_v11, %v2668_v58  ;;  %v3239_v32 = vpop.f32.mrb[14].mxu1 }
 0x247   : > { %v2697_v63 = vmax.f32 %v2677_v27, 0.0  ;;  %v2680_v42 = vadd.f32 %v3239_v32, %v4341_v11  ;;  %v2671_v0 = vpop.f32.mrb[15].mxu1 }
 0x248   : > { %v2695_v1 = vmax.f32 %v2669_v60, 0.0  ;;  %v2672_v41 = vadd.f32 %v4341_v11, %v2671_v0 }
 0x249   : > { %3020 = vst [vmem:[%s4354_s18 + $0xf0] sm:$0xff] %v2697_v63  ;;  %v2698_v8 = vmax.f32 %v2680_v42, 0.0 }
 0x24a   : > { %3018 = vst [vmem:[%s4354_s18 + $0xe0] sm:$0xff] %v2695_v1  ;;  %v2696_v48 = vmax.f32 %v2672_v41, 0.0 }
 0x24b   : > { %3021 = vst [vmem:[%s4354_s18 + $0xf8] sm:$0xff] %v2698_v8 }
 0x24c   : > { %3019 = vst [vmem:[%s4354_s18 + $0xe8] sm:$0xff] %v2696_v48 }
 0x24d PF: > { %s15_s20 = sadd.s32 1, %s3299_s20   ;;  %s4447_s18 = smov %s3295_s19 }
 0x24e   : > { %p12_p5 = scmp.ge.s32.totalorder %s15_s20, 4   ;;  %s4448_s19 = smov %s4450_s21 }
 0x250   :  { %14 = sbr.rel (!%p12_p5) target bundleno = 2 (0x2), region = 77 }

// kernel: _dwsep_impl.1
= control target key start
LH: loop header
LB: loop body
LE: loop exit
PB: predicated region body
PF: predicated region fallthrough
CT: control target
= control target key end

     0   :  { %s3329_s18 = smov 0   ;;  %s3331_s19 = smov 0   ;;  %s4439_s0 = inlined_call_operand.vmem [shape: bf16[2,1,18,18,128], index: 0, kind: input, shape index: {}]   ;;  %s4440_s1 = inlined_call_operand.vmem [shape: f32[9,128], index: 1, kind: input, shape index: {}]   ;;  %s4441_s2 = inlined_call_operand.vmem [shape: f32[1,128], index: 2, kind: input, shape index: {}]   ;;  %s4442_s3 = inlined_call_operand.vmem [shape: bf16[128,128], index: 3, kind: input, shape index: {}]   ;;  %s4443_s4 = inlined_call_operand.vmem [shape: f32[1,128], index: 4, kind: input, shape index: {}]   ;;  %s4444_s5 = inlined_call_operand.vmem [shape: f32[2,16,16,128], index: 5, kind: output, shape index: {}]  }
   0x1   :  { %s3333_s20 = smov 0  }
   0x2 LB: > { %s27_s21 = sadd.s32 1, %s3293_s19  ;;  %p2829_p0 = scmp.ge.s32.totalorder %s3297_s20, 1  ;;  %s3297_s20 = sphi %s3333_s20, %s15_s20   ;;  %s3293_s19 = sphi %s3331_s19, %s4446_s19   ;;  %s3289_s18 = sphi %s3329_s18, %s4445_s18  }
   0x3   : > { %p29_p1 = scmp.ge.s32.totalorder %s27_s21, 2  ;;  %p201_p2 = scmp.lt.s32.totalorder %s3297_s20, 3 }
   0x5   : > { %s4448_s21 = smov (%p29_p1, %s27_s21), 0  ;;  %p202_p3 = pnand %p2829_p0, %p201_p2 }
   0x6   : > { %v3263_v0 = vld [vmem:[%s4442_s3] sm:$0xff] (!%p202_p3)   ;;  %p234_p4 = scmp.lt.s32.totalorder (!%p202_p3), %s3289_s18, 1  ;;  %v307_v1 = vlaneseq (!%p202_p3)  ;;  %v3264_v2 = vld [vmem:[%s4442_s3 + $0x8] sm:$0xff] (!%p202_p3)   ;;  %v3265_v4 = vld [vmem:[%s4442_s3 + $0x10] sm:$0xff] (!%p202_p3)   ;;  %vm395_vm0 = vcmask (!%p202_p3), 1046528   ;;  %vm536_vm1 = vcmask (!%p202_p3), 1045504  }
   0x7   : > { %205 = sbr.rel (%p202_p3) target bundleno = 589 (0x24d), region = 40  ;;  %3174 = vmatprep.subr.bf16.mxu0 (!%p202_p3), %v3263_v0  ;;  %3206 = vmatprep.subr.bf16.mxu1 (!%p202_p3), %v3263_v0  ;;  %v3266_v8 = vld [vmem:[%s4442_s3 + $0x18] sm:$0xff] (!%p202_p3)   ;;  %v3375_v9 = vld [vmem:[%s4440_s1] sm:$0xff] (!%p202_p3)  ;;  %v3268_v46 = vld [vmem:[%s4442_s3 + $0x28] sm:$0xff] (!%p202_p3)  }
   0x8   : > { %3175 = vmatpush3.bf16.msra.mxu0 (!%p202_p3), %v3263_v0  ;;  %3207 = vmatpush3.bf16.msra.mxu1 (!%p202_p3), %v3263_v0  ;;  %v3355_v3 = vshrl.u32 (!%p202_p3), %v307_v1, 7  ;;  %v3267_v27 = vld [vmem:[%s4442_s3 + $0x20] sm:$0xff] (!%p202_p3)   ;;  %v3269_v63 = vld [vmem:[%s4442_s3 + $0x30] sm:$0xff] (!%p202_p3)  }
   0x9   : > { %3176 = vmatprep.subr.bf16.mxu0 (!%p202_p3), %v3264_v2  ;;  %3208 = vmatprep.subr.bf16.mxu1 (!%p202_p3), %v3264_v2 }
   0xa   : > { %v309_v5 = vsub.s32 (!%p202_p3), 0, %v3355_v3  ;;  %v345_v6 = vsub.s32 (!%p202_p3), 1, %v3355_v3  ;;  %v486_v7 = vsub.s32 (!%p202_p3), 2, %v3355_v3  ;;  %v647_v16 = vsub.s32 (!%p202_p3), 3, %v3355_v3 }
   0xb   : > { %v699_v31 = vsub.s32 (!%p202_p3), 4, %v3355_v3  ;;  %v839_v50 = vsub.s32 (!%p202_p3), 5, %v3355_v3 }
   0xc   : > { %3177 = vmatpush3.bf16.msra.mxu0 (!%p202_p3), %v3264_v2  ;;  %3209 = vmatpush3.bf16.msra.mxu1 (!%p202_p3), %v3264_v2  ;;  %v3379_v11 = vrot.slane (!%p202_p3), %v3375_v9, %v309_v5  ;;  %v3383_v13 = vrot.slane (!%p202_p3), %v3375_v9, %v345_v6  ;;  %v3387_v15 = vrot.slane (!%p202_p3), %v3375_v9, %v486_v7 }
   0xd   : > { %3178 = vmatprep.subr.bf16.mxu0 (!%p202_p3), %v3265_v4  ;;  %3210 = vmatprep.subr.bf16.mxu1 (!%p202_p3), %v3265_v4  ;;  %v3395_v25 = vrot.slane (!%p202_p3), %v3375_v9, %v647_v16  ;;  %v3418_v48 = vrot.slane (!%p202_p3), %v3375_v9, %v699_v31  ;;  %v3431_v61 = vrot.slane (!%p202_p3), %v3375_v9, %v839_v50 }
   0xe   : > { %s4450_s18 = smov (!%p234_p4, %s3289_s18), 1 }
   0xf   : > { %s3238_s28 = smul.u32 216, %s4450_s18  ;;  %s3022_s13 = sshll.u32 %s4450_s18, 8 }
  0x10   : > { %3179 = vmatpush3.bf16.msra.mxu0 %v3265_v4  ;;  %3211 = vmatpush3.bf16.msra.mxu1 %v3265_v4  ;;  %v999_v4 = vsub.s32 6, %v3355_v3  ;;  %s4352_s18 = scalar_lea.vmem %s4444_s5, %s3022_s13 }
  0x11   : > { %s3365_s6 = scalar_lea.vmem %s4439_s0, %s3238_s28  ;;  %3180 = vmatprep.subr.bf16.mxu0 %v3266_v8  ;;  %3212 = vmatprep.subr.bf16.mxu1 %v3266_v8 }
  0x12   : > { %v3024_v10 = vld [vmem:[%s3365_s6] sm:$0xff]   ;;  %v327_v12 = vld [vmem:[%s3365_s6 + $0x8] sm:$0x1]  ;;  %v2833_v21 = vld [vmem:[%s3365_s6 + $0xc] sm:$0xff]   ;;  %v3443_v16 = vrot.slane %v3375_v9, %v999_v4 }
  0x13   : > { %v468_v14 = vld [vmem:[%s3365_s6] sm:$0xe]  ;;  %v3025_v17 = vunpack.c.l.bf16 %v3024_v10  ;;  %v3026_v18 = vunpack.c.h.bf16 %v3024_v10  ;;  %v335_v19 = vunpack.c.l.bf16 %v327_v12  ;;  %v3392_v22 = vld [vmem:[%s3365_s6 + $0x14] sm:$0x1]  ;;  %v629_v23 = vunpack.c.l.bf16 %v2833_v21  ;;  %v2857_v36 = vld [vmem:[%s3365_s6 + $0xc] sm:$0xe] }
  0x14   : > { %v476_v20 = vunpack.c.l.bf16 %v468_v14  ;;  %v630_v24 = vunpack.c.h.bf16 %v2833_v21  ;;  %v689_v26 = vunpack.c.l.bf16 %v3392_v22  ;;  %v3126_v41 = vld [vmem:[%s3365_s6 + $0x18] sm:$0xff]   ;;  %3181 = vmatpush3.bf16.msra.mxu0 %v3266_v8  ;;  %3213 = vmatpush3.bf16.msra.mxu1 %v3266_v8  ;;  %v829_v49 = vunpack.c.l.bf16 %v2857_v36 }
  0x15   : > { %v311_v28 = vmul.f32 %v3025_v17, %v3379_v11  ;;  %v312_v29 = vmul.f32 %v3026_v18, %v3379_v11  ;;  %v347_v30 = vmul.f32 %v3025_v17, %v3383_v13  ;;  %v348_v32 = vmul.f32 %v3026_v18, %v3383_v13  ;;  %3182 = vmatprep.subr.bf16.mxu0 %v3267_v27  ;;  %v2881_v17 = vld [vmem:[%s3365_s6 + $0x20] sm:$0x1] }
  0x16   : > { %v349_v33 = vmul.f32 %v3383_v13, %v335_v19  ;;  %v488_v34 = vmul.f32 %v3387_v15, %v476_v20  ;;  %v489_v35 = vmul.f32 %v3026_v18, %v3387_v15  ;;  %v490_v38 = vmul.f32 %v3387_v15, %v335_v19  ;;  %3214 = vmatprep.subr.bf16.mxu1 %v3267_v27  ;;  %v3449_v18 = vld [vmem:[%s4440_s1 + $0x8] ss:$0 sm:$0xff] }
  0x17   : > { %v396_v37 = vrot.slane %v347_v30, 1  ;;  %v649_v39 = vmul.f32 %v3395_v25, %v629_v23  ;;  %v650_v40 = vmul.f32 %v3395_v25, %v630_v24  ;;  %v397_v42 = vrot.slane %v348_v32, 1  ;;  %v3130_v30 = vld [vmem:[%s3365_s6 + $0x60] sm:$0xff]  }
  0x18   : > { %v399_v43 = vrot.slane %v349_v33, 1  ;;  %v537_v44 = vrot.slane %v488_v34, 2  ;;  %v538_v45 = vrot.slane %v489_v35, 2  ;;  %v540_v47 = vrot.slane %v490_v38, 2  ;;  %3183 = vmatpush3.bf16.msra.mxu0 %v3267_v27  ;;  %3215 = vmatpush3.bf16.msra.mxu1 %v3267_v27 }
  0x19   : > { %v398_v51 = vsel %vm395_vm0, %v396_v37, %v397_v42  ;;  %v3424_v54 = vunpack.c.l.bf16 %v3126_v41  ;;  %v701_v58 = vmul.f32 %v3418_v48, %v629_v23  ;;  %v702_v59 = vmul.f32 %v3418_v48, %v630_v24  ;;  %3184 = vmatprep.subr.bf16.mxu0 %v3268_v46  ;;  %3216 = vmatprep.subr.bf16.mxu1 %v3268_v46  ;;  %v2889_v23 = vld [vmem:[%s3365_s6 + $0x18] sm:$0xe] }
  0x1a   : > { %v400_v52 = vsel %vm395_vm0, %v397_v42, %v399_v43  ;;  %v539_v53 = vsel %vm536_vm1, %v537_v44, %v538_v45  ;;  %v452_v55 = vadd.f32 %v398_v51, %v311_v28  ;;  %v541_v57 = vsel %vm536_vm1, %v538_v45, %v540_v47 }
  0x1b   : > { %v453_v56 = vadd.f32 %v400_v52, %v312_v29  ;;  %v703_v60 = vmul.f32 %v3418_v48, %v689_v26  ;;  %v3433_v62 = vunpack.c.h.bf16 %v3126_v41  ;;  %v749_v2 = vrot.slane %v701_v58, 1 }
  0x1c   : > { %v593_v0 = vadd.f32 %v539_v53, %v452_v55  ;;  %v750_v5 = vrot.slane %v702_v59, 1  ;;  %v841_v7 = vmul.f32 %v3431_v61, %v829_v49  ;;  %v842_v8 = vmul.f32 %v3431_v61, %v630_v24  ;;  %3185 = vmatpush3.bf16.msra.mxu0 %v3268_v46  ;;  %3217 = vmatpush3.bf16.msra.mxu1 %v3268_v46  ;;  %v3270_v24 = vld [vmem:[%s4442_s3 + $0x38] sm:$0xff]   ;;  %v2924_v46 = vld [vmem:[%s3365_s6 + $0x68] sm:$0x1] }
  0x1d   : > { %v594_v1 = vadd.f32 %v541_v57, %v453_v56  ;;  %v752_v6 = vrot.slane %v703_v60, 1  ;;  %v843_v14 = vmul.f32 %v3431_v61, %v689_v26  ;;  %3186 = vmatprep.subr.bf16.mxu0 %v3269_v63  ;;  %3218 = vmatprep.subr.bf16.mxu1 %v3269_v63  ;;  %v1001_v29 = vmul.f32 %v3424_v54, %v3443_v16  ;;  %v2932_v56 = vld [vmem:[%s3365_s6 + $0x60] sm:$0xe] }
  0x1e   : > { %v665_v10 = vadd.f32 %v649_v39, %v593_v0  ;;  %v751_v19 = vsel %vm395_vm0, %v749_v2, %v750_v5  ;;  %v889_v21 = vrot.slane %v841_v7, 2  ;;  %v890_v22 = vrot.slane %v842_v8, 2  ;;  %v2940_v8 = vld [vmem:[%s3365_s6 + $0x6c] sm:$0xff]  }
  0x1f   : > { %v666_v12 = vadd.f32 %v650_v40, %v594_v1  ;;  %v753_v20 = vsel %vm395_vm0, %v750_v5, %v752_v6  ;;  %v892_v28 = vrot.slane %v843_v14, 2  ;;  %v1002_v32 = vmul.f32 %v3433_v62, %v3443_v16 }
  0x20   : > { %v805_v26 = vadd.f32 %v751_v19, %v665_v10  ;;  %v891_v31 = vsel %vm536_vm1, %v889_v21, %v890_v22  ;;  %v1041_v33 = vunpack.c.l.bf16 %v2881_v17  ;;  %v1051_v34 = vsub.s32 7, %v3355_v3  ;;  %3187 = vmatpush3.bf16.msra.mxu0 %v3269_v63  ;;  %3219 = vmatpush3.bf16.msra.mxu1 %v3269_v63  ;;  %v3492_v19 = vld [vmem:[%s4441_s2] ss:$0 sm:$0xff] }
  0x21   : > { %v806_v27 = vadd.f32 %v753_v20, %v666_v12  ;;  %v893_v35 = vsel %vm536_vm1, %v890_v22, %v892_v28  ;;  %v1181_v37 = vunpack.c.l.bf16 %v2889_v23  ;;  %v1194_v38 = vmul.f32 %v3433_v62, %v3449_v18  ;;  %3188 = vmatprep.subr.bf16.mxu0 %v3270_v24  ;;  %3220 = vmatprep.subr.bf16.mxu1 %v3270_v24 }
  0x22   : > { %v945_v36 = vadd.f32 %v891_v31, %v805_v26  ;;  %v3468_v40 = vrot.slane %v3375_v9, %v1051_v34  ;;  %v1195_v41 = vmul.f32 %v3449_v18, %v1041_v33  ;;  %v3073_v42 = vunpack.c.l.bf16 %v3130_v30 }
  0x23   : > { %v946_v39 = vadd.f32 %v893_v35, %v806_v27  ;;  %v1193_v43 = vmul.f32 %v3449_v18, %v1181_v37  ;;  %v1242_v44 = vrot.slane %v1194_v38, 2  ;;  %v3074_v45 = vunpack.c.h.bf16 %v3130_v30 }
  0x24   : > { %v1017_v3 = vadd.f32 %v1001_v29, %v945_v36  ;;  %v1053_v49 = vmul.f32 %v3424_v54, %v3468_v40  ;;  %v1054_v9 = vmul.f32 %v3433_v62, %v3468_v40  ;;  %v1055_v50 = vmul.f32 %v3468_v40, %v1041_v33  ;;  %3189 = vmatpush3.bf16.msra.mxu0 %v3270_v24  ;;  %v2956_v29 = vld [vmem:[%s3365_s6 + $0x74] sm:$0x1] }
  0x25   : > { %v1018_v47 = vadd.f32 %v1002_v32, %v946_v39  ;;  %v1241_v51 = vrot.slane %v1193_v43, 2  ;;  %v1244_v52 = vrot.slane %v1195_v41, 2  ;;  %v1578_v53 = vmul.f32 %v3073_v42, %v3379_v11  ;;  %3221 = vmatpush3.bf16.msra.mxu1 %v3270_v24 }
  0x26   : > { %v1579_v55 = vmul.f32 %v3074_v45, %v3379_v11  ;;  %v1101_v57 = vrot.slane %v1053_v49, 1  ;;  %v1102_v58 = vrot.slane %v1054_v9, 1  ;;  %v1104_v59 = vrot.slane %v1055_v50, 1 }
  0x27   : > { %v1602_v60 = vunpack.c.l.bf16 %v2924_v46  ;;  %v1243_v63 = vsel %vm536_vm1, %v1241_v51, %v1242_v44  ;;  %v1245_v0 = vsel %vm536_vm1, %v1242_v44, %v1244_v52  ;;  %v1610_v1 = vmul.f32 %v3073_v42, %v3383_v13  ;;  %v3138_v51 = vld [vmem:[%s3365_s6 + $0x78] sm:$0xff]  }
  0x28   : > { %v1611_v2 = vmul.f32 %v3074_v45, %v3383_v13  ;;  %v1103_v4 = vsel %vm395_vm0, %v1101_v57, %v1102_v58  ;;  %v1105_v5 = vsel %vm395_vm0, %v1102_v58, %v1104_v59  ;;  %v1738_v7 = vunpack.c.l.bf16 %v2932_v56  ;;  %v2988_v57 = vld [vmem:[%s3365_s6 + $0x80] sm:$0x1] }
  0x29   : > { %v1612_v6 = vmul.f32 %v1602_v60, %v3383_v13  ;;  %v1157_v10 = vadd.f32 %v1103_v4, %v1017_v3  ;;  %v1158_v12 = vadd.f32 %v1105_v5, %v1018_v47  ;;  %v1658_v14 = vrot.slane %v1610_v1, 1  ;;  %v2964_v3 = vld [vmem:[%s3365_s6 + $0x6c] sm:$0xe] }
  0x2a   : > { %v1659_v17 = vrot.slane %v1611_v2, 1  ;;  %v1746_v21 = vmul.f32 %v1738_v7, %v3387_v15  ;;  %v1747_v22 = vmul.f32 %v3074_v45, %v3387_v15  ;;  %v1748_v23 = vmul.f32 %v1602_v60, %v3387_v15 }
  0x2b   : > { %v1661_v20 = vrot.slane %v1612_v6, 1  ;;  %v1297_v24 = vadd.f32 %v1243_v63, %v1157_v10  ;;  %v1298_v26 = vadd.f32 %v1245_v0, %v1158_v12  ;;  %v1886_v28 = vunpack.c.l.bf16 %v2940_v8 }
  0x2c   : > { %v1660_v27 = vsel %vm395_vm0, %v1658_v14, %v1659_v17  ;;  %v1794_v32 = vrot.slane %v1746_v21, 2  ;;  %v1795_v33 = vrot.slane %v1747_v22, 2  ;;  %v1797_v37 = vrot.slane %v1748_v23, 2 }
  0x2d   : > { %v1662_v30 = vsel %vm395_vm0, %v1659_v17, %v1661_v20  ;;  %v1714_v31 = vadd.f32 %v1660_v27, %v1578_v53  ;;  %v1319_v34 = vadd.f32 %v3492_v19, %v1297_v24  ;;  %v1320_v35 = vadd.f32 %v3492_v19, %v1298_v26  ;;  %v2996_v20 = vld [vmem:[%s3365_s6 + $0x78] sm:$0xe] }
  0x2e   : > { %v1715_v36 = vadd.f32 %v1662_v30, %v1579_v55  ;;  %v1796_v38 = vsel %vm536_vm1, %v1794_v32, %v1795_v33  ;;  %v1887_v39 = vunpack.c.h.bf16 %v2940_v8  ;;  %v1902_v41 = vmul.f32 %v1886_v28, %v3395_v25  ;;  %v277_v30 = vld [vmem:[%s3365_s6 + $0xc] sm:$0xff]  }
  0x2f   : > { %v1942_v42 = vunpack.c.l.bf16 %v2956_v29  ;;  %v1335_v43 = vmax.f32 %v1319_v34, 0.0  ;;  %v1336_v44 = vmax.f32 %v1320_v35, 0.0  ;;  %v1798_v45 = vsel %vm536_vm1, %v1795_v33, %v1797_v37 }
  0x30   : > { %v1850_v46 = vadd.f32 %v1796_v38, %v1714_v31  ;;  %v1851_v47 = vadd.f32 %v1798_v45, %v1715_v36  ;;  %v1903_v49 = vmul.f32 %v1887_v39, %v3395_v25  ;;  %v1950_v9 = vmul.f32 %v1886_v28, %v3418_v48 }
  0x31   : > { %v1951_v50 = vmul.f32 %v1887_v39, %v3418_v48  ;;  %v1351_v52 = vpack.c.bf16 %v1336_v44, %v1335_v43  ;;  %v1952_v55 = vmul.f32 %v1942_v42, %v3418_v48  ;;  %v2078_v56 = vunpack.c.l.bf16 %v2964_v3  ;;  %v328_v43 = vld [vmem:[%s3365_s6 + $0x14] sm:$0x1] }
  0x32   : > { %v1918_v53 = vadd.f32 %v1902_v41, %v1850_v46  ;;  %v1919_v58 = vadd.f32 %v1903_v49, %v1851_v47  ;;  %v1998_v59 = vrot.slane %v1950_v9, 1  ;;  %v2087_v63 = vmul.f32 %v1887_v39, %v3431_v61 }
  0x33   : > { %v1999_v60 = vrot.slane %v1951_v50, 1  ;;  %3190 = vmatprep.mubr.bf16.mxu0 %v1351_v52  ;;  %v2001_v0 = vrot.slane %v1952_v55, 1  ;;  %v2086_v1 = vmul.f32 %v2078_v56, %v3431_v61  ;;  %v2088_v2 = vmul.f32 %v1942_v42, %v3431_v61  ;;  %v469_v52 = vld [vmem:[%s3365_s6 + $0xc] sm:$0xe] }
  0x34   : > { %v3515_v4 = vunpack.c.l.bf16 %v3138_v51  ;;  %v2135_v6 = vrot.slane %v2087_v63, 2  ;;  %v3518_v7 = vunpack.c.h.bf16 %v3138_v51  ;;  %v2282_v8 = vunpack.c.l.bf16 %v2988_v57 }
  0x35   : > { %v2000_v5 = vsel %vm395_vm0, %v1998_v59, %v1999_v60  ;;  %v2002_v10 = vsel %vm395_vm0, %v1999_v60, %v2001_v0  ;;  %v2134_v14 = vrot.slane %v2086_v1, 2  ;;  %v2137_v17 = vrot.slane %v2088_v2, 2 }
  0x36   : > { %v2054_v12 = vadd.f32 %v2000_v5, %v1918_v53  ;;  %v2055_v21 = vadd.f32 %v2002_v10, %v1919_v58  ;;  %v2242_v22 = vmul.f32 %v3515_v4, %v3443_v16  ;;  %v2243_v23 = vmul.f32 %v3518_v7, %v3443_v16 }
  0x37   : > { %v2290_v24 = vmul.f32 %v3515_v4, %v3468_v40  ;;  %v2136_v26 = vsel %vm536_vm1, %v2134_v14, %v2135_v6  ;;  %v2138_v27 = vsel %vm536_vm1, %v2135_v6, %v2137_v17  ;;  %v2291_v28 = vmul.f32 %v3518_v7, %v3468_v40 }
  0x38   : > { %v2292_v29 = vmul.f32 %v2282_v8, %v3468_v40  ;;  %v2190_v31 = vadd.f32 %v2136_v26, %v2054_v12  ;;  %v2191_v32 = vadd.f32 %v2138_v27, %v2055_v21  ;;  %v2418_v34 = vunpack.c.l.bf16 %v2996_v20 }
  0x39   : > { %v2338_v33 = vrot.slane %v2290_v24, 1  ;;  %v2339_v35 = vrot.slane %v2291_v28, 1  ;;  %v2427_v37 = vmul.f32 %v3518_v7, %v3449_v18  ;;  %v2428_v38 = vmul.f32 %v3449_v18, %v2282_v8 }
  0x3a   : > { %v2341_v36 = vrot.slane %v2292_v29, 1  ;;  %v2258_v39 = vadd.f32 %v2242_v22, %v2190_v31  ;;  %v2259_v41 = vadd.f32 %v2243_v23, %v2191_v32  ;;  %v2426_v42 = vmul.f32 %v3449_v18, %v2418_v34  ;;  %v2850_v22 = vld [vmem:[%s3365_s6 + $0x20] sm:$0x1]  ;;  %v2858_v32 = vld [vmem:[%s3365_s6 + $0x18] sm:$0xe] }
  0x3b   : > { %v293_v3 = vunpack.c.l.bf16 %v277_v30  ;;  %v2340_v44 = vsel %vm395_vm0, %v2338_v33, %v2339_v35  ;;  %v2475_v46 = vrot.slane %v2427_v37, 2  ;;  %v2477_v47 = vrot.slane %v2428_v38, 2 }
  0x3c   : > { %v2342_v45 = vsel %vm395_vm0, %v2339_v35, %v2341_v36  ;;  %v2394_v49 = vadd.f32 %v2340_v44, %v2258_v39  ;;  %v2474_v50 = vrot.slane %v2426_v42, 2  ;;  %v294_v51 = vunpack.c.h.bf16 %v277_v30 }
  0x3d   : > { %v2395_v9 = vadd.f32 %v2342_v45, %v2259_v41  ;;  %v2478_v53 = vsel %vm536_vm1, %v2475_v46, %v2477_v47  ;;  %v313_v55 = vmul.f32 %v3379_v11, %v293_v3  ;;  %v336_v56 = vunpack.c.l.bf16 %v328_v43  ;;  %v2867_v45 = vld [vmem:[%s3365_s6 + $0x24] sm:$0xff]  }
  0x3e   : > { %v350_v57 = vmul.f32 %v3383_v13, %v293_v3  ;;  %v2476_v58 = vsel %vm536_vm1, %v2474_v50, %v2475_v46  ;;  %v314_v60 = vmul.f32 %v3379_v11, %v294_v51  ;;  %v351_v63 = vmul.f32 %v3383_v13, %v294_v51 }
  0x3f   : > { %v2531_v59 = vadd.f32 %v2478_v53, %v2395_v9  ;;  %v2530_v0 = vadd.f32 %v2476_v58, %v2394_v49  ;;  %v352_v1 = vmul.f32 %v3383_v13, %v336_v56  ;;  %v477_v5 = vunpack.c.l.bf16 %v469_v52 }
  0x40   : > { %v401_v2 = vrot.slane %v350_v57, 1  ;;  %v402_v8 = vrot.slane %v351_v63, 1  ;;  %v492_v10 = vmul.f32 %v3387_v15, %v294_v51  ;;  %v493_v12 = vmul.f32 %v3387_v15, %v336_v56 }
  0x41   : > { %v2547_v6 = vadd.f32 %v3492_v19, %v2531_v59  ;;  %v2546_v14 = vadd.f32 %v3492_v19, %v2530_v0  ;;  %v404_v17 = vrot.slane %v352_v1, 1  ;;  %v491_v20 = vmul.f32 %v3387_v15, %v477_v5 }
  0x42   : > { %v651_v21 = vmul.f32 %v3424_v54, %v3395_v25  ;;  %v403_v24 = vsel %vm395_vm0, %v401_v2, %v402_v8  ;;  %v543_v26 = vrot.slane %v492_v10, 2  ;;  %v545_v27 = vrot.slane %v493_v12, 2  ;;  %v2890_v2 = vld [vmem:[%s3365_s6 + $0x24] sm:$0xe] }
  0x43   : > { %v2563_v23 = vmax.f32 %v2547_v6, 0.0  ;;  %v2562_v28 = vmax.f32 %v2546_v14, 0.0  ;;  %v405_v29 = vsel %vm395_vm0, %v402_v8, %v404_v17  ;;  %v454_v30 = vadd.f32 %v403_v24, %v313_v55  ;;  %v2882_v55 = vld [vmem:[%s3365_s6 + $0x2c] sm:$0x1] }
  0x44   : > { %v542_v31 = vrot.slane %v491_v20, 2  ;;  %v455_v33 = vadd.f32 %v405_v29, %v314_v60  ;;  %v546_v34 = vsel %vm536_vm1, %v543_v26, %v545_v27  ;;  %v652_v35 = vmul.f32 %v3433_v62, %v3395_v25 }
  0x45   : > { %v690_v36 = vunpack.c.l.bf16 %v2850_v22  ;;  %v2578_v37 = vpack.c.bf16 %v2563_v23, %v2562_v28  ;;  %v704_v39 = vmul.f32 %v3424_v54, %v3418_v48  ;;  %v705_v41 = vmul.f32 %v3433_v62, %v3418_v48 }
  0x46   : > { %v544_v38 = vsel %vm536_vm1, %v542_v31, %v543_v26  ;;  %v596_v3 = vadd.f32 %v546_v34, %v455_v33  ;;  %v830_v44 = vunpack.c.l.bf16 %v2858_v32  ;;  %v845_v49 = vmul.f32 %v3433_v62, %v3431_v61  ;;  %v2910_v26 = vld [vmem:[%s3365_s6 + $0x6c] sm:$0xff]  }
  0x47   : > { %v595_v42 = vadd.f32 %v544_v38, %v454_v30  ;;  %v706_v43 = vmul.f32 %v3418_v48, %v690_v36  ;;  %3222 = vmatprep.mubr.bf16.mxu1 %v2578_v37  ;;  %v754_v46 = vrot.slane %v704_v39, 1  ;;  %v755_v47 = vrot.slane %v705_v41, 1 }
  0x48   : > { %v846_v9 = vmul.f32 %v3431_v61, %v690_v36  ;;  %v668_v51 = vadd.f32 %v652_v35, %v596_v3  ;;  %v844_v53 = vmul.f32 %v3431_v61, %v830_v44  ;;  %v895_v57 = vrot.slane %v845_v49, 2  ;;  %v2925_v35 = vld [vmem:[%s3365_s6 + $0x74] sm:$0x1]  ;;  %v2933_v44 = vld [vmem:[%s3365_s6 + $0x6c] sm:$0xe] }
  0x49   : > { %v667_v50 = vadd.f32 %v651_v21, %v595_v42  ;;  %v757_v52 = vrot.slane %v706_v43, 1  ;;  %v756_v56 = vsel %vm395_vm0, %v754_v46, %v755_v47  ;;  %v983_v59 = vunpack.c.l.bf16 %v2867_v45 }
  0x4a   : > { %v897_v58 = vrot.slane %v846_v9, 2  ;;  %v894_v0 = vrot.slane %v844_v53, 2  ;;  %v984_v1 = vunpack.c.h.bf16 %v2867_v45  ;;  %v1042_v10 = vunpack.c.l.bf16 %v2882_v55 }
  0x4b   : > { %v758_v60 = vsel %vm395_vm0, %v755_v47, %v757_v52  ;;  %v807_v63 = vadd.f32 %v756_v56, %v667_v50  ;;  %v1003_v8 = vmul.f32 %v3443_v16, %v983_v59  ;;  %v1056_v17 = vmul.f32 %v3468_v40, %v983_v59 }
  0x4c   : > { %v808_v5 = vadd.f32 %v758_v60, %v668_v51  ;;  %v898_v6 = vsel %vm536_vm1, %v895_v57, %v897_v58  ;;  %v896_v12 = vsel %vm536_vm1, %v894_v0, %v895_v57  ;;  %v1004_v14 = vmul.f32 %v3443_v16, %v984_v1 }
  0x4d   : > { %v1057_v20 = vmul.f32 %v3468_v40, %v984_v1  ;;  %v947_v21 = vadd.f32 %v896_v12, %v807_v63  ;;  %v1058_v23 = vmul.f32 %v3468_v40, %v1042_v10  ;;  %v1182_v24 = vunpack.c.l.bf16 %v2890_v2 }
  0x4e   : > { %v948_v22 = vadd.f32 %v898_v6, %v808_v5  ;;  %v1106_v27 = vrot.slane %v1056_v17, 1  ;;  %v1197_v29 = vmul.f32 %v3449_v18, %v984_v1  ;;  %v1198_v30 = vmul.f32 %v3449_v18, %v1042_v10 }
  0x4f   : > { %v1107_v28 = vrot.slane %v1057_v20, 1  ;;  %v1019_v31 = vadd.f32 %v1003_v8, %v947_v21  ;;  %v1109_v33 = vrot.slane %v1058_v23, 1  ;;  %v1196_v34 = vmul.f32 %v3449_v18, %v1182_v24  ;;  %v2965_v23 = vld [vmem:[%s3365_s6 + $0x78] sm:$0xe] }
  0x50   : > { %v1020_v32 = vadd.f32 %v1004_v14, %v948_v22  ;;  %v1247_v37 = vrot.slane %v1197_v29, 2  ;;  %v1249_v38 = vrot.slane %v1198_v30, 2  ;;  %v1564_v39 = vunpack.c.l.bf16 %v2910_v26  ;;  %v2957_v14 = vld [vmem:[%s3365_s6 + $0x80] sm:$0x1] }
  0x51   : > { %v1108_v36 = vsel %vm395_vm0, %v1106_v27, %v1107_v28  ;;  %v1110_v41 = vsel %vm395_vm0, %v1107_v28, %v1109_v33  ;;  %v1246_v3 = vrot.slane %v1196_v34, 2  ;;  %v1565_v43 = vunpack.c.h.bf16 %v2910_v26 }
  0x52   : > { %v1159_v42 = vadd.f32 %v1108_v36, %v1019_v31  ;;  %v1160_v45 = vadd.f32 %v1110_v41, %v1020_v32  ;;  %v1250_v46 = vsel %vm536_vm1, %v1247_v37, %v1249_v38  ;;  %v1580_v47 = vmul.f32 %v1564_v39, %v3379_v11 }
  0x53   : > { %v1603_v49 = vunpack.c.l.bf16 %v2925_v35  ;;  %v1248_v9 = vsel %vm536_vm1, %v1246_v3, %v1247_v37  ;;  %v1581_v50 = vmul.f32 %v1565_v43, %v3379_v11  ;;  %v1613_v51 = vmul.f32 %v1564_v39, %v3383_v13  ;;  %v2974_v37 = vld [vmem:[%s3365_s6 + $0x84] sm:$0xff]   ;;  %v2989_v3 = vld [vmem:[%s3365_s6 + $0x8c] sm:$0x1] }
  0x54   : > { %v1614_v52 = vmul.f32 %v1565_v43, %v3383_v13  ;;  %v1299_v53 = vadd.f32 %v1248_v9, %v1159_v42  ;;  %v1300_v55 = vadd.f32 %v1250_v46, %v1160_v45  ;;  %v1739_v57 = vunpack.c.l.bf16 %v2933_v44 }
  0x55   : > { %v1615_v56 = vmul.f32 %v1603_v49, %v3383_v13  ;;  %v1663_v58 = vrot.slane %v1613_v51, 1  ;;  %v1750_v60 = vmul.f32 %v1565_v43, %v3387_v15  ;;  %v1751_v63 = vmul.f32 %v1603_v49, %v3387_v15 }
  0x56   : > { %v1664_v59 = vrot.slane %v1614_v52, 1  ;;  %v1321_v0 = vadd.f32 %v3492_v19, %v1299_v53  ;;  %v1322_v1 = vadd.f32 %v3492_v19, %v1300_v55  ;;  %v1749_v5 = vmul.f32 %v1739_v57, %v3387_v15 }
  0x57   : > { %v1666_v2 = vrot.slane %v1615_v56, 1  ;;  %v1800_v8 = vrot.slane %v1750_v60, 2  ;;  %v1802_v10 = vrot.slane %v1751_v63, 2  ;;  %v1904_v12 = vmul.f32 %v3515_v4, %v3395_v25  ;;  %v2997_v60 = vld [vmem:[%s3365_s6 + $0x84] sm:$0xe] }
  0x58   : > { %v1665_v6 = vsel %vm395_vm0, %v1663_v58, %v1664_v59  ;;  %v1337_v17 = vmax.f32 %v1321_v0, 0.0  ;;  %v1338_v20 = vmax.f32 %v1322_v1, 0.0  ;;  %v1799_v26 = vrot.slane %v1749_v5, 2 }
  0x59   : > { %v1667_v21 = vsel %vm395_vm0, %v1664_v59, %v1666_v2  ;;  %v1716_v22 = vadd.f32 %v1665_v6, %v1580_v47  ;;  %v1803_v27 = vsel %vm536_vm1, %v1800_v8, %v1802_v10  ;;  %v1905_v28 = vmul.f32 %v3518_v7, %v3395_v25 }
  0x5a   : > { %v1717_v24 = vadd.f32 %v1667_v21, %v1581_v50  ;;  %v1352_v29 = vpack.c.bf16 %v1338_v20, %v1337_v17  ;;  %v1943_v30 = vunpack.c.l.bf16 %v2957_v14  ;;  %v1953_v31 = vmul.f32 %v3515_v4, %v3418_v48  ;;  %v329_v21 = vld [vmem:[%s3365_s6 + $0x20] sm:$0x1] }
  0x5b   : > { %v1954_v32 = vmul.f32 %v3518_v7, %v3418_v48  ;;  %v1801_v33 = vsel %vm536_vm1, %v1799_v26, %v1800_v8  ;;  %v2079_v35 = vunpack.c.l.bf16 %v2965_v23  ;;  %v2090_v36 = vmul.f32 %v3518_v7, %v3431_v61 }
  0x5c   : > { %v1853_v34 = vadd.f32 %v1803_v27, %v1717_v24  ;;  %3191 = vmatmul.mubr.bf16.vlgmr.msra.gmra.mrb[0].mxu0 %v1352_v29  ;;  %v1852_v38 = vadd.f32 %v1801_v33, %v1716_v22  ;;  %v1955_v39 = vmul.f32 %v1943_v30, %v3418_v48  ;;  %v2003_v41 = vrot.slane %v1953_v31, 1  ;;  %v470_v31 = vld [vmem:[%s3365_s6 + $0x18] sm:$0xe] }
  0x5d   : > { %v2004_v42 = vrot.slane %v1954_v32, 1  ;;  %v2089_v44 = vmul.f32 %v2079_v35, %v3431_v61  ;;  %v2091_v45 = vmul.f32 %v1943_v30, %v3431_v61  ;;  %v2140_v46 = vrot.slane %v2090_v36, 2 }
  0x5e   : > { %v1921_v43 = vadd.f32 %v1905_v28, %v1853_v34  ;;  %v1920_v47 = vadd.f32 %v1904_v12, %v1852_v38  ;;  %v2006_v9 = vrot.slane %v1955_v39, 1  ;;  %v2228_v50 = vunpack.c.l.bf16 %v2974_v37 }
  0x5f   : > { %v2005_v49 = vsel %vm395_vm0, %v2003_v41, %v2004_v42  ;;  %v2139_v51 = vrot.slane %v2089_v44, 2  ;;  %v2142_v52 = vrot.slane %v2091_v45, 2  ;;  %v2229_v53 = vunpack.c.h.bf16 %v2974_v37 }
  0x60   : > { %v2283_v55 = vunpack.c.l.bf16 %v2989_v3  ;;  %v2007_v56 = vsel %vm395_vm0, %v2004_v42, %v2006_v9  ;;  %v2056_v57 = vadd.f32 %v2005_v49, %v1920_v47  ;;  %v2244_v58 = vmul.f32 %v2228_v50, %v3443_v16  ;;  %v2837_v49 = vld [vmem:[%s3365_s6 + $0x24] sm:$0xff]  }
  0x61   : > { %v2293_v59 = vmul.f32 %v2228_v50, %v3468_v40  ;;  %v2057_v63 = vadd.f32 %v2007_v56, %v1921_v43  ;;  %v2141_v0 = vsel %vm536_vm1, %v2139_v51, %v2140_v46  ;;  %v2143_v1 = vsel %vm536_vm1, %v2140_v46, %v2142_v52 }
  0x62   : > { %v2245_v2 = vmul.f32 %v2229_v53, %v3443_v16  ;;  %v2192_v5 = vadd.f32 %v2141_v0, %v2056_v57  ;;  %v2294_v6 = vmul.f32 %v2229_v53, %v3468_v40  ;;  %v2295_v8 = vmul.f32 %v2283_v55, %v3468_v40 }
  0x63   : > { %v2343_v10 = vrot.slane %v2293_v59, 1  ;;  %v2193_v12 = vadd.f32 %v2143_v1, %v2057_v63  ;;  %v2419_v14 = vunpack.c.l.bf16 %v2997_v60  ;;  %v2430_v17 = vmul.f32 %v3449_v18, %v2229_v53  ;;  %v2851_v60 = vld [vmem:[%s3365_s6 + $0x2c] sm:$0x1] }
  0x64   : > { %v2431_v20 = vmul.f32 %v3449_v18, %v2283_v55  ;;  %v2260_v22 = vadd.f32 %v2244_v58, %v2192_v5  ;;  %v2344_v23 = vrot.slane %v2294_v6, 1  ;;  %v2346_v24 = vrot.slane %v2295_v8, 1 }
  0x65   : > { %v315_v26 = vmul.f32 %v3424_v54, %v3379_v11  ;;  %v2261_v27 = vadd.f32 %v2245_v2, %v2193_v12  ;;  %v2429_v28 = vmul.f32 %v3449_v18, %v2419_v14  ;;  %v2480_v29 = vrot.slane %v2430_v17, 2  ;;  %v2859_v12 = vld [vmem:[%s3365_s6 + $0x24] sm:$0xe] }
  0x66   : > { %v2482_v30 = vrot.slane %v2431_v20, 2  ;;  %v2345_v32 = vsel %vm395_vm0, %v2343_v10, %v2344_v23  ;;  %v2347_v33 = vsel %vm395_vm0, %v2344_v23, %v2346_v24  ;;  %v316_v34 = vmul.f32 %v3433_v62, %v3379_v11 }
  0x67   : > { %v337_v35 = vunpack.c.l.bf16 %v329_v21  ;;  %v2396_v36 = vadd.f32 %v2345_v32, %v2260_v22  ;;  %v2397_v37 = vadd.f32 %v2347_v33, %v2261_v27  ;;  %v2479_v38 = vrot.slane %v2429_v28, 2  ;;  %v3127_v27 = vld [vmem:[%s3365_s6 + $0x30] sm:$0xff]   ;;  %v2883_v32 = vld [vmem:[%s3365_s6 + $0x38] sm:$0x1] }
  0x68   : > { %v2483_v39 = vsel %vm536_vm1, %v2480_v29, %v2482_v30  ;;  %v353_v41 = vmul.f32 %v3424_v54, %v3383_v13  ;;  %v354_v42 = vmul.f32 %v3433_v62, %v3383_v13  ;;  %v478_v43 = vunpack.c.l.bf16 %v470_v31 }
  0x69   : > { %v355_v3 = vmul.f32 %v3383_v13, %v337_v35  ;;  %v2481_v44 = vsel %vm536_vm1, %v2479_v38, %v2480_v29  ;;  %v2533_v45 = vadd.f32 %v2483_v39, %v2397_v37  ;;  %v495_v46 = vmul.f32 %v3433_v62, %v3387_v15 }
  0x6a   : > { %v496_v47 = vmul.f32 %v3387_v15, %v337_v35  ;;  %v2532_v9 = vadd.f32 %v2481_v44, %v2396_v36  ;;  %v406_v50 = vrot.slane %v353_v41, 1  ;;  %v407_v51 = vrot.slane %v354_v42, 1 }
  0x6b   : > { %v409_v54 = vrot.slane %v355_v3, 1  ;;  %v2549_v52 = vadd.f32 %v3492_v19, %v2533_v45  ;;  %v494_v53 = vmul.f32 %v3387_v15, %v478_v43  ;;  %v548_v55 = vrot.slane %v495_v46, 2  ;;  %v2891_v45 = vld [vmem:[%s3365_s6 + $0x30] sm:$0xe] }
  0x6c   : > { %v550_v56 = vrot.slane %v496_v47, 2  ;;  %v2548_v57 = vadd.f32 %v3492_v19, %v2532_v9  ;;  %v408_v58 = vsel %vm395_vm0, %v406_v50, %v407_v51  ;;  %v633_v59 = vunpack.c.l.bf16 %v2837_v49 }
  0x6d   : > { %v410_v62 = vsel %vm395_vm0, %v407_v51, %v409_v54  ;;  %v2565_v63 = vmax.f32 %v2549_v52, 0.0  ;;  %v456_v0 = vadd.f32 %v408_v58, %v315_v26  ;;  %v547_v2 = vrot.slane %v494_v53, 2 }
  0x6e   : > { %v457_v1 = vadd.f32 %v410_v62, %v316_v34  ;;  %v2564_v5 = vmax.f32 %v2548_v57, 0.0  ;;  %v551_v6 = vsel %vm536_vm1, %v548_v55, %v550_v56  ;;  %v634_v8 = vunpack.c.h.bf16 %v2837_v49 }
  0x6f   : > { %v653_v10 = vmul.f32 %v3395_v25, %v633_v59  ;;  %v549_v14 = vsel %vm536_vm1, %v547_v2, %v548_v55  ;;  %v691_v20 = vunpack.c.l.bf16 %v2851_v60  ;;  %v707_v21 = vmul.f32 %v3418_v48, %v633_v59 }
  0x70   : > { %v598_v17 = vadd.f32 %v551_v6, %v457_v1  ;;  %v2579_v22 = vpack.c.bf16 %v2565_v63, %v2564_v5  ;;  %v597_v23 = vadd.f32 %v549_v14, %v456_v0  ;;  %v654_v24 = vmul.f32 %v3395_v25, %v634_v8  ;;  %v2926_v5 = vld [vmem:[%s3365_s6 + $0x80] sm:$0x1] }
  0x71   : > { %v708_v26 = vmul.f32 %v3418_v48, %v634_v8  ;;  %v709_v28 = vmul.f32 %v3418_v48, %v691_v20  ;;  %v759_v29 = vrot.slane %v707_v21, 1  ;;  %v831_v30 = vunpack.c.l.bf16 %v2859_v12 }
  0x72   : > { %v848_v31 = vmul.f32 %v3431_v61, %v634_v8  ;;  %3223 = vmatmul.mubr.bf16.vlgmr.msra.gmra.mrb[0].mxu1 %v2579_v22  ;;  %v669_v33 = vadd.f32 %v653_v10, %v597_v23  ;;  %v670_v34 = vadd.f32 %v654_v24, %v598_v17  ;;  %v849_v36 = vmul.f32 %v3431_v61, %v691_v20  ;;  %v2934_v22 = vld [vmem:[%s3365_s6 + $0x78] sm:$0xe] }
  0x73   : > { %v760_v35 = vrot.slane %v708_v26, 1  ;;  %v762_v37 = vrot.slane %v709_v28, 1  ;;  %v847_v38 = vmul.f32 %v3431_v61, %v831_v30  ;;  %v3677_v41 = vunpack.c.l.bf16 %v3127_v27 }
  0x74   : > { %v900_v39 = vrot.slane %v848_v31, 2  ;;  %v902_v3 = vrot.slane %v849_v36, 2  ;;  %v3680_v43 = vunpack.c.h.bf16 %v3127_v27  ;;  %v1043_v44 = vunpack.c.l.bf16 %v2883_v32  ;;  %v2944_v36 = vld [vmem:[%s3365_s6 + $0x84] sm:$0xff]  }
  0x75   : > { %v761_v42 = vsel %vm395_vm0, %v759_v29, %v760_v35  ;;  %v763_v46 = vsel %vm395_vm0, %v760_v35, %v762_v37  ;;  %v899_v49 = vrot.slane %v847_v38, 2  ;;  %v1005_v9 = vmul.f32 %v3677_v41, %v3443_v16 }
  0x76   : > { %v809_v47 = vadd.f32 %v761_v42, %v669_v33  ;;  %v810_v50 = vadd.f32 %v763_v46, %v670_v34  ;;  %v903_v51 = vsel %vm536_vm1, %v900_v39, %v902_v3  ;;  %v1006_v54 = vmul.f32 %v3680_v43, %v3443_v16 }
  0x77   : > { %v1059_v52 = vmul.f32 %v3677_v41, %v3468_v40  ;;  %v901_v53 = vsel %vm536_vm1, %v899_v49, %v900_v39  ;;  %v1060_v55 = vmul.f32 %v3680_v43, %v3468_v40  ;;  %v1061_v56 = vmul.f32 %v3468_v40, %v1043_v44 }
  0x78   : > { %v1183_v57 = vunpack.c.l.bf16 %v2891_v45  ;;  %v949_v58 = vadd.f32 %v901_v53, %v809_v47  ;;  %v950_v62 = vadd.f32 %v903_v51, %v810_v50  ;;  %v1200_v60 = vmul.f32 %v3680_v43, %v3449_v18  ;;  %v2958_v50 = vld [vmem:[%s3365_s6 + $0x8c] sm:$0x1] }
  0x79   : > { %v1111_v59 = vrot.slane %v1059_v52, 1  ;;  %v1112_v63 = vrot.slane %v1060_v55, 1  ;;  %v1114_v0 = vrot.slane %v1061_v56, 1  ;;  %v1201_v2 = vmul.f32 %v3449_v18, %v1043_v44 }
  0x7a   : > { %v1199_v1 = vmul.f32 %v3449_v18, %v1183_v57  ;;  %v1021_v6 = vadd.f32 %v1005_v9, %v949_v58  ;;  %v1022_v8 = vadd.f32 %v1006_v54, %v950_v62  ;;  %v1252_v10 = vrot.slane %v1200_v60, 2  ;;  %v2966_v58 = vld [vmem:[%s3365_s6 + $0x84] sm:$0xe] }
  0x7b   : > { %v1582_v12 = vmul.f32 %v3515_v4, %v3379_v11  ;;  %v1113_v14 = vsel %vm395_vm0, %v1111_v59, %v1112_v63  ;;  %v1115_v17 = vsel %vm395_vm0, %v1112_v63, %v1114_v0  ;;  %v1254_v21 = vrot.slane %v1201_v2, 2 }
  0x7c   : > { %v1251_v20 = vrot.slane %v1199_v1, 2  ;;  %v1161_v23 = vadd.f32 %v1113_v14, %v1021_v6  ;;  %v1162_v24 = vadd.f32 %v1115_v17, %v1022_v8  ;;  %v1583_v26 = vmul.f32 %v3518_v7, %v3379_v11  ;;  %v3139_v6 = vld [vmem:[%s3365_s6 + $0x90] sm:$0xff]  }
  0x7d   : > { %v1604_v27 = vunpack.c.l.bf16 %v2926_v5  ;;  %v1255_v29 = vsel %vm536_vm1, %v1252_v10, %v1254_v21  ;;  %v1616_v30 = vmul.f32 %v3515_v4, %v3383_v13  ;;  %v1617_v31 = vmul.f32 %v3518_v7, %v3383_v13 }
  0x7e   : > { %v1253_v28 = vsel %vm536_vm1, %v1251_v20, %v1252_v10  ;;  %v1302_v33 = vadd.f32 %v1255_v29, %v1162_v24  ;;  %v1740_v35 = vunpack.c.l.bf16 %v2934_v22  ;;  %v1753_v39 = vmul.f32 %v3518_v7, %v3387_v15 }
  0x7f   : > { %v1301_v32 = vadd.f32 %v1253_v28, %v1161_v23  ;;  %v1618_v34 = vmul.f32 %v1604_v27, %v3383_v13  ;;  %v1668_v37 = vrot.slane %v1616_v30, 1  ;;  %v1669_v38 = vrot.slane %v1617_v31, 1  ;;  %v2990_v28 = vld [vmem:[%s3365_s6 + $0x98] sm:$0x1] }
  0x80   : > { %v1754_v42 = vmul.f32 %v1604_v27, %v3387_v15  ;;  %v1324_v4 = vadd.f32 %v3492_v19, %v1302_v33  ;;  %v1752_v45 = vmul.f32 %v1740_v35, %v3387_v15  ;;  %v1805_v47 = vrot.slane %v1753_v39, 2  ;;  %v2998_v33 = vld [vmem:[%s3365_s6 + $0x90] sm:$0xe] }
  0x81   : > { %v1323_v3 = vadd.f32 %v3492_v19, %v1301_v32  ;;  %v1671_v44 = vrot.slane %v1618_v34, 1  ;;  %v1670_v46 = vsel %vm395_vm0, %v1668_v37, %v1669_v38  ;;  %v1890_v9 = vunpack.c.l.bf16 %v2944_v36 }
  0x82   : > { %v1807_v49 = vrot.slane %v1754_v42, 2  ;;  %v1340_v54 = vmax.f32 %v1324_v4, 0.0  ;;  %v1718_v52 = vadd.f32 %v1670_v46, %v1582_v12  ;;  %v1804_v55 = vrot.slane %v1752_v45, 2 }
  0x83   : > { %v1339_v51 = vmax.f32 %v1323_v3, 0.0  ;;  %v1672_v7 = vsel %vm395_vm0, %v1669_v38, %v1671_v44  ;;  %v1891_v57 = vunpack.c.h.bf16 %v2944_v36  ;;  %v1906_v59 = vmul.f32 %v1890_v9, %v3395_v25 }
  0x84   : > { %v1719_v53 = vadd.f32 %v1672_v7, %v1583_v26  ;;  %v1808_v56 = vsel %vm536_vm1, %v1805_v47, %v1807_v49  ;;  %v1944_v60 = vunpack.c.l.bf16 %v2958_v50  ;;  %v1956_v63 = vmul.f32 %v1890_v9, %v3418_v48 }
  0x85   : > { %v1353_v62 = vpack.c.bf16 %v1340_v54, %v1339_v51  ;;  %v1806_v0 = vsel %vm536_vm1, %v1804_v55, %v1805_v47  ;;  %v1907_v2 = vmul.f32 %v1891_v57, %v3395_v25  ;;  %v1957_v5 = vmul.f32 %v1891_v57, %v3418_v48  ;;  %v281_v51 = vld [vmem:[%s3365_s6 + $0x24] sm:$0xff]   ;;  %v330_v55 = vld [vmem:[%s3365_s6 + $0x2c] sm:$0x1] }
  0x86   : > { %v1855_v1 = vadd.f32 %v1808_v56, %v1719_v53  ;;  %v1854_v8 = vadd.f32 %v1806_v0, %v1718_v52  ;;  %v1958_v10 = vmul.f32 %v1944_v60, %v3418_v48  ;;  %v2008_v12 = vrot.slane %v1956_v63, 1 }
  0x87   : > { %3194 = vmatprep.mubr.bf16.mxu0 %v1353_v62  ;;  %v2080_v14 = vunpack.c.l.bf16 %v2966_v58  ;;  %v2009_v20 = vrot.slane %v1957_v5, 1  ;;  %v2093_v21 = vmul.f32 %v1891_v57, %v3431_v61  ;;  %v2094_v22 = vmul.f32 %v1944_v60, %v3431_v61 }
  0x88   : > { %v1923_v17 = vadd.f32 %v1907_v2, %v1855_v1  ;;  %v1922_v23 = vadd.f32 %v1906_v59, %v1854_v8  ;;  %v2011_v24 = vrot.slane %v1958_v10, 1  ;;  %v3736_v27 = vunpack.c.l.bf16 %v3139_v6  ;;  %v471_v8 = vld [vmem:[%s3365_s6 + $0x24] sm:$0xe] }
  0x89   : > { %v2092_v26 = vmul.f32 %v2080_v14, %v3431_v61  ;;  %v2010_v29 = vsel %vm395_vm0, %v2008_v12, %v2009_v20  ;;  %v2145_v30 = vrot.slane %v2093_v21, 2  ;;  %v2147_v31 = vrot.slane %v2094_v22, 2 }
  0x8a   : > { %v3740_v32 = vunpack.c.h.bf16 %v3139_v6  ;;  %v2012_v34 = vsel %vm395_vm0, %v2009_v20, %v2011_v24  ;;  %v2058_v35 = vadd.f32 %v2010_v29, %v1922_v23  ;;  %v2246_v37 = vmul.f32 %v3736_v27, %v3443_v16 }
  0x8b   : > { %v2144_v36 = vrot.slane %v2092_v26, 2  ;;  %v2059_v38 = vadd.f32 %v2012_v34, %v1923_v17  ;;  %v2148_v39 = vsel %vm536_vm1, %v2145_v30, %v2147_v31  ;;  %v2284_v3 = vunpack.c.l.bf16 %v2990_v28 }
  0x8c   : > { %v2247_v42 = vmul.f32 %v3740_v32, %v3443_v16  ;;  %v2296_v44 = vmul.f32 %v3736_v27, %v3468_v40  ;;  %v2297_v45 = vmul.f32 %v3740_v32, %v3468_v40  ;;  %v2420_v46 = vunpack.c.l.bf16 %v2998_v33 }
  0x8d   : > { %v2146_v4 = vsel %vm536_vm1, %v2144_v36, %v2145_v30  ;;  %v2195_v49 = vadd.f32 %v2148_v39, %v2059_v38  ;;  %v2298_v9 = vmul.f32 %v2284_v3, %v3468_v40  ;;  %v2433_v50 = vmul.f32 %v3740_v32, %v3449_v18  ;;  %v2852_v38 = vld [vmem:[%s3365_s6 + $0x38] sm:$0x1] }
  0x8e   : > { %v2194_v47 = vadd.f32 %v2146_v4, %v2058_v35  ;;  %v2348_v54 = vrot.slane %v2296_v44, 1  ;;  %v2349_v7 = vrot.slane %v2297_v45, 1  ;;  %v2432_v52 = vmul.f32 %v3449_v18, %v2420_v46 }
  0x8f   : > { %v2434_v53 = vmul.f32 %v3449_v18, %v2284_v3  ;;  %v2263_v57 = vadd.f32 %v2247_v42, %v2195_v49  ;;  %v2351_v58 = vrot.slane %v2298_v9, 1  ;;  %v2485_v62 = vrot.slane %v2433_v50, 2  ;;  %v2860_v49 = vld [vmem:[%s3365_s6 + $0x30] sm:$0xe] }
  0x90   : > { %v2262_v56 = vadd.f32 %v2246_v37, %v2194_v47  ;;  %v2350_v59 = vsel %vm395_vm0, %v2348_v54, %v2349_v7  ;;  %v2484_v60 = vrot.slane %v2432_v52, 2  ;;  %v297_v0 = vunpack.c.l.bf16 %v281_v51 }
  0x91   : > { %v2487_v63 = vrot.slane %v2434_v53, 2  ;;  %v2352_v1 = vsel %vm395_vm0, %v2349_v7, %v2351_v58  ;;  %v298_v5 = vunpack.c.h.bf16 %v281_v51  ;;  %v338_v6 = vunpack.c.l.bf16 %v330_v55 }
  0x92   : > { %v2398_v2 = vadd.f32 %v2350_v59, %v2262_v56  ;;  %v2399_v10 = vadd.f32 %v2352_v1, %v2263_v57  ;;  %v2486_v12 = vsel %vm536_vm1, %v2484_v60, %v2485_v62  ;;  %v317_v14 = vmul.f32 %v3379_v11, %v297_v0 }
  0x93   : > { %v2488_v18 = vsel %vm536_vm1, %v2485_v62, %v2487_v63  ;;  %v318_v20 = vmul.f32 %v3379_v11, %v298_v5  ;;  %v356_v21 = vmul.f32 %v3383_v13, %v297_v0  ;;  %v357_v22 = vmul.f32 %v3383_v13, %v298_v5  ;;  %v2871_v62 = vld [vmem:[%s3365_s6 + $0x3c] sm:$0xff]  }
  0x94   : > { %v2534_v17 = vadd.f32 %v2486_v12, %v2398_v2  ;;  %v2535_v23 = vadd.f32 %v2488_v18, %v2399_v10  ;;  %v358_v24 = vmul.f32 %v3383_v13, %v338_v6  ;;  %v479_v26 = vunpack.c.l.bf16 %v471_v8  ;;  %v2884_v8 = vld [vmem:[%s3365_s6 + $0x44] sm:$0x1] }
  0x95   : > { %v498_v28 = vmul.f32 %v3387_v15, %v298_v5  ;;  %v411_v30 = vrot.slane %v356_v21, 1  ;;  %v412_v31 = vrot.slane %v357_v22, 1  ;;  %v499_v33 = vmul.f32 %v3387_v15, %v338_v6 }
  0x96   : > { %v2550_v29 = vadd.f32 %v3492_v19, %v2534_v17  ;;  %v2551_v34 = vadd.f32 %v3492_v19, %v2535_v23  ;;  %v414_v35 = vrot.slane %v358_v24, 1  ;;  %v497_v36 = vmul.f32 %v3387_v15, %v479_v26  ;;  %v2892_v23 = vld [vmem:[%s3365_s6 + $0x3c] sm:$0xe] }
  0x97   : > { %v553_v37 = vrot.slane %v498_v28, 2  ;;  %v413_v42 = vsel %vm395_vm0, %v411_v30, %v412_v31  ;;  %v555_v3 = vrot.slane %v499_v33, 2  ;;  %v655_v4 = vmul.f32 %v3677_v41, %v3395_v25 }
  0x98   : > { %v2566_v39 = vmax.f32 %v2550_v29, 0.0  ;;  %v2567_v44 = vmax.f32 %v2551_v34, 0.0  ;;  %v415_v45 = vsel %vm395_vm0, %v412_v31, %v414_v35  ;;  %v458_v46 = vadd.f32 %v413_v42, %v317_v14 }
  0x99   : > { %v552_v47 = vrot.slane %v497_v36, 2  ;;  %v459_v19 = vadd.f32 %v415_v45, %v318_v20  ;;  %v556_v9 = vsel %vm536_vm1, %v553_v37, %v555_v3  ;;  %v656_v50 = vmul.f32 %v3680_v43, %v3395_v25 }
  0x9a   : > { %v692_v51 = vunpack.c.l.bf16 %v2852_v38  ;;  %v2580_v54 = vpack.c.bf16 %v2567_v44, %v2566_v39  ;;  %v710_v52 = vmul.f32 %v3677_v41, %v3418_v48  ;;  %v711_v53 = vmul.f32 %v3680_v43, %v3418_v48  ;;  %v2914_v39 = vld [vmem:[%s3365_s6 + $0x84] sm:$0xff]  }
  0x9b   : > { %v554_v7 = vsel %vm536_vm1, %v552_v47, %v553_v37  ;;  %v600_v56 = vadd.f32 %v556_v9, %v459_v19  ;;  %v832_v58 = vunpack.c.l.bf16 %v2860_v49  ;;  %v851_v63 = vmul.f32 %v3680_v43, %v3431_v61  ;;  %v2927_v9 = vld [vmem:[%s3365_s6 + $0x8c] sm:$0x1] }
  0x9c   : > { %v599_v55 = vadd.f32 %v554_v7, %v458_v46  ;;  %v712_v57 = vmul.f32 %v3418_v48, %v692_v51  ;;  %3226 = vmatprep.mubr.bf16.mxu1 %v2580_v54  ;;  %v764_v59 = vrot.slane %v710_v52, 1  ;;  %v765_v60 = vrot.slane %v711_v53, 1 }
  0x9d   : > { %v852_v0 = vmul.f32 %v3431_v61, %v692_v51  ;;  %v672_v2 = vadd.f32 %v656_v50, %v600_v56  ;;  %v850_v6 = vmul.f32 %v3431_v61, %v832_v58  ;;  %v905_v12 = vrot.slane %v851_v63, 2 }
  0x9e   : > { %v671_v1 = vadd.f32 %v655_v4, %v599_v55  ;;  %v767_v5 = vrot.slane %v712_v57, 1  ;;  %v766_v10 = vsel %vm395_vm0, %v764_v59, %v765_v60  ;;  %v987_v14 = vunpack.c.l.bf16 %v2871_v62  ;;  %v3811_v4 = vld [vmem:[%s4440_s1 + $0x8] ss:$0 sm:$0xff]  ;;  %v2935_v57 = vld [vmem:[%s3365_s6 + $0x84] sm:$0xe] }
  0x9f   : > { %v907_v18 = vrot.slane %v852_v0, 2  ;;  %v904_v21 = vrot.slane %v850_v6, 2  ;;  %v988_v22 = vunpack.c.h.bf16 %v2871_v62  ;;  %v1044_v29 = vunpack.c.l.bf16 %v2884_v8 }
  0xa0   : > { %v768_v17 = vsel %vm395_vm0, %v765_v60, %v767_v5  ;;  %v811_v20 = vadd.f32 %v766_v10, %v671_v1  ;;  %v1007_v28 = vmul.f32 %v3443_v16, %v987_v14  ;;  %v1062_v33 = vmul.f32 %v3468_v40, %v987_v14 }
  0xa1   : > { %v812_v24 = vadd.f32 %v768_v17, %v672_v2  ;;  %v908_v26 = vsel %vm536_vm1, %v905_v12, %v907_v18  ;;  %v906_v30 = vsel %vm536_vm1, %v904_v21, %v905_v12  ;;  %v1008_v31 = vmul.f32 %v3443_v16, %v988_v22 }
  0xa2   : > { %v1063_v34 = vmul.f32 %v3468_v40, %v988_v22  ;;  %v951_v35 = vadd.f32 %v906_v30, %v811_v20  ;;  %v1064_v37 = vmul.f32 %v3468_v40, %v1044_v29  ;;  %v1184_v38 = vunpack.c.l.bf16 %v2892_v23  ;;  %v3832_v20 = vld [vmem:[%s4441_s2] ss:$0 sm:$0xff] }
  0xa3   : > { %v952_v36 = vadd.f32 %v908_v26, %v812_v24  ;;  %v1116_v42 = vrot.slane %v1062_v33, 1  ;;  %v1203_v44 = vmul.f32 %v3811_v4, %v988_v22  ;;  %v1204_v45 = vmul.f32 %v3811_v4, %v1044_v29 }
  0xa4   : > { %v1117_v3 = vrot.slane %v1063_v34, 1  ;;  %v1023_v46 = vadd.f32 %v1007_v28, %v951_v35  ;;  %v1119_v49 = vrot.slane %v1064_v37, 1  ;;  %v1202_v19 = vmul.f32 %v3811_v4, %v1184_v38  ;;  %v2967_v37 = vld [vmem:[%s3365_s6 + $0x90] sm:$0xe] }
  0xa5   : > { %v1024_v47 = vadd.f32 %v1008_v31, %v952_v36  ;;  %v1257_v51 = vrot.slane %v1203_v44, 2  ;;  %v1259_v54 = vrot.slane %v1204_v45, 2  ;;  %v1568_v7 = vunpack.c.l.bf16 %v2914_v39  ;;  %v2959_v31 = vld [vmem:[%s3365_s6 + $0x98] sm:$0x1] }
  0xa6   : > { %v1118_v50 = vsel %vm395_vm0, %v1116_v42, %v1117_v3  ;;  %v1120_v52 = vsel %vm395_vm0, %v1117_v3, %v1119_v49  ;;  %v1256_v55 = vrot.slane %v1202_v19, 2  ;;  %v1569_v56 = vunpack.c.h.bf16 %v2914_v39 }
  0xa7   : > { %v1163_v53 = vadd.f32 %v1118_v50, %v1023_v46  ;;  %v1164_v58 = vadd.f32 %v1120_v52, %v1024_v47  ;;  %v1260_v62 = vsel %vm536_vm1, %v1257_v51, %v1259_v54  ;;  %v1584_v59 = vmul.f32 %v1568_v7, %v3379_v11 }
  0xa8   : > { %v1605_v60 = vunpack.c.l.bf16 %v2927_v9  ;;  %v1258_v63 = vsel %vm536_vm1, %v1256_v55, %v1257_v51  ;;  %v1585_v0 = vmul.f32 %v1569_v56, %v3379_v11  ;;  %v1619_v1 = vmul.f32 %v1568_v7, %v3383_v13  ;;  %v2978_v51 = vld [vmem:[%s3365_s6 + $0x9c] sm:$0xff]   ;;  %v2991_v55 = vld [vmem:[%s3365_s6 + $0xa4] sm:$0x1] }
  0xa9   : > { %v1620_v2 = vmul.f32 %v1569_v56, %v3383_v13  ;;  %v1303_v5 = vadd.f32 %v1258_v63, %v1163_v53  ;;  %v1304_v6 = vadd.f32 %v1260_v62, %v1164_v58  ;;  %v1741_v10 = vunpack.c.l.bf16 %v2935_v57 }
  0xaa   : > { %v1621_v8 = vmul.f32 %v1605_v60, %v3383_v13  ;;  %v1673_v12 = vrot.slane %v1619_v1, 1  ;;  %v1756_v14 = vmul.f32 %v1569_v56, %v3387_v15  ;;  %v1757_v17 = vmul.f32 %v1605_v60, %v3387_v15 }
  0xab   : > { %v1674_v18 = vrot.slane %v1620_v2, 1  ;;  %v1325_v21 = vadd.f32 %v3832_v20, %v1303_v5  ;;  %v1326_v22 = vadd.f32 %v3832_v20, %v1304_v6  ;;  %v1755_v24 = vmul.f32 %v1741_v10, %v3387_v15 }
  0xac   : > { %v1676_v23 = vrot.slane %v1621_v8, 1  ;;  %v1810_v28 = vrot.slane %v1756_v14, 2  ;;  %v1812_v29 = vrot.slane %v1757_v17, 2  ;;  %v1908_v30 = vmul.f32 %v3736_v27, %v3395_v25  ;;  %v2999_v14 = vld [vmem:[%s3365_s6 + $0x9c] sm:$0xe] }
  0xad   : > { %v1675_v26 = vsel %vm395_vm0, %v1673_v12, %v1674_v18  ;;  %v1341_v33 = vmax.f32 %v1325_v21, 0.0  ;;  %v1342_v34 = vmax.f32 %v1326_v22, 0.0  ;;  %v1809_v39 = vrot.slane %v1755_v24, 2 }
  0xae   : > { %v1677_v35 = vsel %vm395_vm0, %v1674_v18, %v1676_v23  ;;  %v1720_v36 = vadd.f32 %v1675_v26, %v1584_v59  ;;  %v1813_v42 = vsel %vm536_vm1, %v1810_v28, %v1812_v29  ;;  %v1909_v3 = vmul.f32 %v3740_v32, %v3395_v25 }
  0xaf   : > { %v1721_v38 = vadd.f32 %v1677_v35, %v1585_v0  ;;  %v1354_v44 = vpack.c.bf16 %v1342_v34, %v1341_v33  ;;  %v1945_v45 = vunpack.c.l.bf16 %v2959_v31  ;;  %v1959_v46 = vmul.f32 %v3736_v27, %v3418_v48  ;;  %v331_v35 = vld [vmem:[%s3365_s6 + $0x38] sm:$0x1] }
  0xb0   : > { %v1960_v47 = vmul.f32 %v3740_v32, %v3418_v48  ;;  %v1811_v49 = vsel %vm536_vm1, %v1809_v39, %v1810_v28  ;;  %v2081_v9 = vunpack.c.l.bf16 %v2967_v37  ;;  %v2096_v50 = vmul.f32 %v3740_v32, %v3431_v61 }
  0xb1   : > { %v1857_v19 = vadd.f32 %v1813_v42, %v1721_v38  ;;  %3195 = vmatmul.mubr.bf16.gmra.mrb[4].mxu0 %v1354_v44  ;;  %v1856_v54 = vadd.f32 %v1811_v49, %v1720_v36  ;;  %v1961_v7 = vmul.f32 %v1945_v45, %v3418_v48  ;;  %v2013_v52 = vrot.slane %v1959_v46, 1  ;;  %v472_v46 = vld [vmem:[%s3365_s6 + $0x30] sm:$0xe] }
  0xb2   : > { %v2014_v53 = vrot.slane %v1960_v47, 1  ;;  %v2095_v57 = vmul.f32 %v2081_v9, %v3431_v61  ;;  %v2097_v58 = vmul.f32 %v1945_v45, %v3431_v61  ;;  %v2150_v62 = vrot.slane %v2096_v50, 2 }
  0xb3   : > { %v1925_v56 = vadd.f32 %v1909_v3, %v1857_v19  ;;  %v1924_v59 = vadd.f32 %v1908_v30, %v1856_v54  ;;  %v2016_v63 = vrot.slane %v1961_v7, 1  ;;  %v2232_v0 = vunpack.c.l.bf16 %v2978_v51 }
  0xb4   : > { %v2015_v60 = vsel %vm395_vm0, %v2013_v52, %v2014_v53  ;;  %v2149_v1 = vrot.slane %v2095_v57, 2  ;;  %v2152_v2 = vrot.slane %v2097_v58, 2  ;;  %v2233_v5 = vunpack.c.h.bf16 %v2978_v51 }
  0xb5   : > { %v2285_v6 = vunpack.c.l.bf16 %v2991_v55  ;;  %v2017_v8 = vsel %vm395_vm0, %v2014_v53, %v2016_v63  ;;  %v2060_v10 = vadd.f32 %v2015_v60, %v1924_v59  ;;  %v2248_v12 = vmul.f32 %v2232_v0, %v3443_v16  ;;  %v2841_v60 = vld [vmem:[%s3365_s6 + $0x3c] sm:$0xff]  }
  0xb6   : > { %v2299_v18 = vmul.f32 %v2232_v0, %v3468_v40  ;;  %v2061_v17 = vadd.f32 %v2017_v8, %v1925_v56  ;;  %v2151_v21 = vsel %vm536_vm1, %v2149_v1, %v2150_v62  ;;  %v2153_v22 = vsel %vm536_vm1, %v2150_v62, %v2152_v2 }
  0xb7   : > { %v2249_v23 = vmul.f32 %v2233_v5, %v3443_v16  ;;  %v2196_v24 = vadd.f32 %v2151_v21, %v2060_v10  ;;  %v2300_v26 = vmul.f32 %v2233_v5, %v3468_v40  ;;  %v2301_v28 = vmul.f32 %v2285_v6, %v3468_v40 }
  0xb8   : > { %v2353_v29 = vrot.slane %v2299_v18, 1  ;;  %v2197_v30 = vadd.f32 %v2153_v22, %v2061_v17  ;;  %v2421_v31 = vunpack.c.l.bf16 %v2999_v14  ;;  %v2436_v33 = vmul.f32 %v3811_v4, %v2233_v5  ;;  %v2853_v14 = vld [vmem:[%s3365_s6 + $0x44] sm:$0x1] }
  0xb9   : > { %v2437_v34 = vmul.f32 %v3811_v4, %v2285_v6  ;;  %v2264_v36 = vadd.f32 %v2248_v12, %v2196_v24  ;;  %v2354_v37 = vrot.slane %v2300_v26, 1  ;;  %v2356_v38 = vrot.slane %v2301_v28, 1 }
  0xba   : > { %v319_v39 = vmul.f32 %v3677_v41, %v3379_v11  ;;  %v2265_v42 = vadd.f32 %v2249_v23, %v2197_v30  ;;  %v2435_v3 = vmul.f32 %v3811_v4, %v2421_v31  ;;  %v2490_v44 = vrot.slane %v2436_v33, 2  ;;  %v2861_v30 = vld [vmem:[%s3365_s6 + $0x3c] sm:$0xe] }
  0xbb   : > { %v2492_v45 = vrot.slane %v2437_v34, 2  ;;  %v2355_v47 = vsel %vm395_vm0, %v2353_v29, %v2354_v37  ;;  %v2357_v49 = vsel %vm395_vm0, %v2354_v37, %v2356_v38  ;;  %v320_v19 = vmul.f32 %v3680_v43, %v3379_v11 }
  0xbc   : > { %v339_v9 = vunpack.c.l.bf16 %v331_v35  ;;  %v2400_v50 = vadd.f32 %v2355_v47, %v2264_v36  ;;  %v2401_v51 = vadd.f32 %v2357_v49, %v2265_v42  ;;  %v2489_v54 = vrot.slane %v2435_v3, 2  ;;  %v3128_v42 = vld [vmem:[%s3365_s6 + $0x48] sm:$0xff]   ;;  %v2885_v47 = vld [vmem:[%s3365_s6 + $0x50] sm:$0x1] }
  0xbd   : > { %v2493_v7 = vsel %vm536_vm1, %v2490_v44, %v2492_v45  ;;  %v359_v52 = vmul.f32 %v3677_v41, %v3383_v13  ;;  %v360_v53 = vmul.f32 %v3680_v43, %v3383_v13  ;;  %v480_v56 = vunpack.c.l.bf16 %v472_v46 }
  0xbe   : > { %v361_v55 = vmul.f32 %v3383_v13, %v339_v9  ;;  %v2491_v57 = vsel %vm536_vm1, %v2489_v54, %v2490_v44  ;;  %v2537_v58 = vadd.f32 %v2493_v7, %v2401_v51  ;;  %v501_v62 = vmul.f32 %v3680_v43, %v3387_v15 }
  0xbf   : > { %v502_v59 = vmul.f32 %v3387_v15, %v339_v9  ;;  %v2536_v63 = vadd.f32 %v2491_v57, %v2400_v50  ;;  %v416_v0 = vrot.slane %v359_v52, 1  ;;  %v417_v1 = vrot.slane %v360_v53, 1 }
  0xc0   : > { %v419_v41 = vrot.slane %v361_v55, 1  ;;  %v2553_v2 = vadd.f32 %v3832_v20, %v2537_v58  ;;  %v500_v5 = vmul.f32 %v3387_v15, %v480_v56  ;;  %v558_v6 = vrot.slane %v501_v62, 2  ;;  %v2893_v58 = vld [vmem:[%s3365_s6 + $0x48] sm:$0xe] }
  0xc1   : > { %v560_v8 = vrot.slane %v502_v59, 2  ;;  %v2552_v10 = vadd.f32 %v3832_v20, %v2536_v63  ;;  %v418_v12 = vsel %vm395_vm0, %v416_v0, %v417_v1  ;;  %v637_v18 = vunpack.c.l.bf16 %v2841_v60 }
  0xc2   : > { %v420_v43 = vsel %vm395_vm0, %v417_v1, %v419_v41  ;;  %v2569_v17 = vmax.f32 %v2553_v2, 0.0  ;;  %v460_v21 = vadd.f32 %v418_v12, %v319_v39  ;;  %v557_v23 = vrot.slane %v500_v5, 2 }
  0xc3   : > { %v461_v22 = vadd.f32 %v420_v43, %v320_v19  ;;  %v2568_v24 = vmax.f32 %v2552_v10, 0.0  ;;  %v561_v26 = vsel %vm536_vm1, %v558_v6, %v560_v8  ;;  %v638_v28 = vunpack.c.h.bf16 %v2841_v60 }
  0xc4   : > { %v657_v29 = vmul.f32 %v3395_v25, %v637_v18  ;;  %v559_v31 = vsel %vm536_vm1, %v557_v23, %v558_v6  ;;  %v693_v34 = vunpack.c.l.bf16 %v2853_v14  ;;  %v713_v35 = vmul.f32 %v3418_v48, %v637_v18 }
  0xc5   : > { %v602_v33 = vadd.f32 %v561_v26, %v461_v22  ;;  %v2581_v36 = vpack.c.bf16 %v2569_v17, %v2568_v24  ;;  %v601_v37 = vadd.f32 %v559_v31, %v460_v21  ;;  %v658_v38 = vmul.f32 %v3395_v25, %v638_v28  ;;  %v2928_v24 = vld [vmem:[%s3365_s6 + $0x98] sm:$0x1] }
  0xc6   : > { %v714_v39 = vmul.f32 %v3418_v48, %v638_v28  ;;  %v715_v3 = vmul.f32 %v3418_v48, %v693_v34  ;;  %v769_v44 = vrot.slane %v713_v35, 1  ;;  %v833_v45 = vunpack.c.l.bf16 %v2861_v30 }
  0xc7   : > { %v854_v46 = vmul.f32 %v3431_v61, %v638_v28  ;;  %3227 = vmatmul.mubr.bf16.gmra.mrb[4].mxu1 %v2581_v36  ;;  %v673_v49 = vadd.f32 %v657_v29, %v601_v37  ;;  %v674_v19 = vadd.f32 %v658_v38, %v602_v33  ;;  %v855_v50 = vmul.f32 %v3431_v61, %v693_v34  ;;  %v2936_v36 = vld [vmem:[%s3365_s6 + $0x90] sm:$0xe] }
  0xc8   : > { %v770_v9 = vrot.slane %v714_v39, 1  ;;  %v772_v51 = vrot.slane %v715_v3, 1  ;;  %v853_v54 = vmul.f32 %v3431_v61, %v833_v45  ;;  %v3909_v52 = vunpack.c.l.bf16 %v3128_v42 }
  0xc9   : > { %v910_v7 = vrot.slane %v854_v46, 2  ;;  %v912_v55 = vrot.slane %v855_v50, 2  ;;  %v3912_v56 = vunpack.c.h.bf16 %v3128_v42  ;;  %v1045_v57 = vunpack.c.l.bf16 %v2885_v47  ;;  %v2948_v50 = vld [vmem:[%s3365_s6 + $0x9c] sm:$0xff]  }
  0xca   : > { %v771_v53 = vsel %vm395_vm0, %v769_v44, %v770_v9  ;;  %v773_v62 = vsel %vm395_vm0, %v770_v9, %v772_v51  ;;  %v909_v60 = vrot.slane %v853_v54, 2  ;;  %v1009_v63 = vmul.f32 %v3909_v52, %v3443_v16 }
  0xcb   : > { %v813_v59 = vadd.f32 %v771_v53, %v673_v49  ;;  %v814_v0 = vadd.f32 %v773_v62, %v674_v19  ;;  %v913_v1 = vsel %vm536_vm1, %v910_v7, %v912_v55  ;;  %v1010_v41 = vmul.f32 %v3912_v56, %v3443_v16 }
  0xcc   : > { %v1065_v2 = vmul.f32 %v3909_v52, %v3468_v40  ;;  %v911_v5 = vsel %vm536_vm1, %v909_v60, %v910_v7  ;;  %v1066_v6 = vmul.f32 %v3912_v56, %v3468_v40  ;;  %v1067_v8 = vmul.f32 %v3468_v40, %v1045_v57 }
  0xcd   : > { %v1185_v10 = vunpack.c.l.bf16 %v2893_v58  ;;  %v953_v12 = vadd.f32 %v911_v5, %v813_v59  ;;  %v954_v43 = vadd.f32 %v913_v1, %v814_v0  ;;  %v1206_v14 = vmul.f32 %v3811_v4, %v3912_v56  ;;  %v2960_v0 = vld [vmem:[%s3365_s6 + $0xa4] sm:$0x1] }
  0xce   : > { %v1121_v18 = vrot.slane %v1065_v2, 1  ;;  %v1122_v17 = vrot.slane %v1066_v6, 1  ;;  %v1124_v21 = vrot.slane %v1067_v8, 1  ;;  %v1207_v23 = vmul.f32 %v3811_v4, %v1045_v57 }
  0xcf   : > { %v1205_v22 = vmul.f32 %v3811_v4, %v1185_v10  ;;  %v1025_v26 = vadd.f32 %v1009_v63, %v953_v12  ;;  %v1026_v28 = vadd.f32 %v1010_v41, %v954_v43  ;;  %v1262_v29 = vrot.slane %v1206_v14, 2  ;;  %v2968_v12 = vld [vmem:[%s3365_s6 + $0x9c] sm:$0xe] }
  0xd0   : > { %v1586_v30 = vmul.f32 %v3736_v27, %v3379_v11  ;;  %v1123_v31 = vsel %vm395_vm0, %v1121_v18, %v1122_v17  ;;  %v1125_v33 = vsel %vm395_vm0, %v1122_v17, %v1124_v21  ;;  %v1264_v35 = vrot.slane %v1207_v23, 2 }
  0xd1   : > { %v1261_v34 = vrot.slane %v1205_v22, 2  ;;  %v1165_v37 = vadd.f32 %v1123_v31, %v1025_v26  ;;  %v1166_v38 = vadd.f32 %v1125_v33, %v1026_v28  ;;  %v1587_v39 = vmul.f32 %v3740_v32, %v3379_v11  ;;  %v3140_v26 = vld [vmem:[%s3365_s6 + $0xa8] sm:$0xff]  }
  0xd2   : > { %v1606_v42 = vunpack.c.l.bf16 %v2928_v24  ;;  %v1265_v44 = vsel %vm536_vm1, %v1262_v29, %v1264_v35  ;;  %v1622_v45 = vmul.f32 %v3736_v27, %v3383_v13  ;;  %v1623_v46 = vmul.f32 %v3740_v32, %v3383_v13 }
  0xd3   : > { %v1263_v3 = vsel %vm536_vm1, %v1261_v34, %v1262_v29  ;;  %v1306_v49 = vadd.f32 %v1265_v44, %v1166_v38  ;;  %v1742_v9 = vunpack.c.l.bf16 %v2936_v36  ;;  %v1759_v7 = vmul.f32 %v3740_v32, %v3387_v15 }
  0xd4   : > { %v1305_v47 = vadd.f32 %v1263_v3, %v1165_v37  ;;  %v1624_v19 = vmul.f32 %v1606_v42, %v3383_v13  ;;  %v1678_v51 = vrot.slane %v1622_v45, 1  ;;  %v1679_v54 = vrot.slane %v1623_v46, 1  ;;  %v2992_v3 = vld [vmem:[%s3365_s6 + $0xb0] sm:$0x1] }
  0xd5   : > { %v1760_v53 = vmul.f32 %v1606_v42, %v3387_v15  ;;  %v1328_v27 = vadd.f32 %v3832_v20, %v1306_v49  ;;  %v1758_v58 = vmul.f32 %v1742_v9, %v3387_v15  ;;  %v1815_v59 = vrot.slane %v1759_v7, 2  ;;  %v3000_v49 = vld [vmem:[%s3365_s6 + $0xa8] sm:$0xe] }
  0xd6   : > { %v1327_v55 = vadd.f32 %v3832_v20, %v1305_v47  ;;  %v1681_v57 = vrot.slane %v1624_v19, 1  ;;  %v1680_v62 = vsel %vm395_vm0, %v1678_v51, %v1679_v54  ;;  %v1894_v63 = vunpack.c.l.bf16 %v2948_v50 }
  0xd7   : > { %v1817_v60 = vrot.slane %v1760_v53, 2  ;;  %v1344_v41 = vmax.f32 %v1328_v27, 0.0  ;;  %v1722_v2 = vadd.f32 %v1680_v62, %v1586_v30  ;;  %v1814_v6 = vrot.slane %v1758_v58, 2 }
  0xd8   : > { %v1343_v1 = vmax.f32 %v1327_v55, 0.0  ;;  %v1682_v32 = vsel %vm395_vm0, %v1679_v54, %v1681_v57  ;;  %v1895_v10 = vunpack.c.h.bf16 %v2948_v50  ;;  %v1910_v18 = vmul.f32 %v1894_v63, %v3395_v25 }
  0xd9   : > { %v1723_v5 = vadd.f32 %v1682_v32, %v1587_v39  ;;  %v1818_v8 = vsel %vm536_vm1, %v1815_v59, %v1817_v60  ;;  %v1946_v14 = vunpack.c.l.bf16 %v2960_v0  ;;  %v1962_v17 = vmul.f32 %v1894_v63, %v3418_v48 }
  0xda   : > { %v1355_v43 = vpack.c.bf16 %v1344_v41, %v1343_v1  ;;  %v1816_v21 = vsel %vm536_vm1, %v1814_v6, %v1815_v59  ;;  %v1911_v23 = vmul.f32 %v1895_v10, %v3395_v25  ;;  %v1963_v24 = vmul.f32 %v1895_v10, %v3418_v48  ;;  %v285_v1 = vld [vmem:[%s3365_s6 + $0x3c] sm:$0xff]   ;;  %v332_v6 = vld [vmem:[%s3365_s6 + $0x44] sm:$0x1] }
  0xdb   : > { %v1859_v22 = vadd.f32 %v1818_v8, %v1723_v5  ;;  %v1858_v28 = vadd.f32 %v1816_v21, %v1722_v2  ;;  %v1964_v29 = vmul.f32 %v1946_v14, %v3418_v48  ;;  %v2018_v30 = vrot.slane %v1962_v17, 1 }
  0xdc   : > { %3198 = vmatprep.mubr.bf16.mxu0 %v1355_v43  ;;  %v2082_v31 = vunpack.c.l.bf16 %v2968_v12  ;;  %v2019_v34 = vrot.slane %v1963_v24, 1  ;;  %v2099_v35 = vmul.f32 %v1895_v10, %v3431_v61  ;;  %v2100_v36 = vmul.f32 %v1946_v14, %v3431_v61 }
  0xdd   : > { %v1927_v33 = vadd.f32 %v1911_v23, %v1859_v22  ;;  %v1926_v37 = vadd.f32 %v1910_v18, %v1858_v28  ;;  %v2021_v38 = vrot.slane %v1964_v29, 1  ;;  %v3968_v42 = vunpack.c.l.bf16 %v3140_v26  ;;  %v473_v28 = vld [vmem:[%s3365_s6 + $0x3c] sm:$0xe] }
  0xde   : > { %v2098_v39 = vmul.f32 %v2082_v31, %v3431_v61  ;;  %v2020_v44 = vsel %vm395_vm0, %v2018_v30, %v2019_v34  ;;  %v2155_v45 = vrot.slane %v2099_v35, 2  ;;  %v2157_v46 = vrot.slane %v2100_v36, 2 }
  0xdf   : > { %v3972_v47 = vunpack.c.h.bf16 %v3140_v26  ;;  %v2022_v19 = vsel %vm395_vm0, %v2019_v34, %v2021_v38  ;;  %v2062_v9 = vadd.f32 %v2020_v44, %v1926_v37  ;;  %v2250_v51 = vmul.f32 %v3968_v42, %v3443_v16 }
  0xe0   : > { %v2154_v50 = vrot.slane %v2098_v39, 2  ;;  %v2063_v54 = vadd.f32 %v2022_v19, %v1927_v33  ;;  %v2158_v7 = vsel %vm536_vm1, %v2155_v45, %v2157_v46  ;;  %v2286_v55 = vunpack.c.l.bf16 %v2992_v3 }
  0xe1   : > { %v2251_v53 = vmul.f32 %v3972_v47, %v3443_v16  ;;  %v2302_v57 = vmul.f32 %v3968_v42, %v3468_v40  ;;  %v2303_v58 = vmul.f32 %v3972_v47, %v3468_v40  ;;  %v2422_v62 = vunpack.c.l.bf16 %v3000_v49 }
  0xe2   : > { %v2156_v27 = vsel %vm536_vm1, %v2154_v50, %v2155_v45  ;;  %v2199_v60 = vadd.f32 %v2158_v7, %v2063_v54  ;;  %v2304_v63 = vmul.f32 %v2286_v55, %v3468_v40  ;;  %v2439_v0 = vmul.f32 %v3811_v4, %v3972_v47  ;;  %v2854_v7 = vld [vmem:[%s3365_s6 + $0x50] sm:$0x1] }
  0xe3   : > { %v2198_v59 = vadd.f32 %v2156_v27, %v2062_v9  ;;  %v2358_v41 = vrot.slane %v2302_v57, 1  ;;  %v2359_v32 = vrot.slane %v2303_v58, 1  ;;  %v2438_v2 = vmul.f32 %v3811_v4, %v2422_v62 }
  0xe4   : > { %v2440_v5 = vmul.f32 %v3811_v4, %v2286_v55  ;;  %v2267_v10 = vadd.f32 %v2251_v53, %v2199_v60  ;;  %v2361_v12 = vrot.slane %v2304_v63, 1  ;;  %v2495_v43 = vrot.slane %v2439_v0, 2  ;;  %v2862_v63 = vld [vmem:[%s3365_s6 + $0x48] sm:$0xe] }
  0xe5   : > { %v2266_v8 = vadd.f32 %v2250_v51, %v2198_v59  ;;  %v2360_v18 = vsel %vm395_vm0, %v2358_v41, %v2359_v32  ;;  %v2494_v14 = vrot.slane %v2438_v2, 2  ;;  %v301_v21 = vunpack.c.l.bf16 %v285_v1 }
  0xe6   : > { %v2497_v17 = vrot.slane %v2440_v5, 2  ;;  %v2362_v22 = vsel %vm395_vm0, %v2359_v32, %v2361_v12  ;;  %v302_v24 = vunpack.c.h.bf16 %v285_v1  ;;  %v340_v26 = vunpack.c.l.bf16 %v332_v6 }
  0xe7   : > { %v2402_v23 = vadd.f32 %v2360_v18, %v2266_v8  ;;  %v2403_v29 = vadd.f32 %v2362_v22, %v2267_v10  ;;  %v2496_v30 = vsel %vm536_vm1, %v2494_v14, %v2495_v43  ;;  %v321_v33 = vmul.f32 %v3379_v11, %v301_v21  ;;  %v2875_v14 = vld [vmem:[%s3365_s6 + $0x54] sm:$0xff]  }
  0xe8   : > { %v2498_v31 = vsel %vm536_vm1, %v2495_v43, %v2497_v17  ;;  %v322_v35 = vmul.f32 %v3379_v11, %v302_v24  ;;  %v362_v36 = vmul.f32 %v3383_v13, %v301_v21  ;;  %v363_v37 = vmul.f32 %v3383_v13, %v302_v24 }
  0xe9   : > { %v2538_v34 = vadd.f32 %v2496_v30, %v2402_v23  ;;  %v2539_v38 = vadd.f32 %v2498_v31, %v2403_v29  ;;  %v364_v39 = vmul.f32 %v3383_v13, %v340_v26  ;;  %v481_v3 = vunpack.c.l.bf16 %v473_v28  ;;  %v2886_v30 = vld [vmem:[%s3365_s6 + $0x5c] sm:$0x1] }
  0xea   : > { %v504_v44 = vmul.f32 %v3387_v15, %v302_v24  ;;  %v421_v46 = vrot.slane %v362_v36, 1  ;;  %v422_v49 = vrot.slane %v363_v37, 1  ;;  %v505_v19 = vmul.f32 %v3387_v15, %v340_v26 }
  0xeb   : > { %v2554_v45 = vadd.f32 %v3832_v20, %v2538_v34  ;;  %v2555_v9 = vadd.f32 %v3832_v20, %v2539_v38  ;;  %v424_v50 = vrot.slane %v364_v39, 1  ;;  %v503_v51 = vmul.f32 %v3387_v15, %v481_v3  ;;  %v2894_v3 = vld [vmem:[%s3365_s6 + $0x54] sm:$0xe] }
  0xec   : > { %v563_v54 = vrot.slane %v504_v44, 2  ;;  %v423_v55 = vsel %vm395_vm0, %v421_v46, %v422_v49  ;;  %v565_v27 = vrot.slane %v505_v19, 2  ;;  %v659_v57 = vmul.f32 %v3909_v52, %v3395_v25 }
  0xed   : > { %v2570_v53 = vmax.f32 %v2554_v45, 0.0  ;;  %v2571_v58 = vmax.f32 %v2555_v9, 0.0  ;;  %v425_v62 = vsel %vm395_vm0, %v422_v49, %v424_v50  ;;  %v462_v59 = vadd.f32 %v423_v55, %v321_v33 }
  0xee   : > { %v562_v60 = vrot.slane %v503_v51, 2  ;;  %v463_v0 = vadd.f32 %v425_v62, %v322_v35  ;;  %v566_v1 = vsel %vm536_vm1, %v563_v54, %v565_v27  ;;  %v660_v41 = vmul.f32 %v3912_v56, %v3395_v25  ;;  %v2918_v27 = vld [vmem:[%s3365_s6 + $0x9c] sm:$0xff]  }
  0xef   : > { %v694_v32 = vunpack.c.l.bf16 %v2854_v7  ;;  %v2582_v2 = vpack.c.bf16 %v2571_v58, %v2570_v53  ;;  %v716_v6 = vmul.f32 %v3909_v52, %v3418_v48  ;;  %v717_v8 = vmul.f32 %v3912_v56, %v3418_v48 }
  0xf0   : > { %v564_v5 = vsel %vm536_vm1, %v562_v60, %v563_v54  ;;  %v604_v12 = vadd.f32 %v566_v1, %v463_v0  ;;  %v834_v18 = vunpack.c.l.bf16 %v2862_v63  ;;  %v857_v22 = vmul.f32 %v3912_v56, %v3431_v61 }
  0xf1   : > { %v603_v10 = vadd.f32 %v564_v5, %v462_v59  ;;  %v718_v43 = vmul.f32 %v3418_v48, %v694_v32  ;;  %3230 = vmatprep.mubr.bf16.mxu1 %v2582_v2  ;;  %v774_v17 = vrot.slane %v716_v6, 1  ;;  %v775_v21 = vrot.slane %v717_v8, 1 }
  0xf2   : > { %v858_v23 = vmul.f32 %v3431_v61, %v694_v32  ;;  %v676_v26 = vadd.f32 %v660_v41, %v604_v12  ;;  %v856_v29 = vmul.f32 %v3431_v61, %v834_v18  ;;  %v915_v33 = vrot.slane %v857_v22, 2  ;;  %v2929_v41 = vld [vmem:[%s3365_s6 + $0xa4] sm:$0x1]  ;;  %v2937_v18 = vld [vmem:[%s3365_s6 + $0x9c] sm:$0xe] }
  0xf3   : > { %v675_v24 = vadd.f32 %v659_v57, %v603_v10  ;;  %v777_v28 = vrot.slane %v718_v43, 1  ;;  %v776_v31 = vsel %vm395_vm0, %v774_v17, %v775_v21  ;;  %v991_v35 = vunpack.c.l.bf16 %v2875_v14 }
  0xf4   : > { %v917_v34 = vrot.slane %v858_v23, 2  ;;  %v914_v38 = vrot.slane %v856_v29, 2  ;;  %v992_v39 = vunpack.c.h.bf16 %v2875_v14  ;;  %v1046_v49 = vunpack.c.l.bf16 %v2886_v30 }
  0xf5   : > { %v778_v36 = vsel %vm395_vm0, %v775_v21, %v777_v28  ;;  %v815_v37 = vadd.f32 %v776_v31, %v675_v24  ;;  %v1011_v46 = vmul.f32 %v3443_v16, %v991_v35  ;;  %v1068_v50 = vmul.f32 %v3468_v40, %v991_v35 }
  0xf6   : > { %v816_v44 = vadd.f32 %v778_v36, %v676_v26  ;;  %v918_v45 = vsel %vm536_vm1, %v915_v33, %v917_v34  ;;  %v916_v19 = vsel %vm536_vm1, %v914_v38, %v915_v33  ;;  %v1012_v9 = vmul.f32 %v3443_v16, %v992_v39 }
  0xf7   : > { %v1069_v51 = vmul.f32 %v3468_v40, %v992_v39  ;;  %v955_v54 = vadd.f32 %v916_v19, %v815_v37  ;;  %v1070_v53 = vmul.f32 %v3468_v40, %v1046_v49  ;;  %v1186_v55 = vunpack.c.l.bf16 %v2894_v3 }
  0xf8   : > { %v956_v7 = vadd.f32 %v918_v45, %v816_v44  ;;  %v1126_v57 = vrot.slane %v1068_v50, 1  ;;  %v1209_v62 = vmul.f32 %v3811_v4, %v992_v39  ;;  %v1210_v59 = vmul.f32 %v3811_v4, %v1046_v49 }
  0xf9   : > { %v1127_v58 = vrot.slane %v1069_v51, 1  ;;  %v1027_v60 = vadd.f32 %v1011_v46, %v955_v54  ;;  %v1129_v0 = vrot.slane %v1070_v53, 1  ;;  %v1208_v1 = vmul.f32 %v3811_v4, %v1186_v55  ;;  %v2969_v53 = vld [vmem:[%s3365_s6 + $0xa8] sm:$0xe] }
  0xfa   : > { %v1028_v63 = vadd.f32 %v1012_v9, %v956_v7  ;;  %v1267_v2 = vrot.slane %v1209_v62, 2  ;;  %v1269_v5 = vrot.slane %v1210_v59, 2  ;;  %v1572_v6 = vunpack.c.l.bf16 %v2918_v27  ;;  %v2961_v9 = vld [vmem:[%s3365_s6 + $0xb0] sm:$0x1] }
  0xfb   : > { %v1128_v32 = vsel %vm395_vm0, %v1126_v57, %v1127_v58  ;;  %v1130_v8 = vsel %vm395_vm0, %v1127_v58, %v1129_v0  ;;  %v1266_v12 = vrot.slane %v1208_v1, 2  ;;  %v1573_v43 = vunpack.c.h.bf16 %v2918_v27 }
  0xfc   : > { %v1167_v10 = vadd.f32 %v1128_v32, %v1027_v60  ;;  %v1168_v14 = vadd.f32 %v1130_v8, %v1028_v63  ;;  %v1270_v17 = vsel %vm536_vm1, %v1267_v2, %v1269_v5  ;;  %v1588_v21 = vmul.f32 %v1572_v6, %v3379_v11 }
  0xfd   : > { %v1607_v22 = vunpack.c.l.bf16 %v2929_v41  ;;  %v1268_v23 = vsel %vm536_vm1, %v1266_v12, %v1267_v2  ;;  %v1589_v24 = vmul.f32 %v1573_v43, %v3379_v11  ;;  %v1625_v26 = vmul.f32 %v1572_v6, %v3383_v13  ;;  %v2982_v2 = vld [vmem:[%s3365_s6 + $0xb4] sm:$0xff]   ;;  %v2993_v12 = vld [vmem:[%s3365_s6 + $0xbc] sm:$0x1] }
  0xfe   : > { %v1626_v28 = vmul.f32 %v1573_v43, %v3383_v13  ;;  %v1307_v29 = vadd.f32 %v1268_v23, %v1167_v10  ;;  %v1308_v30 = vadd.f32 %v1270_v17, %v1168_v14  ;;  %v1743_v33 = vunpack.c.l.bf16 %v2937_v18 }
  0xff   : > { %v1627_v31 = vmul.f32 %v1607_v22, %v3383_v13  ;;  %v1683_v34 = vrot.slane %v1625_v26, 1  ;;  %v1762_v36 = vmul.f32 %v1573_v43, %v3387_v15  ;;  %v1763_v37 = vmul.f32 %v1607_v22, %v3387_v15 }
 0x100   : > { %v1684_v35 = vrot.slane %v1626_v28, 1  ;;  %v1329_v38 = vadd.f32 %v3832_v20, %v1307_v29  ;;  %v1330_v39 = vadd.f32 %v3832_v20, %v1308_v30  ;;  %v1761_v44 = vmul.f32 %v1743_v33, %v3387_v15 }
 0x101   : > { %v1686_v3 = vrot.slane %v1627_v31, 1  ;;  %v1820_v46 = vrot.slane %v1762_v36, 2  ;;  %v1822_v49 = vrot.slane %v1763_v37, 2  ;;  %v1912_v19 = vmul.f32 %v3968_v42, %v3395_v25  ;;  %v3001_v36 = vld [vmem:[%s3365_s6 + $0xb4] sm:$0xe] }
 0x102   : > { %v1685_v45 = vsel %vm395_vm0, %v1683_v34, %v1684_v35  ;;  %v1345_v50 = vmax.f32 %v1329_v38, 0.0  ;;  %v1346_v51 = vmax.f32 %v1330_v39, 0.0  ;;  %v1819_v27 = vrot.slane %v1761_v44, 2 }
 0x103   : > { %v1687_v54 = vsel %vm395_vm0, %v1684_v35, %v1686_v3  ;;  %v1724_v7 = vadd.f32 %v1685_v45, %v1588_v21  ;;  %v1823_v57 = vsel %vm536_vm1, %v1820_v46, %v1822_v49  ;;  %v1913_v58 = vmul.f32 %v3972_v47, %v3395_v25 }
 0x104   : > { %v1725_v55 = vadd.f32 %v1687_v54, %v1589_v24  ;;  %v1356_v62 = vpack.c.bf16 %v1346_v51, %v1345_v50  ;;  %v1947_v59 = vunpack.c.l.bf16 %v2961_v9  ;;  %v1965_v60 = vmul.f32 %v3968_v42, %v3418_v48  ;;  %v333_v54 = vld [vmem:[%s3365_s6 + $0x50] sm:$0x1] }
 0x105   : > { %v1966_v63 = vmul.f32 %v3972_v47, %v3418_v48  ;;  %v1821_v0 = vsel %vm536_vm1, %v1819_v27, %v1820_v46  ;;  %v2083_v41 = vunpack.c.l.bf16 %v2969_v53  ;;  %v2102_v32 = vmul.f32 %v3972_v47, %v3431_v61 }
 0x106   : > { %v1861_v1 = vadd.f32 %v1823_v57, %v1725_v55  ;;  %3199 = vmatmul.mubr.bf16.gmra.mrb[8].mxu0 %v1356_v62  ;;  %v1860_v5 = vadd.f32 %v1821_v0, %v1724_v7  ;;  %v1967_v6 = vmul.f32 %v1947_v59, %v3418_v48  ;;  %v2023_v8 = vrot.slane %v1965_v60, 1  ;;  %v474_v60 = vld [vmem:[%s3365_s6 + $0x48] sm:$0xe] }
 0x107   : > { %v2024_v10 = vrot.slane %v1966_v63, 1  ;;  %v2101_v18 = vmul.f32 %v2083_v41, %v3431_v61  ;;  %v2103_v14 = vmul.f32 %v1947_v59, %v3431_v61  ;;  %v2160_v17 = vrot.slane %v2102_v32, 2 }
 0x108   : > { %v1929_v43 = vadd.f32 %v1913_v58, %v1861_v1  ;;  %v1928_v21 = vadd.f32 %v1912_v19, %v1860_v5  ;;  %v2026_v23 = vrot.slane %v1967_v6, 1  ;;  %v2236_v24 = vunpack.c.l.bf16 %v2982_v2 }
 0x109   : > { %v2025_v22 = vsel %vm395_vm0, %v2023_v8, %v2024_v10  ;;  %v2159_v26 = vrot.slane %v2101_v18, 2  ;;  %v2162_v28 = vrot.slane %v2103_v14, 2  ;;  %v2237_v29 = vunpack.c.h.bf16 %v2982_v2 }
 0x10a   : > { %v2287_v30 = vunpack.c.l.bf16 %v2993_v12  ;;  %v2027_v31 = vsel %vm395_vm0, %v2024_v10, %v2026_v23  ;;  %v2064_v33 = vadd.f32 %v2025_v22, %v1928_v21  ;;  %v2252_v34 = vmul.f32 %v2236_v24, %v3443_v16  ;;  %v2845_v21 = vld [vmem:[%s3365_s6 + $0x54] sm:$0xff]  }
 0x10b   : > { %v2305_v35 = vmul.f32 %v2236_v24, %v3468_v40  ;;  %v2065_v37 = vadd.f32 %v2027_v31, %v1929_v43  ;;  %v2161_v38 = vsel %vm536_vm1, %v2159_v26, %v2160_v17  ;;  %v2163_v39 = vsel %vm536_vm1, %v2160_v17, %v2162_v28 }
 0x10c   : > { %v2253_v3 = vmul.f32 %v2237_v29, %v3443_v16  ;;  %v2200_v44 = vadd.f32 %v2161_v38, %v2064_v33  ;;  %v2306_v45 = vmul.f32 %v2237_v29, %v3468_v40  ;;  %v2307_v46 = vmul.f32 %v2287_v30, %v3468_v40 }
 0x10d   : > { %v2363_v49 = vrot.slane %v2305_v35, 1  ;;  %v2201_v19 = vadd.f32 %v2163_v39, %v2065_v37  ;;  %v2423_v9 = vunpack.c.l.bf16 %v3001_v36  ;;  %v2442_v50 = vmul.f32 %v3811_v4, %v2237_v29  ;;  %v2855_v35 = vld [vmem:[%s3365_s6 + $0x5c] sm:$0x1] }
 0x10e   : > { %v2443_v51 = vmul.f32 %v3811_v4, %v2287_v30  ;;  %v2268_v7 = vadd.f32 %v2252_v34, %v2200_v44  ;;  %v2364_v53 = vrot.slane %v2306_v45, 1  ;;  %v2366_v55 = vrot.slane %v2307_v46, 1 }
 0x10f   : > { %v323_v27 = vmul.f32 %v3909_v52, %v3379_v11  ;;  %v2269_v57 = vadd.f32 %v2253_v3, %v2201_v19  ;;  %v2441_v58 = vmul.f32 %v3811_v4, %v2423_v9  ;;  %v2500_v62 = vrot.slane %v2442_v50, 2 }
 0x110   : > { %v2502_v59 = vrot.slane %v2443_v51, 2  ;;  %v2365_v63 = vsel %vm395_vm0, %v2363_v49, %v2364_v53  ;;  %v2367_v0 = vsel %vm395_vm0, %v2364_v53, %v2366_v55  ;;  %v324_v1 = vmul.f32 %v3912_v56, %v3379_v11  ;;  %v2863_v49 = vld [vmem:[%s3365_s6 + $0x54] sm:$0xe]  ;;  %v3129_v55 = vld [vmem:[%s3365_s6 + $0x60] sm:$0xff]  }
 0x111   : > { %v341_v41 = vunpack.c.l.bf16 %v333_v54  ;;  %v2404_v32 = vadd.f32 %v2365_v63, %v2268_v7  ;;  %v2405_v2 = vadd.f32 %v2367_v0, %v2269_v57  ;;  %v2499_v5 = vrot.slane %v2441_v58, 2 }
 0x112   : > { %v2503_v6 = vsel %vm536_vm1, %v2500_v62, %v2502_v59  ;;  %v365_v4 = vmul.f32 %v3909_v52, %v3383_v13  ;;  %v366_v8 = vmul.f32 %v3912_v56, %v3383_v13  ;;  %v482_v12 = vunpack.c.l.bf16 %v474_v60  ;;  %v2887_v59 = vld [vmem:[%s3365_s6 + $0x68] sm:$0x1] }
 0x113   : > { %v367_v10 = vmul.f32 %v3383_v13, %v341_v41  ;;  %v2501_v43 = vsel %vm536_vm1, %v2499_v5, %v2500_v62  ;;  %v2541_v18 = vadd.f32 %v2503_v6, %v2405_v2  ;;  %v507_v14 = vmul.f32 %v3912_v56, %v3387_v15 }
 0x114   : > { %v508_v17 = vmul.f32 %v3387_v15, %v341_v41  ;;  %v2540_v22 = vadd.f32 %v2501_v43, %v2404_v32  ;;  %v426_v23 = vrot.slane %v365_v4, 1  ;;  %v427_v24 = vrot.slane %v366_v8, 1 }
 0x115   : > { %v429_v52 = vrot.slane %v367_v10, 1  ;;  %v2557_v26 = vadd.f32 %v3832_v20, %v2541_v18  ;;  %v506_v28 = vmul.f32 %v3387_v15, %v482_v12  ;;  %v568_v29 = vrot.slane %v507_v14, 2  ;;  %v2895_v12 = vld [vmem:[%s3365_s6 + $0x60] sm:$0xe] }
 0x116   : > { %v570_v30 = vrot.slane %v508_v17, 2  ;;  %v2556_v31 = vadd.f32 %v3832_v20, %v2540_v22  ;;  %v428_v33 = vsel %vm395_vm0, %v426_v23, %v427_v24  ;;  %v641_v34 = vunpack.c.l.bf16 %v2845_v21 }
 0x117   : > { %v430_v56 = vsel %vm395_vm0, %v427_v24, %v429_v52  ;;  %v2573_v36 = vmax.f32 %v2557_v26, 0.0  ;;  %v464_v37 = vadd.f32 %v428_v33, %v323_v27  ;;  %v567_v39 = vrot.slane %v506_v28, 2 }
 0x118   : > { %v465_v38 = vadd.f32 %v430_v56, %v324_v1  ;;  %v2572_v3 = vmax.f32 %v2556_v31, 0.0  ;;  %v571_v44 = vsel %vm536_vm1, %v568_v29, %v570_v30  ;;  %v642_v45 = vunpack.c.h.bf16 %v2845_v21  ;;  %v4152_v56 = vld [vmem:[%s4440_s1 + $0x8] ss:$0 sm:$0xff] }
 0x119   : > { %v661_v46 = vmul.f32 %v3395_v25, %v641_v34  ;;  %v569_v20 = vsel %vm536_vm1, %v567_v39, %v568_v29  ;;  %v695_v9 = vunpack.c.l.bf16 %v2855_v35  ;;  %v719_v50 = vmul.f32 %v3418_v48, %v641_v34  ;;  %v2930_v39 = vld [vmem:[%s3365_s6 + $0xb0] sm:$0x1] }
 0x11a   : > { %v606_v19 = vadd.f32 %v571_v44, %v465_v38  ;;  %v2583_v51 = vpack.c.bf16 %v2573_v36, %v2572_v3  ;;  %v605_v54 = vadd.f32 %v569_v20, %v464_v37  ;;  %v662_v7 = vmul.f32 %v3395_v25, %v642_v45 }
 0x11b   : > { %v720_v53 = vmul.f32 %v3418_v48, %v642_v45  ;;  %v721_v27 = vmul.f32 %v3418_v48, %v695_v9  ;;  %v779_v57 = vrot.slane %v719_v50, 1  ;;  %v835_v58 = vunpack.c.l.bf16 %v2863_v49  ;;  %v2938_v50 = vld [vmem:[%s3365_s6 + $0xa8] sm:$0xe] }
 0x11c   : > { %v860_v62 = vmul.f32 %v3431_v61, %v642_v45  ;;  %3231 = vmatmul.mubr.bf16.gmra.mrb[8].mxu1 %v2583_v51  ;;  %v677_v60 = vadd.f32 %v661_v46, %v605_v54  ;;  %v678_v63 = vadd.f32 %v662_v7, %v606_v19  ;;  %v861_v1 = vmul.f32 %v3431_v61, %v695_v9 }
 0x11d   : > { %v780_v0 = vrot.slane %v720_v53, 1  ;;  %v782_v41 = vrot.slane %v721_v27, 1  ;;  %v859_v32 = vmul.f32 %v3431_v61, %v835_v58  ;;  %v4131_v5 = vunpack.c.l.bf16 %v3129_v55 }
 0x11e   : > { %v920_v2 = vrot.slane %v860_v62, 2  ;;  %v922_v4 = vrot.slane %v861_v1, 2  ;;  %v4134_v8 = vunpack.c.h.bf16 %v3129_v55  ;;  %v1047_v10 = vunpack.c.l.bf16 %v2887_v59 }
 0x11f   : > { %v781_v6 = vsel %vm395_vm0, %v779_v57, %v780_v0  ;;  %v783_v43 = vsel %vm395_vm0, %v780_v0, %v782_v41  ;;  %v919_v14 = vrot.slane %v859_v32, 2  ;;  %v1013_v17 = vmul.f32 %v4131_v5, %v3443_v16  ;;  %v2952_v0 = vld [vmem:[%s3365_s6 + $0xb4] sm:$0xff]  }
 0x120   : > { %v817_v18 = vadd.f32 %v781_v6, %v677_v60  ;;  %v818_v21 = vadd.f32 %v783_v43, %v678_v63  ;;  %v923_v22 = vsel %vm536_vm1, %v920_v2, %v922_v4  ;;  %v1014_v23 = vmul.f32 %v4134_v8, %v3443_v16 }
 0x121   : > { %v1071_v24 = vmul.f32 %v4131_v5, %v3468_v40  ;;  %v921_v52 = vsel %vm536_vm1, %v919_v14, %v920_v2  ;;  %v1072_v26 = vmul.f32 %v4134_v8, %v3468_v40  ;;  %v1073_v28 = vmul.f32 %v3468_v40, %v1047_v10 }
 0x122   : > { %v1187_v29 = vunpack.c.l.bf16 %v2895_v12  ;;  %v957_v30 = vadd.f32 %v921_v52, %v817_v18  ;;  %v958_v31 = vadd.f32 %v923_v22, %v818_v21  ;;  %v1212_v34 = vmul.f32 %v4152_v56, %v4134_v8 }
 0x123   : > { %v1131_v33 = vrot.slane %v1071_v24, 1  ;;  %v1132_v35 = vrot.slane %v1072_v26, 1  ;;  %v1134_v36 = vrot.slane %v1073_v28, 1  ;;  %v1213_v38 = vmul.f32 %v4152_v56, %v1047_v10 }
 0x124   : > { %v1211_v37 = vmul.f32 %v4152_v56, %v1187_v29  ;;  %v1029_v3 = vadd.f32 %v1013_v17, %v957_v30  ;;  %v1030_v44 = vadd.f32 %v1014_v23, %v958_v31  ;;  %v1272_v45 = vrot.slane %v1212_v34, 2  ;;  %v2962_v17 = vld [vmem:[%s3365_s6 + $0xbc] sm:$0x1]  ;;  %v2970_v30 = vld [vmem:[%s3365_s6 + $0xb4] sm:$0xe] }
 0x125   : > { %v1590_v46 = vmul.f32 %v3968_v42, %v3379_v11  ;;  %v1133_v49 = vsel %vm395_vm0, %v1131_v33, %v1132_v35  ;;  %v1135_v20 = vsel %vm395_vm0, %v1132_v35, %v1134_v36  ;;  %v1274_v9 = vrot.slane %v1213_v38, 2 }
 0x126   : > { %v1271_v19 = vrot.slane %v1211_v37, 2  ;;  %v1169_v51 = vadd.f32 %v1133_v49, %v1029_v3  ;;  %v1170_v54 = vadd.f32 %v1135_v20, %v1030_v44  ;;  %v1591_v7 = vmul.f32 %v3972_v47, %v3379_v11  ;;  %v3141_v3 = vld [vmem:[%s3365_s6 + $0xc0] sm:$0xff]  }
 0x127   : > { %v1608_v53 = vunpack.c.l.bf16 %v2930_v39  ;;  %v1275_v27 = vsel %vm536_vm1, %v1272_v45, %v1274_v9  ;;  %v1628_v57 = vmul.f32 %v3968_v42, %v3383_v13  ;;  %v1629_v58 = vmul.f32 %v3972_v47, %v3383_v13  ;;  %v4180_v42 = vld [vmem:[%s4441_s2] ss:$0 sm:$0xff] }
 0x128   : > { %v1273_v55 = vsel %vm536_vm1, %v1271_v19, %v1272_v45  ;;  %v1310_v59 = vadd.f32 %v1275_v27, %v1170_v54  ;;  %v1744_v63 = vunpack.c.l.bf16 %v2938_v50  ;;  %v1765_v32 = vmul.f32 %v3972_v47, %v3387_v15 }
 0x129   : > { %v1309_v62 = vadd.f32 %v1273_v55, %v1169_v51  ;;  %v1630_v60 = vmul.f32 %v1608_v53, %v3383_v13  ;;  %v1688_v1 = vrot.slane %v1628_v57, 1  ;;  %v1689_v41 = vrot.slane %v1629_v58, 1  ;;  %v2994_v58 = vld [vmem:[%s3365_s6 + $0xc8] sm:$0x1] }
 0x12a   : > { %v1766_v2 = vmul.f32 %v1608_v53, %v3387_v15  ;;  %v1332_v4 = vadd.f32 %v4180_v42, %v1310_v59  ;;  %v1764_v12 = vmul.f32 %v1744_v63, %v3387_v15  ;;  %v1825_v18 = vrot.slane %v1765_v32, 2 }
 0x12b   : > { %v1331_v6 = vadd.f32 %v4180_v42, %v1309_v62  ;;  %v1691_v10 = vrot.slane %v1630_v60, 1  ;;  %v1690_v43 = vsel %vm395_vm0, %v1688_v1, %v1689_v41  ;;  %v1898_v47 = vunpack.c.l.bf16 %v2952_v0  ;;  %v3002_v1 = vld [vmem:[%s3365_s6 + $0xc0] sm:$0xe] }
 0x12c   : > { %v1827_v14 = vrot.slane %v1766_v2, 2  ;;  %v1348_v22 = vmax.f32 %v1332_v4, 0.0  ;;  %v1726_v24 = vadd.f32 %v1690_v43, %v1590_v46  ;;  %v1824_v26 = vrot.slane %v1764_v12, 2 }
 0x12d   : > { %v1347_v21 = vmax.f32 %v1331_v6, 0.0  ;;  %v1692_v23 = vsel %vm395_vm0, %v1689_v41, %v1691_v10  ;;  %v1899_v29 = vunpack.c.h.bf16 %v2952_v0  ;;  %v1914_v33 = vmul.f32 %v1898_v47, %v3395_v25 }
 0x12e   : > { %v1727_v52 = vadd.f32 %v1692_v23, %v1591_v7  ;;  %v1828_v28 = vsel %vm536_vm1, %v1825_v18, %v1827_v14  ;;  %v1948_v34 = vunpack.c.l.bf16 %v2962_v17  ;;  %v1968_v35 = vmul.f32 %v1898_v47, %v3418_v48 }
 0x12f   : > { %v1357_v31 = vpack.c.bf16 %v1348_v22, %v1347_v21  ;;  %v1826_v36 = vsel %vm536_vm1, %v1824_v26, %v1825_v18  ;;  %v1915_v38 = vmul.f32 %v1899_v29, %v3395_v25  ;;  %v1969_v39 = vmul.f32 %v1899_v29, %v3418_v48  ;;  %v4196_v44 = vpop.f32.mrb[0].mxu0 }
 0x130   : > { %v1863_v37 = vadd.f32 %v1828_v28, %v1727_v52  ;;  %v1862_v45 = vadd.f32 %v1826_v36, %v1726_v24  ;;  %v1970_v46 = vmul.f32 %v1948_v34, %v3418_v48  ;;  %v2028_v49 = vrot.slane %v1968_v35, 1  ;;  %v4199_v19 = vpop.f32.mrb[1].mxu0  ;;  %v289_v52 = vld [vmem:[%s3365_s6 + $0x54] sm:$0xff]  }
 0x131   : > { %3202 = vmatprep.mubr.bf16.mxu0 %v1357_v31  ;;  %v2084_v20 = vunpack.c.l.bf16 %v2970_v30  ;;  %v2029_v50 = vrot.slane %v1969_v39, 1  ;;  %v2105_v51 = vmul.f32 %v1899_v29, %v3431_v61  ;;  %v2106_v54 = vmul.f32 %v1948_v34, %v3431_v61  ;;  %v4203_v7 = vpop.f32.mrb[2].mxu0  ;;  %v334_v31 = vld [vmem:[%s3365_s6 + $0x5c] sm:$0x1] }
 0x132   : > { %v1931_v9 = vadd.f32 %v1915_v38, %v1863_v37  ;;  %v1930_v53 = vadd.f32 %v1914_v33, %v1862_v45  ;;  %v2031_v55 = vrot.slane %v1970_v46, 1  ;;  %v4206_v57 = vunpack.c.l.bf16 %v3141_v3  ;;  %v4209_v62 = vpop.f32.mrb[3].mxu0 }
 0x133   : > { %v2104_v27 = vmul.f32 %v2084_v20, %v3431_v61  ;;  %v2030_v59 = vsel %vm395_vm0, %v2028_v49, %v2029_v50  ;;  %v2165_v60 = vrot.slane %v2105_v51, 2  ;;  %v2167_v63 = vrot.slane %v2106_v54, 2 }
 0x134   : > { %v4212_v0 = vunpack.c.h.bf16 %v3141_v3  ;;  %v2032_v41 = vsel %vm395_vm0, %v2029_v50, %v2031_v55  ;;  %v2066_v32 = vadd.f32 %v2030_v59, %v1930_v53  ;;  %v2254_v6 = vmul.f32 %v4206_v57, %v3443_v16 }
 0x135   : > { %v2164_v2 = vrot.slane %v2104_v27, 2  ;;  %v2067_v4 = vadd.f32 %v2032_v41, %v1931_v9  ;;  %v2168_v10 = vsel %vm536_vm1, %v2165_v60, %v2167_v63  ;;  %v2288_v43 = vunpack.c.l.bf16 %v2994_v58  ;;  %v475_v9 = vld [vmem:[%s3365_s6 + $0x54] sm:$0xe] }
 0x136   : > { %v2255_v12 = vmul.f32 %v4212_v0, %v3443_v16  ;;  %v2308_v14 = vmul.f32 %v4206_v57, %v3468_v40  ;;  %v2309_v47 = vmul.f32 %v4212_v0, %v3468_v40  ;;  %v2424_v17 = vunpack.c.l.bf16 %v3002_v1 }
 0x137   : > { %v2166_v18 = vsel %vm536_vm1, %v2164_v2, %v2165_v60  ;;  %v2203_v22 = vadd.f32 %v2168_v10, %v2067_v4  ;;  %v2310_v23 = vmul.f32 %v2288_v43, %v3468_v40  ;;  %v2445_v24 = vmul.f32 %v4152_v56, %v4212_v0 }
 0x138   : > { %v2202_v21 = vadd.f32 %v2166_v18, %v2066_v32  ;;  %v2368_v26 = vrot.slane %v2308_v14, 1  ;;  %v2369_v28 = vrot.slane %v2309_v47, 1  ;;  %v2444_v29 = vmul.f32 %v4152_v56, %v2424_v17  ;;  %v2856_v14 = vld [vmem:[%s3365_s6 + $0x68] sm:$0x1] }
 0x139   : > { %v2446_v30 = vmul.f32 %v4152_v56, %v2288_v43  ;;  %v2271_v34 = vadd.f32 %v2255_v12, %v2203_v22  ;;  %v2371_v35 = vrot.slane %v2310_v23, 1  ;;  %v2505_v36 = vrot.slane %v2445_v24, 2 }
 0x13a   : > { %v2270_v33 = vadd.f32 %v2254_v6, %v2202_v21  ;;  %v2370_v37 = vsel %vm395_vm0, %v2368_v26, %v2369_v28  ;;  %v2504_v38 = vrot.slane %v2444_v29, 2  ;;  %v305_v3 = vunpack.c.l.bf16 %v289_v52 }
 0x13b   : > { %v2507_v39 = vrot.slane %v2446_v30, 2  ;;  %v2372_v45 = vsel %vm395_vm0, %v2369_v28, %v2371_v35  ;;  %v306_v49 = vunpack.c.h.bf16 %v289_v52  ;;  %v342_v20 = vunpack.c.l.bf16 %v334_v31  ;;  %v2864_v28 = vld [vmem:[%s3365_s6 + $0x60] sm:$0xe] }
 0x13c   : > { %v2406_v46 = vadd.f32 %v2370_v37, %v2270_v33  ;;  %v2407_v50 = vadd.f32 %v2372_v45, %v2271_v34  ;;  %v2506_v51 = vsel %vm536_vm1, %v2504_v38, %v2505_v36  ;;  %v325_v53 = vmul.f32 %v3379_v11, %v305_v3 }
 0x13d   : > { %v2508_v54 = vsel %vm536_vm1, %v2505_v36, %v2507_v39  ;;  %v326_v27 = vmul.f32 %v3379_v11, %v306_v49  ;;  %v368_v58 = vmul.f32 %v3383_v13, %v305_v3  ;;  %v369_v59 = vmul.f32 %v3383_v13, %v306_v49 }
 0x13e   : > { %v2542_v55 = vadd.f32 %v2506_v51, %v2406_v46  ;;  %v2543_v60 = vadd.f32 %v2508_v54, %v2407_v50  ;;  %v370_v63 = vmul.f32 %v3383_v13, %v342_v20  ;;  %v483_v1 = vunpack.c.l.bf16 %v475_v9  ;;  %v2879_v46 = vld [vmem:[%s3365_s6 + $0x6c] sm:$0xff]  }
 0x13f   : > { %v510_v41 = vmul.f32 %v3387_v15, %v306_v49  ;;  %v431_v2 = vrot.slane %v368_v58, 1  ;;  %v432_v6 = vrot.slane %v369_v59, 1  ;;  %v511_v4 = vmul.f32 %v3387_v15, %v342_v20  ;;  %v2888_v58 = vld [vmem:[%s3365_s6 + $0x74] sm:$0x1] }
 0x140   : > { %v2558_v32 = vadd.f32 %v4180_v42, %v2542_v55  ;;  %v2559_v10 = vadd.f32 %v4180_v42, %v2543_v60  ;;  %v434_v12 = vrot.slane %v370_v63, 1  ;;  %v509_v43 = vmul.f32 %v3387_v15, %v483_v1 }
 0x141   : > { %v573_v18 = vrot.slane %v510_v41, 2  ;;  %v433_v17 = vsel %vm395_vm0, %v431_v2, %v432_v6  ;;  %v575_v21 = vrot.slane %v511_v4, 2  ;;  %v663_v22 = vmul.f32 %v4131_v5, %v3395_v25 }
 0x142   : > { %v2574_v47 = vmax.f32 %v2558_v32, 0.0  ;;  %v2575_v23 = vmax.f32 %v2559_v10, 0.0  ;;  %v435_v24 = vsel %vm395_vm0, %v432_v6, %v434_v12  ;;  %v466_v52 = vadd.f32 %v433_v17, %v325_v53  ;;  %v2896_v10 = vld [vmem:[%s3365_s6 + $0x6c] sm:$0xe] }
 0x143   : > { %v572_v26 = vrot.slane %v509_v43, 2  ;;  %v467_v29 = vadd.f32 %v435_v24, %v326_v27  ;;  %v576_v30 = vsel %vm536_vm1, %v573_v18, %v575_v21  ;;  %v664_v31 = vmul.f32 %v4134_v8, %v3395_v25 }
 0x144   : > { %v696_v33 = vunpack.c.l.bf16 %v2856_v14  ;;  %v2584_v34 = vpack.c.bf16 %v2575_v23, %v2574_v47  ;;  %v722_v36 = vmul.f32 %v4131_v5, %v3418_v48  ;;  %v723_v37 = vmul.f32 %v4134_v8, %v3418_v48 }
 0x145   : > { %v574_v35 = vsel %vm536_vm1, %v572_v26, %v573_v18  ;;  %v608_v39 = vadd.f32 %v576_v30, %v467_v29  ;;  %v836_v45 = vunpack.c.l.bf16 %v2864_v28  ;;  %v4264_v49 = vpop.f32.mrb[0].mxu1  ;;  %v863_v50 = vmul.f32 %v4134_v8, %v3431_v61  ;;  %v2922_v28 = vld [vmem:[%s3365_s6 + $0xb4] sm:$0xff]  }
 0x146   : > { %v607_v38 = vadd.f32 %v574_v35, %v466_v52  ;;  %v724_v3 = vmul.f32 %v3418_v48, %v696_v33  ;;  %3234 = vmatprep.mubr.bf16.mxu1 %v2584_v34  ;;  %v784_v20 = vrot.slane %v722_v36, 1  ;;  %v785_v9 = vrot.slane %v723_v37, 1  ;;  %v4269_v51 = vpop.f32.mrb[1].mxu1 }
 0x147   : > { %v864_v5 = vmul.f32 %v3431_v61, %v696_v33  ;;  %v680_v53 = vadd.f32 %v664_v31, %v608_v39  ;;  %v862_v27 = vmul.f32 %v3431_v61, %v836_v45  ;;  %v4273_v59 = vpop.f32.mrb[2].mxu1  ;;  %v925_v63 = vrot.slane %v863_v50, 2 }
 0x148   : > { %v679_v54 = vadd.f32 %v663_v22, %v607_v38  ;;  %v787_v55 = vrot.slane %v724_v3, 1  ;;  %v786_v60 = vsel %vm395_vm0, %v784_v20, %v785_v9  ;;  %v995_v41 = vunpack.c.l.bf16 %v2879_v46  ;;  %v4276_v32 = vpop.f32.mrb[3].mxu1  ;;  %v2931_v38 = vld [vmem:[%s3365_s6 + $0xbc] sm:$0x1] }
 0x149   : > { %v927_v1 = vrot.slane %v864_v5, 2  ;;  %v924_v6 = vrot.slane %v862_v27, 2  ;;  %v996_v4 = vunpack.c.h.bf16 %v2879_v46  ;;  %v1048_v14 = vunpack.c.l.bf16 %v2888_v58 }
 0x14a   : > { %v788_v8 = vsel %vm395_vm0, %v785_v9, %v787_v55  ;;  %v819_v2 = vadd.f32 %v786_v60, %v679_v54  ;;  %v1015_v18 = vmul.f32 %v3443_v16, %v995_v41  ;;  %v1074_v21 = vmul.f32 %v3468_v40, %v995_v41  ;;  %v2939_v54 = vld [vmem:[%s3365_s6 + $0xb4] sm:$0xe] }
 0x14b   : > { %v820_v12 = vadd.f32 %v788_v8, %v680_v53  ;;  %v928_v43 = vsel %vm536_vm1, %v925_v63, %v927_v1  ;;  %v926_v47 = vsel %vm536_vm1, %v924_v6, %v925_v63  ;;  %v1016_v17 = vmul.f32 %v3443_v16, %v996_v4 }
 0x14c   : > { %v1075_v22 = vmul.f32 %v3468_v40, %v996_v4  ;;  %v959_v23 = vadd.f32 %v926_v47, %v819_v2  ;;  %v1076_v52 = vmul.f32 %v3468_v40, %v1048_v14  ;;  %v1188_v26 = vunpack.c.l.bf16 %v2896_v10 }
 0x14d   : > { %v960_v24 = vadd.f32 %v928_v43, %v820_v12  ;;  %v1136_v29 = vrot.slane %v1074_v21, 1  ;;  %v1215_v31 = vmul.f32 %v4152_v56, %v996_v4  ;;  %v1216_v33 = vmul.f32 %v4152_v56, %v1048_v14 }
 0x14e   : > { %v1137_v30 = vrot.slane %v1075_v22, 1  ;;  %v1031_v34 = vadd.f32 %v1015_v18, %v959_v23  ;;  %v1139_v36 = vrot.slane %v1076_v52, 1  ;;  %v1214_v37 = vmul.f32 %v4152_v56, %v1188_v26 }
 0x14f   : > { %v1032_v35 = vadd.f32 %v1016_v17, %v960_v24  ;;  %v1277_v3 = vrot.slane %v1215_v31, 2  ;;  %v1279_v45 = vrot.slane %v1216_v33, 2  ;;  %v1576_v46 = vunpack.c.l.bf16 %v2922_v28  ;;  %v2963_v24 = vld [vmem:[%s3365_s6 + $0xc8] sm:$0x1] }
 0x150   : > { %v1138_v39 = vsel %vm395_vm0, %v1136_v29, %v1137_v30  ;;  %v1140_v20 = vsel %vm395_vm0, %v1137_v30, %v1139_v36  ;;  %v1276_v50 = vrot.slane %v1214_v37, 2  ;;  %v1577_v5 = vunpack.c.h.bf16 %v2922_v28  ;;  %v2971_v30 = vld [vmem:[%s3365_s6 + $0xc0] sm:$0xe] }
 0x151   : > { %v1171_v9 = vadd.f32 %v1138_v39, %v1031_v34  ;;  %v1172_v53 = vadd.f32 %v1140_v20, %v1032_v35  ;;  %v1280_v55 = vsel %vm536_vm1, %v1277_v3, %v1279_v45  ;;  %v1592_v27 = vmul.f32 %v1576_v46, %v3379_v11  ;;  %v2986_v20 = vld [vmem:[%s3365_s6 + $0xcc] sm:$0xff]  }
 0x152   : > { %v1609_v58 = vunpack.c.l.bf16 %v2931_v38  ;;  %v1278_v60 = vsel %vm536_vm1, %v1276_v50, %v1277_v3  ;;  %v1593_v63 = vmul.f32 %v1577_v5, %v3379_v11  ;;  %v1631_v1 = vmul.f32 %v1576_v46, %v3383_v13 }
 0x153   : > { %v1632_v41 = vmul.f32 %v1577_v5, %v3383_v13  ;;  %v1311_v8 = vadd.f32 %v1278_v60, %v1171_v9  ;;  %v1312_v2 = vadd.f32 %v1280_v55, %v1172_v53  ;;  %v1745_v4 = vunpack.c.l.bf16 %v2939_v54  ;;  %v2995_v54 = vld [vmem:[%s3365_s6 + $0xd4] sm:$0x1] }
 0x154   : > { %v1633_v6 = vmul.f32 %v1609_v58, %v3383_v13  ;;  %v1693_v10 = vrot.slane %v1631_v1, 1  ;;  %v1768_v43 = vmul.f32 %v1577_v5, %v3387_v15  ;;  %v1769_v18 = vmul.f32 %v1609_v58, %v3387_v15 }
 0x155   : > { %v1694_v12 = vrot.slane %v1632_v41, 1  ;;  %v1333_v14 = vadd.f32 %v4180_v42, %v1311_v8  ;;  %v1334_v11 = vadd.f32 %v4180_v42, %v1312_v2  ;;  %v1767_v17 = vmul.f32 %v1745_v4, %v3387_v15 }
 0x156   : > { %v1696_v47 = vrot.slane %v1633_v6, 1  ;;  %v1830_v22 = vrot.slane %v1768_v43, 2  ;;  %v1832_v23 = vrot.slane %v1769_v18, 2  ;;  %v1916_v13 = vmul.f32 %v4206_v57, %v3395_v25 }
 0x157   : > { %v1695_v21 = vsel %vm395_vm0, %v1693_v10, %v1694_v12  ;;  %v1349_v52 = vmax.f32 %v1333_v14, 0.0  ;;  %v1350_v26 = vmax.f32 %v1334_v11, 0.0  ;;  %v1829_v33 = vrot.slane %v1767_v17, 2  ;;  %v4339_v11 = vld [vmem:[%s4443_s4] ss:$0 sm:$0xff] }
 0x158   : > { %v1697_v28 = vsel %vm395_vm0, %v1694_v12, %v1696_v47  ;;  %v1728_v29 = vadd.f32 %v1695_v21, %v1592_v27  ;;  %v1833_v34 = vsel %vm536_vm1, %v1830_v22, %v1832_v23  ;;  %v1917_v15 = vmul.f32 %v4212_v0, %v3395_v25  ;;  %v3003_v12 = vld [vmem:[%s3365_s6 + $0xcc] sm:$0xe] }
 0x159   : > { %v1729_v31 = vadd.f32 %v1697_v28, %v1593_v63  ;;  %v1358_v35 = vpack.c.bf16 %v1350_v26, %v1349_v52  ;;  %v1949_v36 = vunpack.c.l.bf16 %v2963_v24  ;;  %v1971_v37 = vmul.f32 %v4206_v57, %v3418_v48 }
 0x15a   : > { %v1972_v38 = vmul.f32 %v4212_v0, %v3418_v48  ;;  %v1831_v39 = vsel %vm536_vm1, %v1829_v33, %v1830_v22  ;;  %v2085_v45 = vunpack.c.l.bf16 %v2971_v30  ;;  %v2108_v46 = vmul.f32 %v4212_v0, %v3431_v61 }
 0x15b   : > { %v1865_v3 = vadd.f32 %v1833_v34, %v1729_v31  ;;  %3203 = vmatmul.mubr.bf16.gmra.mrb[12].mxu0 %v1358_v35  ;;  %v1864_v9 = vadd.f32 %v1831_v39, %v1728_v29  ;;  %v1973_v25 = vmul.f32 %v1949_v36, %v3418_v48  ;;  %v2033_v50 = vrot.slane %v1971_v37, 1 }
 0x15c   : > { %v2034_v5 = vrot.slane %v1972_v38, 1  ;;  %v2107_v57 = vmul.f32 %v2085_v45, %v3431_v61  ;;  %v2109_v55 = vmul.f32 %v1949_v36, %v3431_v61  ;;  %v2170_v27 = vrot.slane %v2108_v46, 2 }
 0x15d   : > { %v1933_v53 = vadd.f32 %v1917_v15, %v1865_v3  ;;  %v1932_v58 = vadd.f32 %v1916_v13, %v1864_v9  ;;  %v2036_v63 = vrot.slane %v1973_v25, 1  ;;  %v2240_v0 = vunpack.c.l.bf16 %v2986_v20 }
 0x15e   : > { %v2035_v60 = vsel %vm395_vm0, %v2033_v50, %v2034_v5  ;;  %v2169_v1 = vrot.slane %v2107_v57, 2  ;;  %v2172_v41 = vrot.slane %v2109_v55, 2  ;;  %v2241_v8 = vunpack.c.h.bf16 %v2986_v20 }
 0x15f   : > { %v2289_v48 = vunpack.c.l.bf16 %v2995_v54  ;;  %v2037_v2 = vsel %vm395_vm0, %v2034_v5, %v2036_v63  ;;  %v2068_v6 = vadd.f32 %v2035_v60, %v1932_v58  ;;  %v2256_v4 = vmul.f32 %v2240_v0, %v3443_v16 }
 0x160   : > { %v2311_v10 = vmul.f32 %v2240_v0, %v3468_v40  ;;  %v2069_v61 = vadd.f32 %v2037_v2, %v1933_v53  ;;  %v2171_v43 = vsel %vm536_vm1, %v2169_v1, %v2170_v27  ;;  %v2173_v18 = vsel %vm536_vm1, %v2170_v27, %v2172_v41 }
 0x161   : > { %v2257_v14 = vmul.f32 %v2241_v8, %v3443_v16  ;;  %v2204_v47 = vadd.f32 %v2171_v43, %v2068_v6  ;;  %v2312_v17 = vmul.f32 %v2241_v8, %v3468_v40  ;;  %v2313_v21 = vmul.f32 %v2289_v48, %v3468_v40 }
 0x162   : > { %v2373_v22 = vrot.slane %v2311_v10, 1  ;;  %v2205_v23 = vadd.f32 %v2173_v18, %v2069_v61  ;;  %v2425_v13 = vunpack.c.l.bf16 %v3003_v12  ;;  %v2448_v24 = vmul.f32 %v4152_v56, %v2241_v8 }
 0x163   : > { %v2449_v52 = vmul.f32 %v4152_v56, %v2289_v48  ;;  %v2272_v26 = vadd.f32 %v2256_v4, %v2204_v47  ;;  %v2374_v16 = vrot.slane %v2312_v17, 1  ;;  %v2376_v28 = vrot.slane %v2313_v21, 1 }
 0x164   : > { %v1456_v29 = vadd.f32 %v4196_v44, %v4339_v11  ;;  %v2273_v30 = vadd.f32 %v2257_v14, %v2205_v23  ;;  %v2447_v31 = vmul.f32 %v4152_v56, %v2425_v13  ;;  %v2510_v33 = vrot.slane %v2448_v24, 2 }
 0x165   : > { %v2512_v34 = vrot.slane %v2449_v52, 2  ;;  %v2375_v40 = vsel %vm395_vm0, %v2373_v22, %v2374_v16  ;;  %v2377_v15 = vsel %vm395_vm0, %v2374_v16, %v2376_v28  ;;  %v2629_v44 = vadd.f32 %v4264_v49, %v4339_v11 }
 0x166   : > { %v1512_v35 = vmax.f32 %v1456_v29, 0.0  ;;  %v2408_v36 = vadd.f32 %v2375_v40, %v2272_v26  ;;  %v2409_v37 = vadd.f32 %v2377_v15, %v2273_v30  ;;  %v2509_v56 = vrot.slane %v2447_v31, 2 }
 0x167   : > { %v2513_v38 = vsel %vm536_vm1, %v2510_v33, %v2512_v34  ;;  %v2685_v39 = vmax.f32 %v2629_v44, 0.0  ;;  %v1448_v3 = vadd.f32 %v4339_v11, %v4199_v19  ;;  %v2621_v45 = vadd.f32 %v4339_v11, %v4269_v51 }
 0x168   : > { %1528 = vst [vmem:[%s4352_s18 + $0x10] sm:$0xff] %v1512_v35  ;;  %v1459_v46 = vadd.f32 %v4203_v7, %v4339_v11  ;;  %v2511_v49 = vsel %vm536_vm1, %v2509_v56, %v2510_v33  ;;  %v2545_v20 = vadd.f32 %v2513_v38, %v2409_v37  ;;  %v2632_v9 = vadd.f32 %v4273_v59, %v4339_v11 }
 0x169   : > { %v1451_v25 = vadd.f32 %v4339_v11, %v4209_v62  ;;  %v2544_v19 = vadd.f32 %v2511_v49, %v2408_v36  ;;  %3006 = vst [vmem:[%s4352_s18 + $0x90] sm:$0xff] %v2685_v39  ;;  %v1510_v51 = vmax.f32 %v1448_v3, 0.0  ;;  %v2683_v50 = vmax.f32 %v2621_v45, 0.0 }
 0x16a   : > { %v1513_v5 = vmax.f32 %v1459_v46, 0.0  ;;  %v2561_v7 = vadd.f32 %v4180_v42, %v2545_v20  ;;  %v2686_v54 = vmax.f32 %v2632_v9, 0.0  ;;  %v2624_v57 = vadd.f32 %v4339_v11, %v4276_v32 }
 0x16b   : > { %v1511_v53 = vmax.f32 %v1451_v25, 0.0  ;;  %v2560_v59 = vadd.f32 %v4180_v42, %v2544_v19  ;;  %1526 = vst [vmem:[%s4352_s18] sm:$0xff] %v1510_v51  ;;  %3004 = vst [vmem:[%s4352_s18 + $0x80] sm:$0xff] %v2683_v50 }
 0x16c   : > { %1529 = vst [vmem:[%s4352_s18 + $0x18] sm:$0xff] %v1513_v5  ;;  %v2577_v62 = vmax.f32 %v2561_v7, 0.0  ;;  %3007 = vst [vmem:[%s4352_s18 + $0x98] sm:$0xff] %v2686_v54  ;;  %v2684_v55 = vmax.f32 %v2624_v57, 0.0 }
 0x16d   : > { %1527 = vst [vmem:[%s4352_s18 + $0x8] sm:$0xff] %v1511_v53  ;;  %v2576_v27 = vmax.f32 %v2560_v59, 0.0 }
 0x16e   : > { %3005 = vst [vmem:[%s4352_s18 + $0x88] sm:$0xff] %v2684_v55 }
 0x16f   : > { %v2585_v58 = vpack.c.bf16 %v2577_v62, %v2576_v27 }
 0x171   : > { %3235 = vmatmul.mubr.bf16.gmra.mrb[12].mxu1 %v2585_v58 }
 0x184   : > { %v3196_v60 = vpop.f32.mrb[4].mxu0 }
 0x185   : > { %v1472_v32 = vadd.f32 %v3196_v60, %v4339_v11  ;;  %v1463_v63 = vpop.f32.mrb[5].mxu0 }
 0x186   : > { %v1464_v42 = vadd.f32 %v4339_v11, %v1463_v63  ;;  %v3197_v0 = vpop.f32.mrb[6].mxu0 }
 0x187   : > { %v1516_v1 = vmax.f32 %v1472_v32, 0.0  ;;  %v1475_v41 = vadd.f32 %v3197_v0, %v4339_v11  ;;  %v1466_v8 = vpop.f32.mrb[7].mxu0 }
 0x188   : > { %v1514_v48 = vmax.f32 %v1464_v42, 0.0  ;;  %v1467_v2 = vadd.f32 %v4339_v11, %v1466_v8 }
 0x189   : > { %1532 = vst [vmem:[%s4352_s18 + $0x30] sm:$0xff] %v1516_v1  ;;  %v1517_v6 = vmax.f32 %v1475_v41, 0.0 }
 0x18a   : > { %1530 = vst [vmem:[%s4352_s18 + $0x20] sm:$0xff] %v1514_v48  ;;  %v1515_v4 = vmax.f32 %v1467_v2, 0.0 }
 0x18b   : > { %1533 = vst [vmem:[%s4352_s18 + $0x38] sm:$0xff] %v1517_v6 }
 0x18c   : > { %1531 = vst [vmem:[%s4352_s18 + $0x28] sm:$0xff] %v1515_v4 }
 0x19a   : > { %v3228_v10 = vpop.f32.mrb[4].mxu1 }
 0x19b   : > { %v2645_v12 = vadd.f32 %v3228_v10, %v4339_v11  ;;  %v2636_v61 = vpop.f32.mrb[5].mxu1 }
 0x19c   : > { %v2637_v43 = vadd.f32 %v4339_v11, %v2636_v61  ;;  %v3229_v18 = vpop.f32.mrb[6].mxu1 }
 0x19d   : > { %v2689_v14 = vmax.f32 %v2645_v12, 0.0  ;;  %v2648_v47 = vadd.f32 %v3229_v18, %v4339_v11  ;;  %v2639_v17 = vpop.f32.mrb[7].mxu1 }
 0x19e   : > { %v2687_v21 = vmax.f32 %v2637_v43, 0.0  ;;  %v2640_v22 = vadd.f32 %v4339_v11, %v2639_v17 }
 0x19f   : > { %3010 = vst [vmem:[%s4352_s18 + $0xb0] sm:$0xff] %v2689_v14  ;;  %v2690_v23 = vmax.f32 %v2648_v47, 0.0 }
 0x1a0   : > { %3008 = vst [vmem:[%s4352_s18 + $0xa0] sm:$0xff] %v2687_v21  ;;  %v2688_v13 = vmax.f32 %v2640_v22, 0.0 }
 0x1a1   : > { %3011 = vst [vmem:[%s4352_s18 + $0xb8] sm:$0xff] %v2690_v23 }
 0x1a2   : > { %3009 = vst [vmem:[%s4352_s18 + $0xa8] sm:$0xff] %v2688_v13 }
 0x1d9   : > { %v3200_v24 = vpop.f32.mrb[8].mxu0 }
 0x1da   : > { %v1488_v52 = vadd.f32 %v3200_v24, %v4339_v11  ;;  %v1479_v26 = vpop.f32.mrb[9].mxu0 }
 0x1db   : > { %v1480_v16 = vadd.f32 %v4339_v11, %v1479_v26  ;;  %v3201_v28 = vpop.f32.mrb[10].mxu0 }
 0x1dc   : > { %v1520_v29 = vmax.f32 %v1488_v52, 0.0  ;;  %v1491_v30 = vadd.f32 %v3201_v28, %v4339_v11  ;;  %v1482_v31 = vpop.f32.mrb[11].mxu0 }
 0x1dd   : > { %v1518_v33 = vmax.f32 %v1480_v16, 0.0  ;;  %v1483_v34 = vadd.f32 %v4339_v11, %v1482_v31 }
 0x1de   : > { %1536 = vst [vmem:[%s4352_s18 + $0x50] sm:$0xff] %v1520_v29  ;;  %v1521_v40 = vmax.f32 %v1491_v30, 0.0 }
 0x1df   : > { %1534 = vst [vmem:[%s4352_s18 + $0x40] sm:$0xff] %v1518_v33  ;;  %v1519_v15 = vmax.f32 %v1483_v34, 0.0 }
 0x1e0   : > { %1537 = vst [vmem:[%s4352_s18 + $0x58] sm:$0xff] %v1521_v40 }
 0x1e1   : > { %1535 = vst [vmem:[%s4352_s18 + $0x48] sm:$0xff] %v1519_v15 }
 0x1ef   : > { %v3232_v35 = vpop.f32.mrb[8].mxu1 }
 0x1f0   : > { %v2661_v44 = vadd.f32 %v3232_v35, %v4339_v11  ;;  %v2652_v36 = vpop.f32.mrb[9].mxu1 }
 0x1f1   : > { %v2653_v37 = vadd.f32 %v4339_v11, %v2652_v36  ;;  %v3233_v56 = vpop.f32.mrb[10].mxu1 }
 0x1f2   : > { %v2693_v38 = vmax.f32 %v2661_v44, 0.0  ;;  %v2664_v39 = vadd.f32 %v3233_v56, %v4339_v11  ;;  %v2655_v3 = vpop.f32.mrb[11].mxu1 }
 0x1f3   : > { %v2691_v45 = vmax.f32 %v2653_v37, 0.0  ;;  %v2656_v46 = vadd.f32 %v4339_v11, %v2655_v3 }
 0x1f4   : > { %3014 = vst [vmem:[%s4352_s18 + $0xd0] sm:$0xff] %v2693_v38  ;;  %v2694_v49 = vmax.f32 %v2664_v39, 0.0 }
 0x1f5   : > { %3012 = vst [vmem:[%s4352_s18 + $0xc0] sm:$0xff] %v2691_v45  ;;  %v2692_v20 = vmax.f32 %v2656_v46, 0.0 }
 0x1f6   : > { %3015 = vst [vmem:[%s4352_s18 + $0xd8] sm:$0xff] %v2694_v49 }
 0x1f7   : > { %3013 = vst [vmem:[%s4352_s18 + $0xc8] sm:$0xff] %v2692_v20 }
 0x22e   : > { %v3204_v9 = vpop.f32.mrb[12].mxu0 }
 0x22f   : > { %v1504_v25 = vadd.f32 %v3204_v9, %v4339_v11  ;;  %v1495_v19 = vpop.f32.mrb[13].mxu0 }
 0x230   : > { %v1496_v51 = vadd.f32 %v4339_v11, %v1495_v19  ;;  %v3205_v50 = vpop.f32.mrb[14].mxu0 }
 0x231   : > { %v1524_v5 = vmax.f32 %v1504_v25, 0.0  ;;  %v1507_v7 = vadd.f32 %v3205_v50, %v4339_v11  ;;  %v1498_v54 = vpop.f32.mrb[15].mxu0 }
 0x232   : > { %v1522_v53 = vmax.f32 %v1496_v51, 0.0  ;;  %v1499_v57 = vadd.f32 %v4339_v11, %v1498_v54 }
 0x233   : > { %1540 = vst [vmem:[%s4352_s18 + $0x70] sm:$0xff] %v1524_v5  ;;  %v1525_v59 = vmax.f32 %v1507_v7, 0.0 }
 0x234   : > { %1538 = vst [vmem:[%s4352_s18 + $0x60] sm:$0xff] %v1522_v53  ;;  %v1523_v62 = vmax.f32 %v1499_v57, 0.0 }
 0x235   : > { %1541 = vst [vmem:[%s4352_s18 + $0x78] sm:$0xff] %v1525_v59 }
 0x236   : > { %1539 = vst [vmem:[%s4352_s18 + $0x68] sm:$0xff] %v1523_v62 }
 0x244   : > { %v3236_v55 = vpop.f32.mrb[12].mxu1 }
 0x245   : > { %v2677_v27 = vadd.f32 %v3236_v55, %v4339_v11  ;;  %v2668_v58 = vpop.f32.mrb[13].mxu1 }
 0x246   : > { %v2669_v60 = vadd.f32 %v4339_v11, %v2668_v58  ;;  %v3237_v32 = vpop.f32.mrb[14].mxu1 }
 0x247   : > { %v2697_v63 = vmax.f32 %v2677_v27, 0.0  ;;  %v2680_v42 = vadd.f32 %v3237_v32, %v4339_v11  ;;  %v2671_v0 = vpop.f32.mrb[15].mxu1 }
 0x248   : > { %v2695_v1 = vmax.f32 %v2669_v60, 0.0  ;;  %v2672_v41 = vadd.f32 %v4339_v11, %v2671_v0 }
 0x249   : > { %3018 = vst [vmem:[%s4352_s18 + $0xf0] sm:$0xff] %v2697_v63  ;;  %v2698_v8 = vmax.f32 %v2680_v42, 0.0 }
 0x24a   : > { %3016 = vst [vmem:[%s4352_s18 + $0xe0] sm:$0xff] %v2695_v1  ;;  %v2696_v48 = vmax.f32 %v2672_v41, 0.0 }
 0x24b   : > { %3019 = vst [vmem:[%s4352_s18 + $0xf8] sm:$0xff] %v2698_v8 }
 0x24c   : > { %3017 = vst [vmem:[%s4352_s18 + $0xe8] sm:$0xff] %v2696_v48 }
 0x24d PF: > { %s15_s20 = sadd.s32 1, %s3297_s20   ;;  %s4445_s18 = smov %s3293_s19 }
 0x24e   : > { %p12_p5 = scmp.ge.s32.totalorder %s15_s20, 4   ;;  %s4446_s19 = smov %s4448_s21 }
 0x250   :  { %14 = sbr.rel (!%p12_p5) target bundleno = 2 (0x2), region = 77 }

</bundles_post_ra>
